<compile_context>
chip_gen: v5e
topology: v5e:2x2
jax: 0.10.0
libtpu: 0.0.40
codegen_flags: <defaults>
</compile_context>

<pallas_src>
import math
from functools import partial

import jax
import jax.numpy as jnp
from jax.experimental import pallas as pl
from jax.experimental.pallas import tpu as pltpu

EPS = 1e-15
_LANE = 128


def _ru_lane(v):
    """Round up to a multiple of the 128-lane width."""
    return _LANE * ((int(v) + _LANE - 1) // _LANE)


# ----------------------------------------------------------------------------
# Fused per-block kernel: conv1 -> pool linear -> mincut pool -> conv3 -> head
# Processes Bt graphs per grid step.
# ----------------------------------------------------------------------------
def _net_fused_kernel(x_ref, adj_ref, w1_ref, wbig_ref, wsmall_ref, bias_ref,
                      slab_ref, s_ref, *, num_out):
    f32 = jnp.float32
    Bt, N, Cin = x_ref.shape
    H = wbig_ref.shape[-1]
    K = s_ref.shape[-1]
    PACK = slab_ref.shape[-1]
    Cout = num_out

    x = x_ref[...]                      # (Bt, N, Cin)
    adj = adj_ref[...]                  # (Bt, N, N)

    # ---- unpack fused parameters (static, lane/sublane-aligned ref slices) ----
    o_pool = _ru_lane(H)
    o_rel3 = o_pool + _ru_lane(K)
    o_lin1 = o_rel3 + _ru_lane(H)
    o_lin2 = o_lin1 + _ru_lane(H)
    b_rel1 = bias_ref[:, 0:H]                                   # (1, H)
    pool_b = bias_ref[:, o_pool:o_pool + K]                     # (1, K)
    b_rel3 = bias_ref[:, o_rel3:o_rel3 + H]                     # (1, H)
    lin1_b = bias_ref[:, o_lin1:o_lin1 + H]                     # (1, H)
    lin2_b = bias_ref[:, o_lin2:o_lin2 + Cout]                  # (1, Cout)

    w1 = w1_ref[...]                                            # (2*Cin, H) [W_rel1; W_root1]
    w3 = wbig_ref[0:2 * H, :]                                   # (2*H, H)   [W_rel3; W_root3]
    lin1_w = wbig_ref[2 * H:3 * H, :]                           # (H, H)
    pool_w = wsmall_ref[:, 0:K]                                 # (H, K)
    lin2_w = wsmall_ref[:, _ru_lane(K):_ru_lane(K) + Cout]      # (H, Cout)

    # ---- conv1: relu(lin_rel(A @ X) + lin_root(X)), rel/root fused, M = Bt*N rows ----
    agg = jnp.einsum('bnm,bmc->bnc', adj, x, preferred_element_type=f32)    # (Bt, N, Cin)
    xa = jnp.concatenate([agg, x], axis=-1).reshape(Bt * N, 2 * Cin)        # (Bt*N, 2Cin)
    h1 = jnp.dot(xa, w1, preferred_element_type=f32) + b_rel1               # (Bt*N, H)
    h1 = jnp.maximum(h1, 0.0)

    # ---- pool1: raw cluster-assignment logits (returned) + softmax over clusters ----
    logits = jnp.dot(h1, pool_w, preferred_element_type=f32) + pool_b       # (Bt*N, K)
    logits3 = logits.reshape(Bt, N, K)
    s_ref[...] = logits3
    m = jnp.max(logits3, axis=-1, keepdims=True)
    e = jnp.exp(logits3 - m)
    s = e / jnp.sum(e, axis=-1, keepdims=True)                              # (Bt, N, K)
    h1b = h1.reshape(Bt, N, H)

    # ---- dense_mincut_pool ----
    # K is tiny: keep the K-row node contractions on the VPU (broadcast-mul + sublane reduce)
    # instead of degenerate 2-row MXU matmuls.
    def contract_nodes(sel, vals):
        # out[b, k, :] = sum_n sel[b, n, k] * vals[b, n, :]
        cols = [jnp.sum(sel[:, :, k:k + 1] * vals, axis=1, keepdims=True) for k in range(K)]
        return jnp.concatenate(cols, axis=1)

    a_s = jnp.einsum('bnm,bmk->bnk', adj, s, preferred_element_type=f32)    # (Bt, N, K) = A S
    out_x = contract_nodes(s, h1b)                                          # (Bt, K, H) = S^T X
    out_adj = contract_nodes(s, a_s)                                        # (Bt, K, K) = S^T A S
    ss = contract_nodes(s, s)                                               # (Bt, K, K) = S^T S

    eye = (jax.lax.broadcasted_iota(jnp.int32, (K, K), 0)
           == jax.lax.broadcasted_iota(jnp.int32, (K, K), 1)).astype(f32)

    # MinCut regularization: -trace(S^T A S) / trace(S^T D S)
    mincut_num = jnp.sum(jnp.sum(out_adj * eye, axis=-1), axis=-1, keepdims=True)      # (Bt, 1)
    deg = jnp.sum(adj, axis=-1)                                                        # (Bt, N)
    mincut_den = jnp.sum(deg * jnp.sum(s * s, axis=-1), axis=-1, keepdims=True)        # (Bt, 1)
    mincut_loss = -(mincut_num / mincut_den)                                           # (Bt, 1)

    # Orthogonality regularization: || SS/||SS||_F - I/||I||_F ||_F (per graph)
    ss_norm = jnp.sqrt(jnp.sum(jnp.sum(ss * ss, axis=-1), axis=-1, keepdims=True))     # (Bt, 1)
    diff = ss / ss_norm[:, :, None] - eye * (1.0 / math.sqrt(K))
    ortho_loss = jnp.sqrt(jnp.sum(jnp.sum(diff * diff, axis=-1), axis=-1, keepdims=True))

    # Zero diagonal + symmetric normalization D^{-1/2} A D^{-1/2} of the coarsened adjacency.
    out_adj = out_adj * (1.0 - eye)
    d = jnp.sqrt(jnp.sum(out_adj, axis=-1)) + EPS                                      # (Bt, K)
    out_adj = out_adj / d[:, None, :] / d[:, :, None]

    # ---- conv3 (no relu) + mean over clusters; mean commutes with the linear map,
    #      so take it first -> one (Bt, 2H) @ (2H, H) matmul. ----
    agg2 = jnp.einsum('bkj,bjh->bkh', out_adj, out_x, preferred_element_type=f32)      # (Bt, K, H)
    g_in = jnp.concatenate([jnp.mean(agg2, axis=1), jnp.mean(out_x, axis=1)], axis=-1)  # (Bt, 2H)
    h2m = jnp.dot(g_in, w3, preferred_element_type=f32) + b_rel3                       # (Bt, H)

    # ---- head: relu(lin1) -> lin2 -> log_softmax ----
    g = jnp.maximum(jnp.dot(h2m, lin1_w, preferred_element_type=f32) + lin1_b, 0.0)
    y = jnp.dot(g, lin2_w, preferred_element_type=f32) + lin2_b                        # (Bt, Cout)
    z = y - jnp.max(y, axis=-1, keepdims=True)
    logp = z - jnp.log(jnp.sum(jnp.exp(z), axis=-1, keepdims=True))                    # (Bt, Cout)

    # ---- pack adjp / logp / losses into one lane-dense slab; single 128-lane store ----
    adjp_flat = jnp.concatenate([out_adj[:, k, :] for k in range(K)], axis=-1)         # (Bt, K*K)
    used = K * K + Cout + 2
    parts = [adjp_flat, logp, mincut_loss, ortho_loss]
    if PACK > used:
        parts.append(jnp.zeros((Bt, PACK - used), dtype=f32))
    slab_ref[:, 0, :] = jnp.concatenate(parts, axis=-1)


# ----------------------------------------------------------------------------
# Wrapper
# ----------------------------------------------------------------------------
def _pick_batch_block(B, max_bt=8):
    """Largest divisor of B that is <= max_bt while keeping >= 2 grid steps
    (>= 2 'parallel' steps lets v7x shard the batch axis across its 2 TensorCores)."""
    if B <= 1:
        return 1
    best = 1
    for bt in range(1, min(B, max_bt) + 1):
        if B % bt == 0 and B // bt >= 2:
            best = bt
    return best


def _pad_lanes(a):
    w = a.shape[1]
    return jnp.pad(a, ((0, 0), (0, _ru_lane(w) - w)))


def _vmem_bytes_estimate(Bt, N, Cin, H, K, Cout, PACK):
    f = 4
    io = 2 * Bt * (N * N + N * Cin + N * K + PACK) * f                     # double-buffered blocks
    w = 2 * (2 * Cin * H + 3 * H * H + H * (_ru_lane(K) + _ru_lane(Cout))
             + 3 * _ru_lane(H) + _ru_lane(K) + _ru_lane(Cout)) * f
    live = Bt * (3 * N * Cin + 3 * N * H + 3 * N * K + 3 * K * H + 8 * K * K + 8 * H) * f
    return io + w + live


def net_forward(params, x, adj):
    B, N, Cin = x.shape
    H = params["conv1_w_rel"].shape[1]
    K = params["pool1_w"].shape[1]
    Cout = params["lin2_w"].shape[1]
    Bt = _pick_batch_block(B)
    PACK = _ru_lane(K * K + Cout + 2)

    # Fuse / pack the 13 parameter tensors into 4 aligned buffers (fewer DMA streams per step).
    w1 = jnp.concatenate([params["conv1_w_rel"], params["conv1_w_root"]], axis=0)     # (2Cin, H)
    wbig = jnp.concatenate([params["conv3_w_rel"], params["conv3_w_root"],
                            params["lin1_w"]], axis=0)                                # (3H, H)
    wsmall = jnp.concatenate([_pad_lanes(params["pool1_w"]),
                              _pad_lanes(params["lin2_w"])], axis=1)
    biases = jnp.concatenate([_pad_lanes(params["conv1_b_rel"]),
                              _pad_lanes(params["pool1_b"]),
                              _pad_lanes(params["conv3_b_rel"]),
                              _pad_lanes(params["lin1_b"]),
                              _pad_lanes(params["lin2_b"])], axis=1)

    in_specs = [
        pl.BlockSpec((Bt, N, Cin), lambda b: (b, 0, 0)),     # x
        pl.BlockSpec((Bt, N, N), lambda b: (b, 0, 0)),       # adj (read once)
        pl.BlockSpec(w1.shape, lambda b: (0, 0)),            # fused conv1 weight
        pl.BlockSpec(wbig.shape, lambda b: (0, 0)),          # [conv3_rel; conv3_root; lin1]
        pl.BlockSpec(wsmall.shape, lambda b: (0, 0)),        # [pool1_w | lin2_w] (lane-padded)
        pl.BlockSpec(biases.shape, lambda b: (0, 0)),        # all biases (lane-padded)
    ]
    out_specs = (
        pl.BlockSpec((Bt, 1, PACK), lambda b: (b, 0, 0)),    # packed [adjp, logp, mc, ortho]
        pl.BlockSpec((Bt, N, K), lambda b: (b, 0, 0)),       # cluster-assignment logits
    )
    out_shape = (
        jax.ShapeDtypeStruct((B, 1, PACK), jnp.float32),
        jax.ShapeDtypeStruct((B, N, K), jnp.float32),
    )

    compiler_kwargs = {"dimension_semantics": ("parallel",)}
    est = _vmem_bytes_estimate(Bt, N, Cin, H, K, Cout, PACK)
    if est > 12 * 2**20:
        # TODO(synk): for very large N on v7x (64 MiB VMEM) add a node-chunk grid axis for adj.
        compiler_kwargs["vmem_limit_bytes"] = int(min(1.5 * est, 60 * 2**20))

    slab, s = pl.pallas_call(
        partial(_net_fused_kernel, num_out=Cout),
        out_shape=out_shape,
        grid=(B // Bt,),
        in_specs=in_specs,
        out_specs=out_specs,
        compiler_params=pltpu.CompilerParams(**compiler_kwargs),
    )(x, adj, w1, wbig, wsmall, biases)

    kk = K * K
    adjp = slab[:, 0, :kk].reshape(B, K, K)
    logp = slab[:, 0, kk:kk + Cout]
    mc = jnp.mean(slab[:, 0, kk + Cout])
    ortho = jnp.mean(slab[:, 0, kk + Cout + 1])
    # matches torch return: (log_softmax(x), mc1, o1, ClusterAssignTensor_1, ClusterAdjTensor_1)
    return logp, mc, ortho, s, adjp


def init_params(key, in_channels, hidden, out_channels, num_cluster):
    ks = jax.random.split(key, 14)

    def lin(kw, kb, fan_in, fan_out, bias=True):
        bound = 1.0 / math.sqrt(fan_in)
        w = jax.random.uniform(kw, (fan_in, fan_out), jnp.float32, -bound, bound)
        b = (jax.random.uniform(kb, (1, fan_out), jnp.float32, -bound, bound)
             if bias else None)
        return w, b

    p = {}
    p["conv1_w_rel"], p["conv1_b_rel"] = lin(ks[0], ks[1], in_channels, hidden)
    p["conv1_w_root"], _ = lin(ks[2], ks[2], in_channels, hidden, bias=False)
    p["pool1_w"], p["pool1_b"] = lin(ks[3], ks[4], hidden, num_cluster)
    p["conv3_w_rel"], p["conv3_b_rel"] = lin(ks[5], ks[6], hidden, hidden)
    p["conv3_w_root"], _ = lin(ks[7], ks[7], hidden, hidden, bias=False)
    p["lin1_w"], p["lin1_b"] = lin(ks[8], ks[9], hidden, hidden)
    p["lin2_w"], p["lin2_b"] = lin(ks[10], ks[11], hidden, out_channels)
    return p


if __name__ == "__main__":
    key = jax.random.PRNGKey(0)
    # hidden=128 matches the module default (Num_Dimension=128); Num_TCN=2 clusters.
    B, N, C_IN, HIDDEN, NUM_TCN, C_OUT = 8, 32, 8, 128, 2, 4

    kp, kx, ka = jax.random.split(key, 3)
    params = init_params(kp, C_IN, HIDDEN, C_OUT, NUM_TCN)

    x = jax.random.normal(kx, (B, N, C_IN), jnp.float32)
    r = jax.random.uniform(ka, (B, N, N), jnp.float32)
    adj = 0.5 * (r + jnp.swapaxes(r, 1, 2))   # symmetric, non-negative adjacency

    fwd = jax.jit(net_forward)
    logp, mc1, o1, assign, pooled_adj = fwd(params, x, adj)
    jax.block_until_ready((logp, mc1, o1, assign, pooled_adj))

    assert logp.shape == (B, C_OUT)
    assert assign.shape == (B, N, NUM_TCN)
    assert pooled_adj.shape == (B, NUM_TCN, NUM_TCN)
    assert mc1.shape == () and o1.shape == ()
    assert bool(jnp.all(jnp.isfinite(logp)))
    assert bool(jnp.all(jnp.isfinite(pooled_adj)))
    assert bool(jnp.isfinite(mc1)) and bool(jnp.isfinite(o1))
    print("KERNEL_OK")
</pallas_src>

<mosaic_0001>
module attributes {stable_mosaic.version = 11 : i64} {
  func.func @_net_fused_kernel(%arg0: i32, %arg1: memref<4x32x8xf32, #tpu.memory_space<vmem>>, %arg2: memref<4x32x32xf32, #tpu.memory_space<vmem>>, %arg3: memref<16x128xf32, #tpu.memory_space<vmem>>, %arg4: memref<384x128xf32, #tpu.memory_space<vmem>>, %arg5: memref<128x256xf32, #tpu.memory_space<vmem>>, %arg6: memref<1x640xf32, #tpu.memory_space<vmem>>, %arg7: memref<4x1x128xf32, #tpu.memory_space<vmem>>, %arg8: memref<4x32x2xf32, #tpu.memory_space<vmem>>) attributes {dimension_semantics = [#tpu.dimension_semantics<parallel>], iteration_bounds = array<i64: 2>, scalar_prefetch = 0 : i64, scratch_operands = 0 : i64, tpu.core_type = #tpu.core_type<tc>, window_params = [{transform_indices = @transform_0, window_bounds = array<i64: 4, 32, 8>}, {transform_indices = @transform_1, window_bounds = array<i64: 4, 32, 32>}, {pipeline_mode = #tpu.pipeline_mode<synchronous>, transform_indices = @transform_2, window_bounds = array<i64: 16, 128>}, {pipeline_mode = #tpu.pipeline_mode<synchronous>, transform_indices = @transform_3, window_bounds = array<i64: 384, 128>}, {pipeline_mode = #tpu.pipeline_mode<synchronous>, transform_indices = @transform_4, window_bounds = array<i64: 128, 256>}, {pipeline_mode = #tpu.pipeline_mode<synchronous>, transform_indices = @transform_5, window_bounds = array<i64: 1, 640>}, {transform_indices = @transform_6, window_bounds = array<i64: 4, 1, 128>}, {transform_indices = @transform_7, window_bounds = array<i64: 4, 32, 2>}]} {
    %c0 = arith.constant 0 : index
    %c0_0 = arith.constant 0 : index
    %c0_1 = arith.constant 0 : index
    %0 = vector.load %arg1[%c0, %c0_0, %c0_1] : memref<4x32x8xf32, #tpu.memory_space<vmem>>, vector<4x32x8xf32>
    %c0_2 = arith.constant 0 : index
    %c0_3 = arith.constant 0 : index
    %c0_4 = arith.constant 0 : index
    %1 = vector.load %arg2[%c0_2, %c0_3, %c0_4] : memref<4x32x32xf32, #tpu.memory_space<vmem>>, vector<4x32x32xf32>
    %c0_5 = arith.constant 0 : index
    %c0_6 = arith.constant 0 : index
    %2 = vector.load %arg6[%c0_5, %c0_6] : memref<1x640xf32, #tpu.memory_space<vmem>>, vector<1x128xf32>
    %c0_7 = arith.constant 0 : index
    %c128 = arith.constant 128 : index
    %3 = vector.load %arg6[%c0_7, %c128] : memref<1x640xf32, #tpu.memory_space<vmem>>, vector<1x2xf32>
    %c0_8 = arith.constant 0 : index
    %c256 = arith.constant 256 : index
    %4 = vector.load %arg6[%c0_8, %c256] : memref<1x640xf32, #tpu.memory_space<vmem>>, vector<1x128xf32>
    %c0_9 = arith.constant 0 : index
    %c384 = arith.constant 384 : index
    %5 = vector.load %arg6[%c0_9, %c384] : memref<1x640xf32, #tpu.memory_space<vmem>>, vector<1x128xf32>
    %c0_10 = arith.constant 0 : index
    %c512 = arith.constant 512 : index
    %6 = vector.load %arg6[%c0_10, %c512] : memref<1x640xf32, #tpu.memory_space<vmem>>, vector<1x4xf32>
    %c0_11 = arith.constant 0 : index
    %c0_12 = arith.constant 0 : index
    %7 = vector.load %arg3[%c0_11, %c0_12] : memref<16x128xf32, #tpu.memory_space<vmem>>, vector<16x128xf32>
    %c0_13 = arith.constant 0 : index
    %c0_14 = arith.constant 0 : index
    %8 = vector.load %arg4[%c0_13, %c0_14] : memref<384x128xf32, #tpu.memory_space<vmem>>, vector<256x128xf32>
    %c256_15 = arith.constant 256 : index
    %c0_16 = arith.constant 0 : index
    %9 = vector.load %arg4[%c256_15, %c0_16] : memref<384x128xf32, #tpu.memory_space<vmem>>, vector<128x128xf32>
    %c0_17 = arith.constant 0 : index
    %c0_18 = arith.constant 0 : index
    %10 = vector.load %arg5[%c0_17, %c0_18] : memref<128x256xf32, #tpu.memory_space<vmem>>, vector<128x2xf32>
    %c0_19 = arith.constant 0 : index
    %c128_20 = arith.constant 128 : index
    %11 = vector.load %arg5[%c0_19, %c128_20] : memref<128x256xf32, #tpu.memory_space<vmem>>, vector<128x4xf32>
    "tpu.trace_start"() <{level = 10 : i32, message = "bnm,bmc->bnc"}> : () -> ()
    %cst = arith.constant dense<0.000000e+00> : vector<4x32x8xf32>
    %12 = tpu.matmul %1, %0, %cst {dimension_numbers = #tpu.dot_dimension_numbers<[2], [1], [1], [2], [0, 0, 0, 1, 1, 2], [0], [0]>} : vector<4x32x32xf32>, vector<4x32x8xf32>, vector<4x32x8xf32> -> vector<4x32x8xf32>
    "tpu.trace_stop"() : () -> ()
    %13 = tpu.concatenate %12, %0 in 2 : vector<4x32x8xf32>, vector<4x32x8xf32> -> vector<4x32x16xf32>
    %14 = vector.shape_cast %13 : vector<4x32x16xf32> to vector<128x16xf32>
    %cst_21 = arith.constant dense<0.000000e+00> : vector<128x128xf32>
    %15 = tpu.matmul %14, %7, %cst_21 {dimension_numbers = #tpu.dot_dimension_numbers<[1], [0], [0], [1], [0, 0, 1, 1], [], []>} : vector<128x16xf32>, vector<16x128xf32>, vector<128x128xf32> -> vector<128x128xf32>
    %16 = vector.broadcast %2 : vector<1x128xf32> to vector<128x128xf32>
    %17 = arith.addf %15, %16 : vector<128x128xf32>
    %cst_22 = arith.constant 0.000000e+00 : f32
    %18 = vector.broadcast %cst_22 : f32 to vector<128x128xf32>
    %19 = arith.maximumf %17, %18 : vector<128x128xf32>
    %cst_23 = arith.constant dense<0.000000e+00> : vector<128x2xf32>
    %20 = tpu.matmul %19, %10, %cst_23 {dimension_numbers = #tpu.dot_dimension_numbers<[1], [0], [0], [1], [0, 0, 1, 1], [], []>} : vector<128x128xf32>, vector<128x2xf32>, vector<128x2xf32> -> vector<128x2xf32>
    %21 = vector.broadcast %3 : vector<1x2xf32> to vector<128x2xf32>
    %22 = arith.addf %20, %21 : vector<128x2xf32>
    %23 = vector.shape_cast %22 : vector<128x2xf32> to vector<4x32x2xf32>
    %c0_24 = arith.constant 0 : index
    %c0_25 = arith.constant 0 : index
    %c0_26 = arith.constant 0 : index
    %24 = vector.load %arg8[%c0_24, %c0_25, %c0_26] : memref<4x32x2xf32, #tpu.memory_space<vmem>>, vector<4x32x2xf32>
    tpu.vector_store %arg8[%c0_24, %c0_25, %c0_26], %23 {strides = array<i32>} : memref<4x32x2xf32, #tpu.memory_space<vmem>>, vector<4x32x2xf32>,
    %cst_27 = arith.constant dense<0xFF800000> : vector<4x32xf32>
    %25 = vector.multi_reduction <maximumf>, %23, %cst_27 [2] : vector<4x32x2xf32> to vector<4x32xf32>
    %26 = vector.shape_cast %25 : vector<4x32xf32> to vector<4x32x1xf32>
    %27 = vector.broadcast %26 : vector<4x32x1xf32> to vector<4x32x2xf32>
    %28 = arith.subf %23, %27 : vector<4x32x2xf32>
    %29 = math.exp %28 : vector<4x32x2xf32>
    %cst_28 = arith.constant dense<0.000000e+00> : vector<4x32xf32>
    %30 = vector.multi_reduction <add>, %29, %cst_28 [2] : vector<4x32x2xf32> to vector<4x32xf32>
    %31 = vector.shape_cast %30 : vector<4x32xf32> to vector<4x32x1xf32>
    %32 = vector.broadcast %31 : vector<4x32x1xf32> to vector<4x32x2xf32>
    %33 = arith.divf %29, %32 : vector<4x32x2xf32>
    %34 = vector.shape_cast %19 : vector<128x128xf32> to vector<4x32x128xf32>
    "tpu.trace_start"() <{level = 10 : i32, message = "bnm,bmk->bnk"}> : () -> ()
    %cst_29 = arith.constant dense<0.000000e+00> : vector<4x32x2xf32>
    %35 = tpu.matmul %1, %33, %cst_29 {dimension_numbers = #tpu.dot_dimension_numbers<[2], [1], [1], [2], [0, 0, 0, 1, 1, 2], [0], [0]>} : vector<4x32x32xf32>, vector<4x32x2xf32>, vector<4x32x2xf32> -> vector<4x32x2xf32>
    "tpu.trace_stop"() : () -> ()
    %36 = vector.extract_strided_slice %33 {offsets = [0, 0, 0], sizes = [4, 32, 1], strides = [1, 1, 1]} : vector<4x32x2xf32> to vector<4x32x1xf32>
    %37 = vector.broadcast %36 : vector<4x32x1xf32> to vector<4x32x128xf32>
    %38 = arith.mulf %37, %34 : vector<4x32x128xf32>
    %cst_30 = arith.constant dense<0.000000e+00> : vector<4x128xf32>
    %39 = vector.multi_reduction <add>, %38, %cst_30 [1] : vector<4x32x128xf32> to vector<4x128xf32>
    %40 = vector.shape_cast %39 : vector<4x128xf32> to vector<4x1x128xf32>
    %41 = vector.extract_strided_slice %33 {offsets = [0, 0, 1], sizes = [4, 32, 1], strides = [1, 1, 1]} : vector<4x32x2xf32> to vector<4x32x1xf32>
    %42 = vector.broadcast %41 : vector<4x32x1xf32> to vector<4x32x128xf32>
    %43 = arith.mulf %42, %34 : vector<4x32x128xf32>
    %cst_31 = arith.constant dense<0.000000e+00> : vector<4x128xf32>
    %44 = vector.multi_reduction <add>, %43, %cst_31 [1] : vector<4x32x128xf32> to vector<4x128xf32>
    %45 = vector.shape_cast %44 : vector<4x128xf32> to vector<4x1x128xf32>
    %46 = tpu.concatenate %40, %45 in 1 : vector<4x1x128xf32>, vector<4x1x128xf32> -> vector<4x2x128xf32>
    %47 = vector.extract_strided_slice %33 {offsets = [0, 0, 0], sizes = [4, 32, 1], strides = [1, 1, 1]} : vector<4x32x2xf32> to vector<4x32x1xf32>
    %48 = vector.broadcast %47 : vector<4x32x1xf32> to vector<4x32x2xf32>
    %49 = arith.mulf %48, %35 : vector<4x32x2xf32>
    %cst_32 = arith.constant dense<0.000000e+00> : vector<4x2xf32>
    %50 = vector.multi_reduction <add>, %49, %cst_32 [1] : vector<4x32x2xf32> to vector<4x2xf32>
    %51 = vector.shape_cast %50 : vector<4x2xf32> to vector<4x1x2xf32>
    %52 = vector.extract_strided_slice %33 {offsets = [0, 0, 1], sizes = [4, 32, 1], strides = [1, 1, 1]} : vector<4x32x2xf32> to vector<4x32x1xf32>
    %53 = vector.broadcast %52 : vector<4x32x1xf32> to vector<4x32x2xf32>
    %54 = arith.mulf %53, %35 : vector<4x32x2xf32>
    %cst_33 = arith.constant dense<0.000000e+00> : vector<4x2xf32>
    %55 = vector.multi_reduction <add>, %54, %cst_33 [1] : vector<4x32x2xf32> to vector<4x2xf32>
    %56 = vector.shape_cast %55 : vector<4x2xf32> to vector<4x1x2xf32>
    %57 = tpu.concatenate %51, %56 in 1 : vector<4x1x2xf32>, vector<4x1x2xf32> -> vector<4x2x2xf32>
    %58 = vector.extract_strided_slice %33 {offsets = [0, 0, 0], sizes = [4, 32, 1], strides = [1, 1, 1]} : vector<4x32x2xf32> to vector<4x32x1xf32>
    %59 = vector.broadcast %58 : vector<4x32x1xf32> to vector<4x32x2xf32>
    %60 = arith.mulf %59, %33 : vector<4x32x2xf32>
    %cst_34 = arith.constant dense<0.000000e+00> : vector<4x2xf32>
    %61 = vector.multi_reduction <add>, %60, %cst_34 [1] : vector<4x32x2xf32> to vector<4x2xf32>
    %62 = vector.shape_cast %61 : vector<4x2xf32> to vector<4x1x2xf32>
    %63 = vector.extract_strided_slice %33 {offsets = [0, 0, 1], sizes = [4, 32, 1], strides = [1, 1, 1]} : vector<4x32x2xf32> to vector<4x32x1xf32>
    %64 = vector.broadcast %63 : vector<4x32x1xf32> to vector<4x32x2xf32>
    %65 = arith.mulf %64, %33 : vector<4x32x2xf32>
    %cst_35 = arith.constant dense<0.000000e+00> : vector<4x2xf32>
    %66 = vector.multi_reduction <add>, %65, %cst_35 [1] : vector<4x32x2xf32> to vector<4x2xf32>
    %67 = vector.shape_cast %66 : vector<4x2xf32> to vector<4x1x2xf32>
    %68 = tpu.concatenate %62, %67 in 1 : vector<4x1x2xf32>, vector<4x1x2xf32> -> vector<4x2x2xf32>
    %69 = tpu.iota {dimensions = array<i32: 0>} : vector<2x2xi32>
    %70 = tpu.iota {dimensions = array<i32: 1>} : vector<2x2xi32>
    %71 = arith.cmpi eq, %69, %70 : vector<2x2xi32>
    %72 = arith.extui %71 : vector<2x2xi1> to vector<2x2xi32>
    %73 = arith.sitofp %72 : vector<2x2xi32> to vector<2x2xf32>
    %74 = vector.shape_cast %73 : vector<2x2xf32> to vector<1x2x2xf32>
    %75 = vector.broadcast %74 : vector<1x2x2xf32> to vector<4x2x2xf32>
    %76 = arith.mulf %57, %75 : vector<4x2x2xf32>
    %cst_36 = arith.constant dense<0.000000e+00> : vector<4x2xf32>
    %77 = vector.multi_reduction <add>, %76, %cst_36 [2] : vector<4x2x2xf32> to vector<4x2xf32>
    %cst_37 = arith.constant dense<0.000000e+00> : vector<4xf32>
    %78 = vector.multi_reduction <add>, %77, %cst_37 [1] : vector<4x2xf32> to vector<4xf32>
    %79 = vector.shape_cast %78 : vector<4xf32> to vector<4x1xf32>
    %cst_38 = arith.constant dense<0.000000e+00> : vector<4x32xf32>
    %80 = vector.multi_reduction <add>, %1, %cst_38 [2] : vector<4x32x32xf32> to vector<4x32xf32>
    %81 = arith.mulf %33, %33 : vector<4x32x2xf32>
    %cst_39 = arith.constant dense<0.000000e+00> : vector<4x32xf32>
    %82 = vector.multi_reduction <add>, %81, %cst_39 [2] : vector<4x32x2xf32> to vector<4x32xf32>
    %83 = arith.mulf %80, %82 : vector<4x32xf32>
    %cst_40 = arith.constant dense<0.000000e+00> : vector<4xf32>
    %84 = vector.multi_reduction <add>, %83, %cst_40 [1] : vector<4x32xf32> to vector<4xf32>
    %85 = vector.shape_cast %84 : vector<4xf32> to vector<4x1xf32>
    %86 = arith.divf %79, %85 : vector<4x1xf32>
    %cst_41 = arith.constant 0.000000e+00 : f32
    %87 = vector.broadcast %cst_41 : f32 to vector<4x1xf32>
    %88 = arith.subf %87, %86 : vector<4x1xf32>
    %89 = arith.mulf %68, %68 : vector<4x2x2xf32>
    %cst_42 = arith.constant dense<0.000000e+00> : vector<4x2xf32>
    %90 = vector.multi_reduction <add>, %89, %cst_42 [2] : vector<4x2x2xf32> to vector<4x2xf32>
    %cst_43 = arith.constant dense<0.000000e+00> : vector<4xf32>
    %91 = vector.multi_reduction <add>, %90, %cst_43 [1] : vector<4x2xf32> to vector<4xf32>
    %92 = vector.shape_cast %91 : vector<4xf32> to vector<4x1xf32>
    %93 = math.sqrt %92 : vector<4x1xf32>
    %94 = vector.shape_cast %93 : vector<4x1xf32> to vector<4x1x1xf32>
    %95 = vector.broadcast %94 : vector<4x1x1xf32> to vector<4x2x2xf32>
    %96 = arith.divf %68, %95 : vector<4x2x2xf32>
    %cst_44 = arith.constant 0.707106769 : f32
    %97 = vector.broadcast %cst_44 : f32 to vector<2x2xf32>
    %98 = arith.mulf %73, %97 : vector<2x2xf32>
    %99 = vector.shape_cast %98 : vector<2x2xf32> to vector<1x2x2xf32>
    %100 = vector.broadcast %99 : vector<1x2x2xf32> to vector<4x2x2xf32>
    %101 = arith.subf %96, %100 : vector<4x2x2xf32>
    %102 = arith.mulf %101, %101 : vector<4x2x2xf32>
    %cst_45 = arith.constant dense<0.000000e+00> : vector<4x2xf32>
    %103 = vector.multi_reduction <add>, %102, %cst_45 [2] : vector<4x2x2xf32> to vector<4x2xf32>
    %cst_46 = arith.constant dense<0.000000e+00> : vector<4xf32>
    %104 = vector.multi_reduction <add>, %103, %cst_46 [1] : vector<4x2xf32> to vector<4xf32>
    %105 = vector.shape_cast %104 : vector<4xf32> to vector<4x1xf32>
    %106 = math.sqrt %105 : vector<4x1xf32>
    %cst_47 = arith.constant 1.000000e+00 : f32
    %107 = vector.broadcast %cst_47 : f32 to vector<2x2xf32>
    %108 = arith.subf %107, %73 : vector<2x2xf32>
    %109 = vector.shape_cast %108 : vector<2x2xf32> to vector<1x2x2xf32>
    %110 = vector.broadcast %109 : vector<1x2x2xf32> to vector<4x2x2xf32>
    %111 = arith.mulf %57, %110 : vector<4x2x2xf32>
    %cst_48 = arith.constant dense<0.000000e+00> : vector<4x2xf32>
    %112 = vector.multi_reduction <add>, %111, %cst_48 [2] : vector<4x2x2xf32> to vector<4x2xf32>
    %113 = math.sqrt %112 : vector<4x2xf32>
    %cst_49 = arith.constant 1.000000e-15 : f32
    %114 = vector.broadcast %cst_49 : f32 to vector<4x2xf32>
    %115 = arith.addf %113, %114 : vector<4x2xf32>
    %116 = vector.shape_cast %115 : vector<4x2xf32> to vector<4x1x2xf32>
    %117 = vector.broadcast %116 : vector<4x1x2xf32> to vector<4x2x2xf32>
    %118 = arith.divf %111, %117 : vector<4x2x2xf32>
    %119 = vector.shape_cast %115 : vector<4x2xf32> to vector<4x2x1xf32>
    %120 = vector.broadcast %119 : vector<4x2x1xf32> to vector<4x2x2xf32>
    %121 = arith.divf %118, %120 : vector<4x2x2xf32>
    "tpu.trace_start"() <{level = 10 : i32, message = "bkj,bjh->bkh"}> : () -> ()
    %cst_50 = arith.constant dense<0.000000e+00> : vector<4x2x128xf32>
    %122 = tpu.matmul %121, %46, %cst_50 {dimension_numbers = #tpu.dot_dimension_numbers<[2], [1], [1], [2], [0, 0, 0, 1, 1, 2], [0], [0]>} : vector<4x2x2xf32>, vector<4x2x128xf32>, vector<4x2x128xf32> -> vector<4x2x128xf32>
    "tpu.trace_stop"() : () -> ()
    %cst_51 = arith.constant dense<0.000000e+00> : vector<4x128xf32>
    %123 = vector.multi_reduction <add>, %122, %cst_51 [1] : vector<4x2x128xf32> to vector<4x128xf32>
    %cst_52 = arith.constant 2.000000e+00 : f32
    %124 = vector.broadcast %cst_52 : f32 to vector<4x128xf32>
    %125 = arith.divf %123, %124 : vector<4x128xf32>
    %cst_53 = arith.constant dense<0.000000e+00> : vector<4x128xf32>
    %126 = vector.multi_reduction <add>, %46, %cst_53 [1] : vector<4x2x128xf32> to vector<4x128xf32>
    %cst_54 = arith.constant 2.000000e+00 : f32
    %127 = vector.broadcast %cst_54 : f32 to vector<4x128xf32>
    %128 = arith.divf %126, %127 : vector<4x128xf32>
    %129 = tpu.concatenate %125, %128 in 1 : vector<4x128xf32>, vector<4x128xf32> -> vector<4x256xf32>
    %cst_55 = arith.constant dense<0.000000e+00> : vector<4x128xf32>
    %130 = tpu.matmul %129, %8, %cst_55 {dimension_numbers = #tpu.dot_dimension_numbers<[1], [0], [0], [1], [0, 0, 1, 1], [], []>} : vector<4x256xf32>, vector<256x128xf32>, vector<4x128xf32> -> vector<4x128xf32>
    %131 = vector.broadcast %4 : vector<1x128xf32> to vector<4x128xf32>
    %132 = arith.addf %130, %131 : vector<4x128xf32>
    %cst_56 = arith.constant dense<0.000000e+00> : vector<4x128xf32>
    %133 = tpu.matmul %132, %9, %cst_56 {dimension_numbers = #tpu.dot_dimension_numbers<[1], [0], [0], [1], [0, 0, 1, 1], [], []>} : vector<4x128xf32>, vector<128x128xf32>, vector<4x128xf32> -> vector<4x128xf32>
    %134 = vector.broadcast %5 : vector<1x128xf32> to vector<4x128xf32>
    %135 = arith.addf %133, %134 : vector<4x128xf32>
    %cst_57 = arith.constant 0.000000e+00 : f32
    %136 = vector.broadcast %cst_57 : f32 to vector<4x128xf32>
    %137 = arith.maximumf %135, %136 : vector<4x128xf32>
    %cst_58 = arith.constant dense<0.000000e+00> : vector<4x4xf32>
    %138 = tpu.matmul %137, %11, %cst_58 {dimension_numbers = #tpu.dot_dimension_numbers<[1], [0], [0], [1], [0, 0, 1, 1], [], []>} : vector<4x128xf32>, vector<128x4xf32>, vector<4x4xf32> -> vector<4x4xf32>
    %139 = vector.broadcast %6 : vector<1x4xf32> to vector<4x4xf32>
    %140 = arith.addf %138, %139 : vector<4x4xf32>
    %cst_59 = arith.constant dense<0xFF800000> : vector<4xf32>
    %141 = vector.multi_reduction <maximumf>, %140, %cst_59 [1] : vector<4x4xf32> to vector<4xf32>
    %142 = vector.shape_cast %141 : vector<4xf32> to vector<4x1xf32>
    %143 = vector.broadcast %142 : vector<4x1xf32> to vector<4x4xf32>
    %144 = arith.subf %140, %143 : vector<4x4xf32>
    %145 = math.exp %144 : vector<4x4xf32>
    %cst_60 = arith.constant dense<0.000000e+00> : vector<4xf32>
    %146 = vector.multi_reduction <add>, %145, %cst_60 [1] : vector<4x4xf32> to vector<4xf32>
    %147 = vector.shape_cast %146 : vector<4xf32> to vector<4x1xf32>
    %148 = math.log %147 : vector<4x1xf32>
    %149 = vector.broadcast %148 : vector<4x1xf32> to vector<4x4xf32>
    %150 = arith.subf %144, %149 : vector<4x4xf32>
    %151 = vector.extract_strided_slice %121 {offsets = [0, 0, 0], sizes = [4, 1, 2], strides = [1, 1, 1]} : vector<4x2x2xf32> to vector<4x1x2xf32>
    %152 = vector.shape_cast %151 : vector<4x1x2xf32> to vector<4x2xf32>
    %153 = vector.extract_strided_slice %121 {offsets = [0, 1, 0], sizes = [4, 1, 2], strides = [1, 1, 1]} : vector<4x2x2xf32> to vector<4x1x2xf32>
    %154 = vector.shape_cast %153 : vector<4x1x2xf32> to vector<4x2xf32>
    %155 = tpu.concatenate %152, %154 in 1 : vector<4x2xf32>, vector<4x2xf32> -> vector<4x4xf32>
    %cst_61 = arith.constant 0.000000e+00 : f32
    %156 = vector.broadcast %cst_61 : f32 to vector<4x118xf32>
    %157 = tpu.concatenate %155, %150, %88, %106, %156 in 1 : vector<4x4xf32>, vector<4x4xf32>, vector<4x1xf32>, vector<4x1xf32>, vector<4x118xf32> -> vector<4x128xf32>
    %c0_62 = arith.constant 0 : index
    %c0_63 = arith.constant 0 : index
    %c0_64 = arith.constant 0 : index
    %158 = vector.load %arg7[%c0_62, %c0_63, %c0_64] : memref<4x1x128xf32, #tpu.memory_space<vmem>>, vector<4x1x128xf32>
    %159 = vector.shape_cast %158 : vector<4x1x128xf32> to vector<4x128xf32>
    %160 = vector.shape_cast %157 : vector<4x128xf32> to vector<4x1x128xf32>
    tpu.vector_store %arg7[%c0_62, %c0_63, %c0_64], %160 {strides = array<i32>} : memref<4x1x128xf32, #tpu.memory_space<vmem>>, vector<4x1x128xf32>,
    return
  }
  func.func @transform_0(%arg0: i32) -> (i32, i32, i32) {
    %c0_i32 = arith.constant 0 : i32
    %c0_i32_0 = arith.constant 0 : i32
    %c0_i32_1 = arith.constant 0 : i32
    return %arg0, %c0_i32, %c0_i32_0 : i32, i32, i32
  }
  func.func @transform_1(%arg0: i32) -> (i32, i32, i32) {
    %c0_i32 = arith.constant 0 : i32
    %c0_i32_0 = arith.constant 0 : i32
    %c0_i32_1 = arith.constant 0 : i32
    return %arg0, %c0_i32, %c0_i32_0 : i32, i32, i32
  }
  func.func @transform_2(%arg0: i32) -> (i32, i32) {
    %c0_i32 = arith.constant 0 : i32
    %c0_i32_0 = arith.constant 0 : i32
    %c0_i32_1 = arith.constant 0 : i32
    return %c0_i32, %c0_i32_0 : i32, i32
  }
  func.func @transform_3(%arg0: i32) -> (i32, i32) {
    %c0_i32 = arith.constant 0 : i32
    %c0_i32_0 = arith.constant 0 : i32
    %c0_i32_1 = arith.constant 0 : i32
    return %c0_i32, %c0_i32_0 : i32, i32
  }
  func.func @transform_4(%arg0: i32) -> (i32, i32) {
    %c0_i32 = arith.constant 0 : i32
    %c0_i32_0 = arith.constant 0 : i32
    %c0_i32_1 = arith.constant 0 : i32
    return %c0_i32, %c0_i32_0 : i32, i32
  }
  func.func @transform_5(%arg0: i32) -> (i32, i32) {
    %c0_i32 = arith.constant 0 : i32
    %c0_i32_0 = arith.constant 0 : i32
    %c0_i32_1 = arith.constant 0 : i32
    return %c0_i32, %c0_i32_0 : i32, i32
  }
  func.func @transform_6(%arg0: i32) -> (i32, i32, i32) {
    %c0_i32 = arith.constant 0 : i32
    %c0_i32_0 = arith.constant 0 : i32
    %c0_i32_1 = arith.constant 0 : i32
    return %arg0, %c0_i32, %c0_i32_0 : i32, i32, i32
  }
  func.func @transform_7(%arg0: i32) -> (i32, i32, i32) {
    %c0_i32 = arith.constant 0 : i32
    %c0_i32_0 = arith.constant 0 : i32
    %c0_i32_1 = arith.constant 0 : i32
    return %arg0, %c0_i32, %c0_i32_0 : i32, i32, i32
  }
}

</mosaic_0001>

<bundles_post_ra>
// kernel: net_forward.1
= control target key start
LH: loop header
LB: loop body
LE: loop exit
PB: predicated region body
PF: predicated region fallthrough
CT: control target
= control target key end

     0   :  { %s3310_s24 = smov 0   ;;  %s4989_s0 = inlined_call_operand.vmem [shape: f32[8,32,8], index: 0, kind: input, shape index: {}]   ;;  %s4990_s1 = inlined_call_operand.vmem [shape: f32[8,32,32], index: 1, kind: input, shape index: {}]   ;;  %s4991_s2 = inlined_call_operand.vmem [shape: f32[16,128], index: 2, kind: input, shape index: {}]   ;;  %s4992_s3 = inlined_call_operand.vmem [shape: f32[384,128], index: 3, kind: input, shape index: {}]   ;;  %s4993_s4 = inlined_call_operand.vmem [shape: f32[128,256], index: 4, kind: input, shape index: {}]   ;;  %s4994_s5 = inlined_call_operand.vmem [shape: f32[1,640], index: 5, kind: input, shape index: {}]   ;;  %s4995_s6 = inlined_call_operand.vmem [shape: f32[8,1,128], index: 6, kind: output, shape index: {0}]   ;;  %s4996_s7 = inlined_call_operand.vmem [shape: f32[8,32,2], index: 7, kind: output, shape index: {1}]  }
   0x1 LB: > { %s2978_s25 = sadd.s32 4294967295, %s3261_s24   ;;  %p2982_p0 = scmp.ge.s32.totalorder %s3261_s24, 1  ;;  %s3261_s24 = sphi %s3310_s24, %s18_s24  }
   0x2   : > { %p254_p1 = scmp.lt.s32.totalorder %s3261_s24, 3 }
   0x4   : > { %p255_p2 = pnand %p2982_p0, %p254_p1 }
   0x6   : > { %258 = sbr.rel (%p255_p2) target bundleno = 2071 (0x817), region = 44 }
   0xb   : > { %s2983_s26 = sshll.u32 %s2978_s25, 2  ;;  %s3263_s11 = smov 8   ;;  %vm5012_vm0 = vcmask 261120   ;;  %v362_v16 = vld [vmem:[%s4991_s2 + $0x8] sm:$0xff]  ;;  %v361_v33 = vld [vmem:[%s4991_s2] sm:$0xff]  ;;  %vm5009_vm1 = vcmask 64512  }
   0xc   : > { %p299_p3 = scmp.lt.s32.totalorder %s2983_s26, 7  ;;  %vm692_vm2 = vcmask 130048   ;;  %v426_v62 = vld [vmem:[%s4993_s4 + $0xf0] sm:$0xff]  ;;  %v425_v63 = vld [vmem:[%s4993_s4 + $0xe0] sm:$0xff]  ;;  %vm890_vm3 = vcmask 15360  }
   0xe   : > { %s5064_s26 = smov (!%p299_p3, %s2983_s26), 7 }
   0xf   : > { %s3321_s27 = sshll.u32 %s5064_s26, 5  ;;  %s315_s14 = scalar_lea.vmem %s4995_s6, %s5064_s26 }
  0x10   : > { %s3327_s30 = scalar_lea.vmem %s4989_s0, %s3321_s27  ;;  %s3337_s10 = scalar_lea.vmem %s4990_s1, %s3321_s27 }
  0x11   : > { %v327_v0 = vld [vmem:[%s3327_s30 + $0x18] sm:$0xff]  ;;  %v326_v1 = vld [vmem:[%s3327_s30 + $0x10] sm:$0xff]  ;;  %v324_v2 = vld [vmem:[%s3327_s30] sm:$0xff]  ;;  %s3545_s16 = scalar_lea.vmem %s4996_s7, %s3321_s27 }
  0x12   : > { %468 = vmatpush.msra.mxu0 %v327_v0  ;;  %3055 = vmatpush.msra.mxu2 %v327_v0  ;;  %v325_v3 = vld [vmem:[%s3327_s30 + $0x8] sm:$0xff]  ;;  %v331_v4 = vld [vmem:[%s3327_s30 + $0x38] sm:$0xff]  ;;  %v330_v5 = vld [vmem:[%s3327_s30 + $0x30] sm:$0xff] }
  0x13   : > { %624 = vrot.lane.b32.xlu0 %v324_v2, %s3263_s11  ;;  %509 = vmatpush.msra.mxu1 %v331_v4  ;;  %v340_v6 = vld [vmem:[%s3337_s10] sm:$0xff]  ;;  %v343_v7 = vld [vmem:[%s3337_s10 + $0x18] sm:$0xff]  ;;  %v329_v9 = vld [vmem:[%s3327_s30 + $0x28] sm:$0xff] }
  0x14   : > { %469 = vmatpush.msra.mxu0 %v326_v1  ;;  %3056 = vmatpush.msra.mxu2 %v326_v1  ;;  %v328_v8 = vld [vmem:[%s3327_s30 + $0x20] sm:$0xff]  ;;  %v335_v10 = vld [vmem:[%s3327_s30 + $0x58] sm:$0xff]  ;;  %v334_v11 = vld [vmem:[%s3327_s30 + $0x50] sm:$0xff] }
  0x15   : > { %628 = vrot.lane.b32.xlu1 %v326_v1, %s3263_s11  ;;  %510 = vmatpush.msra.mxu1 %v330_v5  ;;  %v339_v12 = vld [vmem:[%s3327_s30 + $0x78] sm:$0xff]  ;;  %v344_v13 = vld [vmem:[%s3337_s10 + $0x20] sm:$0xff]  ;;  %v333_v14 = vld [vmem:[%s3327_s30 + $0x48] sm:$0xff] }
  0x16   : > { %470 = vmatpush.msra.mxu0 %v325_v3  ;;  %3057 = vmatpush.msra.mxu2 %v325_v3  ;;  %v338_v15 = vld [vmem:[%s3327_s30 + $0x70] sm:$0xff]  ;;  %v332_v17 = vld [vmem:[%s3327_s30 + $0x40] sm:$0xff]  ;;  %v337_v18 = vld [vmem:[%s3327_s30 + $0x68] sm:$0xff] }
  0x17   : > { %632 = vrot.lane.b32.xlu2 %v328_v8, %s3263_s11  ;;  %511 = vmatpush.msra.mxu1 %v329_v9  ;;  %v341_v19 = vld [vmem:[%s3337_s10 + $0x8] sm:$0xff]  ;;  %v348_v20 = vld [vmem:[%s3337_s10 + $0x40] sm:$0xff]  ;;  %v342_v24 = vld [vmem:[%s3337_s10 + $0x10] sm:$0xff] }
  0x18   : > { %471 = vmatpush.msra.mxu0 %v324_v2  ;;  %3058 = vmatpush.msra.mxu2 %v324_v2  ;;  %v336_v21 = vld [vmem:[%s3327_s30 + $0x60] sm:$0xff]  ;;  %v345_v23 = vld [vmem:[%s3337_s10 + $0x28] sm:$0xff]  ;;  %v346_v27 = vld [vmem:[%s3337_s10 + $0x30] sm:$0xff] }
  0x19   : > { %2993 = vmatmul.msk.f32.vlgmr.msra.gmra.mxu0 %vm5012_vm0, %v340_v6  ;;  %2996 = vmatmul.msk.f32.vlgmr.msra.gmra.mxu2 %vm5012_vm0, %v343_v7  ;;  %v352_v22 = vld [vmem:[%s3337_s10 + $0x60] sm:$0xff]  ;;  %v349_v25 = vld [vmem:[%s3337_s10 + $0x48] sm:$0xff]  ;;  %v350_v28 = vld [vmem:[%s3337_s10 + $0x50] sm:$0xff] }
  0x1a   : > { %550 = vmatpush.msrb.mxu2 %v335_v10  ;;  %591 = vmatpush.msra.mxu3 %v339_v12  ;;  %v353_v26 = vld [vmem:[%s3337_s10 + $0x68] sm:$0xff]  ;;  %v354_v29 = vld [vmem:[%s3337_s10 + $0x70] sm:$0xff]  ;;  %v347_v30 = vld [vmem:[%s3337_s10 + $0x38] sm:$0xff] }
  0x1b   : > { %626 = vrot.lane.b32.xlu0 %v325_v3, %s3263_s11  ;;  %512 = vmatpush.msra.mxu1 %v328_v8  ;;  %v351_v31 = vld [vmem:[%s3337_s10 + $0x58] sm:$0xff]  ;;  %v424_v1 = vld [vmem:[%s4993_s4 + $0xd0] sm:$0xff]  ;;  %v421_v7 = vld [vmem:[%s4993_s4 + $0xa0] sm:$0xff] }
  0x1c   : > { %551 = vmatpush.msrb.mxu2 %v334_v11  ;;  %2997 = vmatmul.msk.f32.vlgmr.msra.gmra.mxu1 %vm5012_vm0, %v344_v13  ;;  %v355_v32 = vld [vmem:[%s3337_s10 + $0x78] sm:$0xff]  ;;  %v420_v8 = vld [vmem:[%s4993_s4 + $0x90] sm:$0xff] }
  0x1d   : > { %630 = vrot.lane.b32.xlu1 %v327_v0, %s3263_s11  ;;  %592 = vmatpush.msra.mxu3 %v338_v15 }
  0x1e   : > { %552 = vmatpush.msrb.mxu2 %v333_v14  ;;  %755 = vmatpush.msrb.mxu0 %v362_v16  ;;  %v416_v16 = vld [vmem:[%s4993_s4 + $0x50] sm:$0xff] }
  0x1f   : > { %634 = vrot.lane.b32.xlu2 %v329_v9, %s3263_s11  ;;  %593 = vmatpush.msra.mxu3 %v337_v18 }
  0x20   : > { %553 = vmatpush.msrb.mxu2 %v332_v17  ;;  %756 = vmatpush.msrb.mxu0 %v361_v33 }
  0x21   : > { %2994 = vmatmul.msk.f32.gmra.mxu0 %vm5012_vm0, %v341_v19  ;;  %3001 = vmatmul.msk.f32.vlgmr.msrb.gmra.mxu2 %vm5012_vm0, %v348_v20  ;;  %v414_v19 = vld [vmem:[%s4993_s4 + $0x30] sm:$0xff] }
  0x22   : > { %594 = vmatpush.msra.mxu3 %v336_v21  ;;  %825 = vmatpush.msrb.mxu1 %v426_v62 }
  0x23   : > { %636 = vrot.lane.b32.xlu0 %v330_v5, %s3263_s11  ;;  %3005 = vmatmul.msk.f32.vlgmr.msra.gmra.mxu3 %vm5012_vm0, %v352_v22  ;;  %v422_v5 = vld [vmem:[%s4993_s4 + $0xb0] sm:$0xff] }
  0x24   : > { %2998 = vmatmul.msk.f32.gmra.mxu1 %vm5012_vm0, %v345_v23  ;;  %3059 = vmatpush.msrb.mxu3 %v426_v62 }
  0x25   : > { %638 = vrot.lane.b32.xlu1 %v331_v4, %s3263_s11  ;;  %826 = vmatpush.msrb.mxu1 %v425_v63  ;;  %v423_v4 = vld [vmem:[%s4993_s4 + $0xc0] sm:$0xff] }
  0x26   : > { %3060 = vmatpush.msrb.mxu3 %v425_v63 }
  0x27   : > { %640 = vrot.lane.b32.xlu2 %v332_v17, %s3263_s11  ;;  %827 = vmatpush.msrb.mxu1 %v424_v1 }
  0x28   : > { %3061 = vmatpush.msrb.mxu3 %v424_v1 }
  0x29   : > { %2995 = vmatmul.msk.f32.gmra.mxu0 %vm5012_vm0, %v342_v24  ;;  %3002 = vmatmul.msk.f32.gmra.mxu2 %vm5012_vm0, %v349_v25  ;;  %v412_v24 = vld [vmem:[%s4993_s4 + $0x10] sm:$0xff]  ;;  %v411_v25 = vld [vmem:[%s4993_s4] sm:$0xff] }
  0x2a   : > { %828 = vmatpush.msrb.mxu1 %v423_v4  ;;  %3062 = vmatpush.msrb.mxu3 %v423_v4 }
  0x2b   : > { %642 = vrot.lane.b32.xlu0 %v333_v14, %s3263_s11  ;;  %3006 = vmatmul.msk.f32.gmra.mxu3 %vm5012_vm0, %v353_v26  ;;  %v417_v14 = vld [vmem:[%s4993_s4 + $0x60] sm:$0xff] }
  0x2c   : > { %2999 = vmatmul.msk.f32.gmra.mxu1 %vm5012_vm0, %v346_v27  ;;  %3063 = vmatpush.msrb.mxu3 %v422_v5 }
  0x2d   : > { %644 = vrot.lane.b32.xlu1 %v334_v11, %s3263_s11  ;;  %829 = vmatpush.msrb.mxu1 %v422_v5  ;;  %v418_v11 = vld [vmem:[%s4993_s4 + $0x70] sm:$0xff] }
  0x2e   : > { %3064 = vmatpush.msrb.mxu3 %v421_v7 }
  0x2f   : > { %646 = vrot.lane.b32.xlu2 %v335_v10, %s3263_s11  ;;  %830 = vmatpush.msrb.mxu1 %v421_v7  ;;  %v419_v10 = vld [vmem:[%s4993_s4 + $0x80] sm:$0xff] }
  0x30   : > { %3065 = vmatpush.msrb.mxu3 %v420_v8 }
  0x31   : > { %3003 = vmatmul.msk.f32.gmra.mxu2 %vm5012_vm0, %v350_v28  ;;  %831 = vmatpush.msrb.mxu1 %v420_v8 }
  0x32   : > { %3066 = vmatpush.msrb.mxu3 %v419_v10 }
  0x33   : > { %3007 = vmatmul.msk.f32.gmra.mxu3 %vm5012_vm0, %v354_v29  ;;  %648 = vrot.lane.b32.xlu0 %v336_v21, %s3263_s11  ;;  %v413_v21 = vld [vmem:[%s4993_s4 + $0x20] sm:$0xff] }
  0x34   : > { %3000 = vmatmul.msk.f32.gmra.mxu1 %vm5012_vm0, %v347_v30  ;;  %3067 = vmatpush.msrb.mxu3 %v418_v11 }
  0x35   : > { %650 = vrot.lane.b32.xlu1 %v337_v18, %s3263_s11  ;;  %832 = vmatpush.msrb.mxu1 %v419_v10  ;;  %v415_v18 = vld [vmem:[%s4993_s4 + $0x40] sm:$0xff] }
  0x36   : > { %3068 = vmatpush.msrb.mxu3 %v417_v14 }
  0x37   : > { %652 = vrot.lane.b32.xlu2 %v338_v15, %s3263_s11  ;;  %833 = vmatpush.msrb.mxu1 %v418_v11 }
  0x38   : > { %3069 = vmatpush.msrb.mxu3 %v416_v16 }
  0x39   : > { %3004 = vmatmul.msk.f32.gmra.mxu2 %vm5012_vm0, %v351_v31  ;;  %834 = vmatpush.msrb.mxu1 %v417_v14 }
  0x3a   : > { %3070 = vmatpush.msrb.mxu3 %v415_v18 }
  0x3b   : > { %3008 = vmatmul.msk.f32.gmra.mxu3 %vm5012_vm0, %v355_v32  ;;  %654 = vrot.lane.b32.xlu0 %v339_v12, %s3263_s11  ;;  %s3269_s11 = smov 4  }
  0x3c   : > { %835 = vmatpush.msrb.mxu1 %v416_v16  ;;  %3071 = vmatpush.msrb.mxu3 %v414_v19 }
  0x3e   : > { %836 = vmatpush.msrb.mxu1 %v415_v18  ;;  %3072 = vmatpush.msrb.mxu3 %v413_v21 }
  0x40   : > { %837 = vmatpush.msrb.mxu1 %v414_v19  ;;  %3073 = vmatpush.msrb.mxu3 %v412_v24  ;;  %v3539_v19 = vld [vmem:[%s4994_s5 + $0x1] ss:$0 sm:$0xff] }
  0x42   : > { %838 = vmatpush.msrb.mxu1 %v413_v21  ;;  %3074 = vmatpush.msrb.mxu3 %v411_v25 }
  0x44   : > { %839 = vmatpush.msrb.mxu1 %v412_v24 }
  0x46   : > { %840 = vmatpush.msrb.mxu1 %v411_v25 }
  0x71   : > { %v633_v47 = vpop.permute.xlu2 %632 }
  0x79   : > { %v635_v50 = vpop.permute.xlu2 %634 }
  0x81   : > { %v641_v59 = vpop.permute.xlu2 %640 }
  0x85   : > { %v625_v34 = vpop.permute.xlu0 %624 }
  0x87   : > { %v629_v40 = vpop.permute.xlu1 %628 }
  0x89   : > { %v647_v12 = vpop.permute.xlu2 %646 }
  0x8d   : > { %v627_v37 = vpop.permute.xlu0 %626 }
  0x8f   : > { %v631_v43 = vpop.permute.xlu1 %630 }
  0x91   : > { %v653_v29 = vpop.permute.xlu2 %652 }
  0x95   : > { %v637_v53 = vpop.permute.xlu0 %636 }
  0x96   : > { %v473_v35 = vpop.f32.mrf.mxu0 }
  0x97   : > { %v673_v36 = vsel %vm5009_vm1, %v473_v35, %v625_v34  ;;  %v639_v56 = vpop.permute.xlu1 %638  ;;  %v3110_v34 = vld [vmem:[%s4994_s5] ss:$0 sm:$0xff] }
  0x98   : > { %3009 = vmatmul.msk.f32.vlgmr.msrb.gmra.mxu0 %vm692_vm2, %v673_v36 }
  0x99   : > { %v514_v45 = vpop.f32.mrf.mxu1 }
  0x9a   : > { %v677_v48 = vsel %vm5009_vm1, %v514_v45, %v633_v47 }
  0x9c   : > { %v482_v44 = vpop.f32.mrf.mxu2 }
  0x9d   : > { %v676_v46 = vsel %vm5009_vm1, %v482_v44, %v631_v43  ;;  %v643_v0 = vpop.permute.xlu0 %642 }
  0x9e   : > { %v476_v38 = vpop.f32.mrf.mxu0 }
  0x9f   : > { %v674_v39 = vsel %vm5009_vm1, %v476_v38, %v627_v37  ;;  %v645_v6 = vpop.permute.xlu1 %644 }
  0xa0   : > { %3010 = vmatmul.msk.f32.gmra.mxu0 %vm692_vm2, %v674_v39 }
  0xa1   : > { %v517_v49 = vpop.f32.mrf.mxu1 }
  0xa2   : > { %v678_v51 = vsel %vm5009_vm1, %v517_v49, %v635_v50 }
  0xa4   : > { %v555_v57 = vpop.f32.mrf.mxu2 }
  0xa5   : > { %v681_v60 = vsel %vm5009_vm1, %v555_v57, %v641_v59  ;;  %v649_v20 = vpop.permute.xlu0 %648 }
  0xa6   : > { %v479_v41 = vpop.f32.mrf.mxu0  ;;  %v596_v15 = vpop.f32.mrf.mxu3 }
  0xa7   : > { %v675_v42 = vsel %vm5009_vm1, %v479_v41, %v629_v40  ;;  %v685_v22 = vsel %vm5009_vm1, %v596_v15, %v649_v20  ;;  %v651_v26 = vpop.permute.xlu1 %650 }
  0xa8   : > { %3011 = vmatmul.msk.f32.gmra.mxu0 %vm692_vm2, %v675_v42 }
  0xa9   : > { %v520_v52 = vpop.f32.mrf.mxu1 }
  0xaa   : > { %v679_v54 = vsel %vm5009_vm1, %v520_v52, %v637_v53 }
  0xac   : > { %v558_v61 = vpop.f32.mrf.mxu2 }
  0xad   : > { %v682_v2 = vsel %vm5009_vm1, %v558_v61, %v643_v0  ;;  %v655_v32 = vpop.permute.xlu0 %654 }
  0xae   : > { %v599_v23 = vpop.f32.mrf.mxu3 }
  0xaf   : > { %v686_v27 = vsel %vm5009_vm1, %v599_v23, %v651_v26 }
  0xb0   : > { %3012 = vmatmul.msk.f32.gmra.mxu0 %vm692_vm2, %v676_v46 }
  0xb1   : > { %v523_v55 = vpop.f32.mrf.mxu1 }
  0xb2   : > { %v680_v58 = vsel %vm5009_vm1, %v523_v55, %v639_v56 }
  0xb4   : > { %v561_v3 = vpop.f32.mrf.mxu2 }
  0xb5   : > { %v683_v9 = vsel %vm5009_vm1, %v561_v3, %v645_v6 }
  0xb6   : > { %v602_v28 = vpop.f32.mrf.mxu3 }
  0xb7   : > { %v687_v30 = vsel %vm5009_vm1, %v602_v28, %v653_v29 }
  0xb8   : > { %3013 = vmatmul.msk.f32.gmra.mxu0 %vm692_vm2, %v677_v48 }
  0xbc   : > { %v564_v13 = vpop.f32.mrf.mxu2 }
  0xbd   : > { %v684_v17 = vsel %vm5009_vm1, %v564_v13, %v647_v12 }
  0xbe   : > { %v605_v31 = vpop.f32.mrf.mxu3 }
  0xbf   : > { %v688_v33 = vsel %vm5009_vm1, %v605_v31, %v655_v32 }
  0xc0   : > { %3014 = vmatmul.msk.f32.gmra.mxu0 %vm692_vm2, %v678_v51 }
  0xc8   : > { %3015 = vmatmul.msk.f32.gmra.mxu0 %vm692_vm2, %v679_v54 }
  0xd0   : > { %3016 = vmatmul.msk.f32.gmra.mxu0 %vm692_vm2, %v680_v58 }
  0xd8   : > { %3017 = vmatmul.msk.f32.gmra.mxu0 %vm692_vm2, %v681_v60 }
  0xe0   : > { %3018 = vmatmul.msk.f32.gmra.mxu0 %vm692_vm2, %v682_v2 }
  0xe8   : > { %3019 = vmatmul.msk.f32.gmra.mxu0 %vm692_vm2, %v683_v9 }
  0xf0   : > { %3020 = vmatmul.msk.f32.gmra.mxu0 %vm692_vm2, %v684_v17 }
  0xf8   : > { %3021 = vmatmul.msk.f32.gmra.mxu0 %vm692_vm2, %v685_v22 }
 0x100   : > { %3022 = vmatmul.msk.f32.gmra.mxu0 %vm692_vm2, %v686_v27 }
 0x108   : > { %3023 = vmatmul.msk.f32.gmra.mxu0 %vm692_vm2, %v687_v30 }
 0x110   : > { %3024 = vmatmul.msk.f32.gmra.mxu0 %vm692_vm2, %v688_v33 }
 0x115   : > { %v758_v35 = vpop.f32.mrf.mxu0 }
 0x116   : > { %v759_v36 = vadd.f32 %v3110_v34, %v758_v35 }
 0x118   : > { %v3488_v37 = vmax.f32 %v759_v36, 0.0 }
 0x11a   : > { %841 = vmatmul.f32.vlgmr.msrb.gmra.mxu1 %v3488_v37 }
 0x11d   : > { %v761_v38 = vpop.f32.mrf.mxu0 }
 0x11e   : > { %v762_v39 = vadd.f32 %v3110_v34, %v761_v38 }
 0x120   : > { %v3491_v40 = vmax.f32 %v762_v39, 0.0 }
 0x122   : > { %844 = vmatmul.f32.gmra.mxu1 %v3491_v40 }
 0x125   : > { %v764_v41 = vpop.f32.mrf.mxu0 }
 0x126   : > { %v765_v42 = vadd.f32 %v3110_v34, %v764_v41 }
 0x128   : > { %v3494_v43 = vmax.f32 %v765_v42, 0.0 }
 0x12a   : > { %847 = vmatmul.f32.gmra.mxu1 %v3494_v43 }
 0x12d   : > { %v767_v44 = vpop.f32.mrf.mxu0 }
 0x12e   : > { %v768_v45 = vadd.f32 %v3110_v34, %v767_v44 }
 0x130   : > { %v3497_v46 = vmax.f32 %v768_v45, 0.0 }
 0x132   : > { %850 = vmatmul.f32.gmra.mxu1 %v3497_v46 }
 0x135   : > { %v770_v47 = vpop.f32.mrf.mxu0 }
 0x136   : > { %v771_v48 = vadd.f32 %v3110_v34, %v770_v47 }
 0x138   : > { %v3500_v49 = vmax.f32 %v771_v48, 0.0 }
 0x13a   : > { %853 = vmatmul.f32.gmra.mxu1 %v3500_v49 }
 0x13d   : > { %v773_v50 = vpop.f32.mrf.mxu0 }
 0x13e   : > { %v774_v51 = vadd.f32 %v3110_v34, %v773_v50 }
 0x140   : > { %v3503_v52 = vmax.f32 %v774_v51, 0.0 }
 0x142   : > { %856 = vmatmul.f32.gmra.mxu1 %v3503_v52 }
 0x145   : > { %v776_v53 = vpop.f32.mrf.mxu0 }
 0x146   : > { %v777_v54 = vadd.f32 %v3110_v34, %v776_v53 }
 0x148   : > { %v3506_v55 = vmax.f32 %v777_v54, 0.0 }
 0x14a   : > { %859 = vmatmul.f32.gmra.mxu1 %v3506_v55 }
 0x14d   : > { %v779_v56 = vpop.f32.mrf.mxu0 }
 0x14e   : > { %v780_v57 = vadd.f32 %v3110_v34, %v779_v56 }
 0x150   : > { %v3509_v58 = vmax.f32 %v780_v57, 0.0 }
 0x152   : > { %862 = vmatmul.f32.gmra.mxu1 %v3509_v58 }
 0x155   : > { %v782_v59 = vpop.f32.mrf.mxu0 }
 0x156   : > { %v783_v60 = vadd.f32 %v3110_v34, %v782_v59 }
 0x158   : > { %v3512_v61 = vmax.f32 %v783_v60, 0.0 }
 0x15a   : > { %865 = vmatmul.f32.gmra.mxu1 %v3512_v61 }
 0x15d   : > { %v785_v62 = vpop.f32.mrf.mxu0 }
 0x15e   : > { %v786_v63 = vadd.f32 %v3110_v34, %v785_v62 }
 0x160   : > { %v3515_v0 = vmax.f32 %v786_v63, 0.0 }
 0x162   : > { %868 = vmatmul.f32.gmra.mxu1 %v3515_v0 }
 0x165   : > { %v788_v1 = vpop.f32.mrf.mxu0 }
 0x166   : > { %v789_v2 = vadd.f32 %v3110_v34, %v788_v1 }
 0x168   : > { %v3518_v3 = vmax.f32 %v789_v2, 0.0 }
 0x16a   : > { %871 = vmatmul.f32.gmra.mxu1 %v3518_v3 }
 0x16d   : > { %v791_v4 = vpop.f32.mrf.mxu0 }
 0x16e   : > { %v792_v5 = vadd.f32 %v3110_v34, %v791_v4 }
 0x170   : > { %v3521_v6 = vmax.f32 %v792_v5, 0.0 }
 0x172   : > { %874 = vmatmul.f32.gmra.mxu1 %v3521_v6 }
 0x175   : > { %v794_v7 = vpop.f32.mrf.mxu0 }
 0x176   : > { %v795_v8 = vadd.f32 %v3110_v34, %v794_v7 }
 0x178   : > { %v3524_v9 = vmax.f32 %v795_v8, 0.0 }
 0x17a   : > { %877 = vmatmul.f32.gmra.mxu1 %v3524_v9 }
 0x17d   : > { %v797_v10 = vpop.f32.mrf.mxu0 }
 0x17e   : > { %v798_v11 = vadd.f32 %v3110_v34, %v797_v10 }
 0x180   : > { %v3527_v12 = vmax.f32 %v798_v11, 0.0 }
 0x182   : > { %880 = vmatmul.f32.gmra.mxu1 %v3527_v12 }
 0x185   : > { %v800_v13 = vpop.f32.mrf.mxu0 }
 0x186   : > { %v801_v14 = vadd.f32 %v3110_v34, %v800_v13 }
 0x188   : > { %v3530_v15 = vmax.f32 %v801_v14, 0.0 }
 0x18a   : > { %883 = vmatmul.f32.gmra.mxu1 %v3530_v15 }
 0x18d   : > { %v803_v16 = vpop.f32.mrf.mxu0 }
 0x18e   : > { %v804_v17 = vadd.f32 %v3110_v34, %v803_v16 }
 0x190   : > { %v3533_v18 = vmax.f32 %v804_v17, 0.0 }
 0x192   : > { %886 = vmatmul.f32.vlgmr.msrb.gmra.mxu3 %v3533_v18 }
 0x197   : > { %v842_v20 = vpop.f32.mrf.mxu1 }
 0x198   : > { %v3548_v21 = vadd.f32 %v3539_v19, %v842_v20 }
 0x19a   : > { %891 = vst.msk [vmem:[%s3545_s16] sm:$0xff] %vm890_vm3, %v3548_v21  ;;  %v907_v31 = vsel %vm890_vm3, %v3548_v21, -inf }
 0x19f   : > { %v845_v22 = vpop.f32.mrf.mxu1 }
 0x1a0   : > { %v3554_v23 = vadd.f32 %v3539_v19, %v845_v22 }
 0x1a2   : > { %892 = vst.msk [vmem:[%s3545_s16 + $0x8] sm:$0xff] %vm890_vm3, %v3554_v23  ;;  %v910_v24 = vsel %vm890_vm3, %v3554_v23, -inf }
 0x1a3   : > { %911 = vmax.xlane.f32.xlu1 %v910_v24 }
 0x1a7   : > { %v848_v25 = vpop.f32.mrf.mxu1 }
 0x1a8   : > { %v3562_v26 = vadd.f32 %v3539_v19, %v848_v25 }
 0x1aa   : > { %893 = vst.msk [vmem:[%s3545_s16 + $0x10] sm:$0xff] %vm890_vm3, %v3562_v26  ;;  %v913_v27 = vsel %vm890_vm3, %v3562_v26, -inf }
 0x1ab   : > { %914 = vmax.xlane.f32.xlu0 %v913_v27 }
 0x1af   : > { %v851_v28 = vpop.f32.mrf.mxu1 }
 0x1b0   : > { %v3570_v29 = vadd.f32 %v3539_v19, %v851_v28 }
 0x1b2   : > { %894 = vst.msk [vmem:[%s3545_s16 + $0x18] sm:$0xff] %vm890_vm3, %v3570_v29  ;;  %v916_v30 = vsel %vm890_vm3, %v3570_v29, -inf }
 0x1b3   : > { %917 = vmax.xlane.f32.xlu1 %v916_v30  ;;  %908 = vmax.xlane.f32.xlu0 %v907_v31 }
 0x1b7   : > { %v854_v32 = vpop.f32.mrf.mxu1 }
 0x1b8   : > { %v3580_v33 = vadd.f32 %v3539_v19, %v854_v32 }
 0x1ba   : > { %895 = vst.msk [vmem:[%s3545_s16 + $0x20] sm:$0xff] %vm890_vm3, %v3580_v33  ;;  %v919_v34 = vsel %vm890_vm3, %v3580_v33, -inf }
 0x1bb   : > { %920 = vmax.xlane.f32.xlu1 %v919_v34 }
 0x1bf   : > { %v857_v35 = vpop.f32.mrf.mxu1 }
 0x1c0   : > { %v3588_v36 = vadd.f32 %v3539_v19, %v857_v35 }
 0x1c2   : > { %896 = vst.msk [vmem:[%s3545_s16 + $0x28] sm:$0xff] %vm890_vm3, %v3588_v36  ;;  %v922_v50 = vsel %vm890_vm3, %v3588_v36, -inf }
 0x1c7   : > { %v860_v38 = vpop.f32.mrf.mxu1 }
 0x1c8   : > { %v3594_v39 = vadd.f32 %v3539_v19, %v860_v38 }
 0x1ca   : > { %897 = vst.msk [vmem:[%s3545_s16 + $0x30] sm:$0xff] %vm890_vm3, %v3594_v39  ;;  %v925_v41 = vsel %vm890_vm3, %v3594_v39, -inf }
 0x1cb   : > { %926 = vmax.xlane.f32.xlu2 %v925_v41 }
 0x1cf   : > { %v863_v42 = vpop.f32.mrf.mxu1 }
 0x1d0   : > { %v3602_v44 = vadd.f32 %v3539_v19, %v863_v42 }
 0x1d2   : > { %898 = vst.msk [vmem:[%s3545_s16 + $0x38] sm:$0xff] %vm890_vm3, %v3602_v44  ;;  %v928_v45 = vsel %vm890_vm3, %v3602_v44, -inf }
 0x1d3   : > { %929 = vmax.xlane.f32.xlu2 %v928_v45 }
 0x1d7   : > { %v866_v47 = vpop.f32.mrf.mxu1 }
 0x1d8   : > { %v3610_v48 = vadd.f32 %v3539_v19, %v866_v47 }
 0x1da   : > { %899 = vst.msk [vmem:[%s3545_s16 + $0x40] sm:$0xff] %vm890_vm3, %v3610_v48  ;;  %v931_v54 = vsel %vm890_vm3, %v3610_v48, -inf }
 0x1db   : > { %923 = vmax.xlane.f32.xlu2 %v922_v50 }
 0x1df   : > { %v869_v51 = vpop.f32.mrf.mxu1 }
 0x1e0   : > { %v3618_v53 = vadd.f32 %v3539_v19, %v869_v51 }
 0x1e2   : > { %900 = vst.msk [vmem:[%s3545_s16 + $0x48] sm:$0xff] %vm890_vm3, %v3618_v53  ;;  %v934_v56 = vsel %vm890_vm3, %v3618_v53, -inf }
 0x1e3   : > { %932 = vmax.xlane.f32.xlu2 %v931_v54  ;;  %935 = vmax.xlane.f32.xlu0 %v934_v56 }
 0x1e7   : > { %v872_v57 = vpop.f32.mrf.mxu1 }
 0x1e8   : > { %v3628_v59 = vadd.f32 %v3539_v19, %v872_v57 }
 0x1ea   : > { %901 = vst.msk [vmem:[%s3545_s16 + $0x50] sm:$0xff] %vm890_vm3, %v3628_v59  ;;  %v937_v60 = vsel %vm890_vm3, %v3628_v59, -inf }
 0x1eb   : > { %938 = vmax.xlane.f32.xlu1 %v937_v60 }
 0x1ef   : > { %v875_v62 = vpop.f32.mrf.mxu1 }
 0x1f0   : > { %v3636_v63 = vadd.f32 %v3539_v19, %v875_v62 }
 0x1f2   : > { %902 = vst.msk [vmem:[%s3545_s16 + $0x58] sm:$0xff] %vm890_vm3, %v3636_v63  ;;  %v940_v1 = vsel %vm890_vm3, %v3636_v63, -inf }
 0x1f3   : > { %941 = vmax.xlane.f32.xlu2 %v940_v1 }
 0x1f7   : > { %v878_v2 = vpop.f32.mrf.mxu1 }
 0x1f8   : > { %v3644_v4 = vadd.f32 %v3539_v19, %v878_v2 }
 0x1fa   : > { %903 = vst.msk [vmem:[%s3545_s16 + $0x60] sm:$0xff] %vm890_vm3, %v3644_v4  ;;  %v943_v28 = vsel %vm890_vm3, %v3644_v4, -inf }
 0x1ff   : > { %v881_v5 = vpop.f32.mrf.mxu1 }
 0x200   : > { %v3650_v7 = vadd.f32 %v3539_v19, %v881_v5 }
 0x202   : > { %904 = vst.msk [vmem:[%s3545_s16 + $0x68] sm:$0xff] %vm890_vm3, %v3650_v7  ;;  %v946_v8 = vsel %vm890_vm3, %v3650_v7, -inf }
 0x203   : > { %947 = vmax.xlane.f32.xlu1 %v946_v8 }
 0x207   : > { %v884_v10 = vpop.f32.mrf.mxu1 }
 0x208   : > { %v3658_v11 = vadd.f32 %v3539_v19, %v884_v10 }
 0x20a   : > { %905 = vst.msk [vmem:[%s3545_s16 + $0x70] sm:$0xff] %vm890_vm3, %v3658_v11  ;;  %v949_v13 = vsel %vm890_vm3, %v3658_v11, -inf }
 0x20b   : > { %950 = vmax.xlane.f32.xlu2 %v949_v13 }
 0x215   : > { %v887_v14 = vpop.f32.mrf.mxu3 }
 0x216   : > { %v3666_v16 = vadd.f32 %v3539_v19, %v887_v14  ;;  %v912_v17 = vpop.xlane.xlu1 %911 }
 0x217   : > { %v956_v20 = vsub.f32 %v3554_v23, %v912_v17 }
 0x218   : > { %906 = vst.msk [vmem:[%s3545_s16 + $0x78] sm:$0xff] %vm890_vm3, %v3666_v16  ;;  %v952_v22 = vsel %vm890_vm3, %v3666_v16, -inf }
 0x219   : > { %v973_v24 = vmul.f32 1.442695, %v956_v20  ;;  %953 = vmax.xlane.f32.xlu0 %v952_v22 }
 0x21b   : > { %3115 = vpow2.f32 %v973_v24 }
 0x21e   : > { %v915_v25 = vpop.xlane.xlu0 %914 }
 0x21f   : > { %v957_v27 = vsub.f32 %v3562_v26, %v915_v25 }
 0x221   : > { %v3677_v19 = vpop.eup %3115  ;;  %v975_v30 = vmul.f32 1.442695, %v957_v27  ;;  %944 = vmax.xlane.f32.xlu0 %v943_v28 }
 0x222   : > { %v1006_v23 = vsel %vm890_vm3, %v3677_v19, 0.0 }
 0x223   : > { %3117 = vpow2.f32 %v975_v30  ;;  %1007 = vadd.xlane.f32.xlu2 %v1006_v23 }
 0x226   : > { %v918_v31 = vpop.xlane.xlu1 %917  ;;  %v909_v42 = vpop.xlane.xlu0 %908 }
 0x227   : > { %v958_v32 = vsub.f32 %v3570_v29, %v918_v31  ;;  %v955_v29 = vsub.f32 %v3548_v21, %v909_v42 }
 0x229   : > { %v3682_v34 = vpop.eup %3117  ;;  %v977_v35 = vmul.f32 1.442695, %v958_v32  ;;  %v971_v51 = vmul.f32 1.442695, %v955_v29 }
 0x22a   : > { %v1009_v26 = vsel %vm890_vm3, %v3682_v34, 0.0 }
 0x22b   : > { %3119 = vpow2.f32 %v977_v35  ;;  %1010 = vadd.xlane.f32.xlu0 %v1009_v26 }
 0x22e   : > { %v921_v54 = vpop.xlane.xlu1 %920 }
 0x22f   : > { %v959_v62 = vsub.f32 %v3580_v33, %v921_v54 }
 0x231   : > { %v3686_v38 = vpop.eup %3119 }
 0x232   : > { %v1012_v41 = vsel %vm890_vm3, %v3686_v38, 0.0 }
 0x233   : > { %1013 = vadd.xlane.f32.xlu1 %v1012_v41 }
 0x23e   : > { %v927_v45 = vpop.xlane.xlu2 %926 }
 0x23f   : > { %v961_v47 = vsub.f32 %v3594_v39, %v927_v45  ;;  %v979_v39 = vmul.f32 1.442695, %v959_v62 }
 0x241   : > { %v983_v50 = vmul.f32 1.442695, %v961_v47 }
 0x243   : > { %3121 = vpow2.f32 %v983_v50 }
 0x244   : > { %3123 = vpow2.f32 %v971_v51 }
 0x246   : > { %v930_v56 = vpop.xlane.xlu2 %929 }
 0x247   : > { %v962_v57 = vsub.f32 %v3602_v44, %v930_v56 }
 0x249   : > { %v3693_v60 = vpop.eup %3121  ;;  %v985_v1 = vmul.f32 1.442695, %v962_v57 }
 0x24a   : > { %v1021_v2 = vsel %vm890_vm3, %v3693_v60, 0.0  ;;  %v3698_v5 = vpop.eup %3123 }
 0x24b   : > { %3125 = vpow2.f32 %v985_v1  ;;  %1022 = vadd.xlane.f32.xlu1 %v1021_v2  ;;  %v1003_v33 = vsel %vm890_vm3, %v3698_v5, 0.0 }
 0x24c   : > { %3127 = vpow2.f32 %v979_v39  ;;  %v3264_v39 = vmov 0  }
 0x24d   : > { %3092 = vset.pattern.permute.xlu0 %v3264_v39  ;;  %3090 = vset.pattern.permute.xlu2 %v3264_v39 }
 0x24e   : > { %v924_v21 = vpop.xlane.xlu2 %923 }
 0x24f   : > { %v960_v8 = vsub.f32 %v3588_v36, %v924_v21 }
 0x251   : > { %v3701_v10 = vpop.eup %3125  ;;  %v981_v44 = vmul.f32 1.442695, %v960_v8 }
 0x252   : > { %v1024_v13 = vsel %vm890_vm3, %v3701_v10, 0.0  ;;  %v3707_v17 = vpop.eup %3127 }
 0x253   : > { %3129 = vpow2.f32 %v981_v44  ;;  %1025 = vadd.xlane.f32.xlu2 %v1024_v13  ;;  %1004 = vadd.xlane.f32.xlu1 %v1003_v33  ;;  %v1015_v24 = vsel %vm890_vm3, %v3707_v17, 0.0 }
 0x256   : > { %v936_v14 = vpop.xlane.xlu0 %935  ;;  %v933_v27 = vpop.xlane.xlu2 %932 }
 0x257   : > { %v964_v20 = vsub.f32 %v3618_v53, %v936_v14  ;;  %v963_v56 = vsub.f32 %v3610_v48, %v933_v27 }
 0x259   : > { %v3710_v22 = vpop.eup %3129  ;;  %v989_v36 = vmul.f32 1.442695, %v964_v20  ;;  %v987_v1 = vmul.f32 1.442695, %v963_v56 }
 0x25a   : > { %v1018_v25 = vsel %vm890_vm3, %v3710_v22, 0.0 }
 0x25b   : > { %1016 = vadd.xlane.f32.xlu2 %v1015_v24  ;;  %1019 = vadd.xlane.f32.xlu0 %v1018_v25  ;;  %3131 = vpow2.f32 %v989_v36 }
 0x25e   : > { %v939_v28 = vpop.xlane.xlu1 %938 }
 0x25f   : > { %v965_v30 = vsub.f32 %v3628_v59, %v939_v28 }
 0x261   : > { %v991_v23 = vmul.f32 1.442695, %v965_v30  ;;  %v3717_v31 = vpop.eup %3131 }
 0x262   : > { %v1030_v53 = vsel %vm890_vm3, %v3717_v31, 0.0 }
 0x263   : > { %3133 = vpow2.f32 %v991_v23  ;;  %1031 = vadd.xlane.f32.xlu1 %v1030_v53 }
 0x266   : > { %v942_v32 = vpop.xlane.xlu2 %941 }
 0x267   : > { %v966_v35 = vsub.f32 %v3636_v63, %v942_v32 }
 0x269   : > { %v3722_v26 = vpop.eup %3133  ;;  %v993_v41 = vmul.f32 1.442695, %v966_v35 }
 0x26a   : > { %v1033_v42 = vsel %vm890_vm3, %v3722_v26, 0.0 }
 0x26b   : > { %3135 = vpow2.f32 %v993_v41  ;;  %1034 = vadd.xlane.f32.xlu2 %v1033_v42 }
 0x271   : > { %v3726_v59 = vpop.eup %3135 }
 0x272   : > { %v1036_v45 = vsel %vm890_vm3, %v3726_v59, 0.0 }
 0x273   : > { %1037 = vadd.xlane.f32.xlu0 %v1036_v45 }
 0x276   : > { %v948_v47 = vpop.xlane.xlu1 %947 }
 0x277   : > { %v968_v29 = vsub.f32 %v3650_v7, %v948_v47 }
 0x279   : > { %v997_v50 = vmul.f32 1.442695, %v968_v29 }
 0x27b   : > { %3137 = vpow2.f32 %v997_v50 }
 0x27e   : > { %v951_v63 = vpop.xlane.xlu2 %950 }
 0x27f   : > { %v969_v51 = vsub.f32 %v3658_v11, %v951_v63 }
 0x281   : > { %v3732_v54 = vpop.eup %3137  ;;  %v999_v57 = vmul.f32 1.442695, %v969_v51 }
 0x282   : > { %v1042_v62 = vsel %vm890_vm3, %v3732_v54, 0.0 }
 0x283   : > { %3139 = vpow2.f32 %v999_v57  ;;  %1043 = vadd.xlane.f32.xlu2 %v1042_v62 }
 0x284   : > { %3141 = vpow2.f32 %v987_v1 }
 0x289   : > { %v3737_v2 = vpop.eup %3139 }
 0x28a   : > { %v1045_v7 = vsel %vm890_vm3, %v3737_v2, 0.0  ;;  %v3744_v21 = vpop.eup %3141 }
 0x28b   : > { %1046 = vadd.xlane.f32.xlu0 %v1045_v7  ;;  %v1027_v44 = vsel %vm890_vm3, %v3744_v21, 0.0 }
 0x28c   : > { %v954_v48 = vpop.xlane.xlu0 %953 }
 0x28d   : > { %v970_v11 = vsub.f32 %v3666_v16, %v954_v48 }
 0x28f   : > { %v1001_v8 = vmul.f32 1.442695, %v970_v11 }
 0x291   : > { %3143 = vpow2.f32 %v1001_v8 }
 0x293   : > { %1028 = vadd.xlane.f32.xlu0 %v1027_v44 }
 0x294   : > { %v945_v13 = vpop.xlane.xlu0 %944 }
 0x295   : > { %v967_v33 = vsub.f32 %v3644_v4, %v945_v13 }
 0x296   : > { %v1008_v14 = vpop.xlane.xlu2 %1007 }
 0x297   : > { %v3749_v20 = vpop.eup %3143  ;;  %v995_v36 = vmul.f32 1.442695, %v967_v33  ;;  %3145 = vrcp.f32 %v1008_v14  ;;  %v1077_v23 = vand.u32 2147483648, %v1008_v14  ;;  %v1075_v32 = vand.u32 2147483647, %v1008_v14 }
 0x298   : > { %v1048_v24 = vsel %vm890_vm3, %v3749_v20, 0.0  ;;  %vm1071_vm5 = vweird.f32 %v1008_v14 }
 0x299   : > { %3147 = vpow2.f32 %v995_v36  ;;  %1049 = vadd.xlane.f32.xlu1 %v1048_v24  ;;  %v1078_v42 = vor.u32 1.1754944e-38, %v1077_v23  ;;  %vm1076_vm7 = vcmp.eq.f32.partialorder %v1075_v32, 8.507059e+37 }
 0x29d   : > { %v3146_v16 = vpop.eup %3145 }
 0x29e   : > { %v1067_v25 = vmul.f32 %v3146_v16, %v1008_v14  ;;  %v1011_v27 = vpop.xlane.xlu0 %1010  ;;  %vm1072_vm4 = vweird.f32 %v3146_v16 }
 0x29f   : > { %v3753_v28 = vpop.eup %3147  ;;  %3149 = vrcp.f32 %v1011_v27  ;;  %vm1073_vm6 = vmor %vm1071_vm5, %vm1072_vm4  ;;  %v1092_v56 = vand.u32 2147483648, %v1011_v27  ;;  %v1090_v62 = vand.u32 2147483647, %v1011_v27  ;;  %vm1086_vm9 = vweird.f32 %v1011_v27 }
 0x2a0   : > { %v1068_v30 = vsub.f32 1.0, %v1067_v25  ;;  %v1039_v4 = vsel %vm890_vm3, %v3753_v28, 0.0 }
 0x2a1   : > { %1040 = vadd.xlane.f32.xlu1 %v1039_v4  ;;  %v1093_v48 = vor.u32 1.1754944e-38, %v1092_v56  ;;  %vm1091_vm11 = vcmp.eq.f32.partialorder %v1090_v62, 8.507059e+37 }
 0x2a2   : > { %v1069_v53 = vmul.f32 %v3146_v16, %v1068_v30 }
 0x2a4   : > { %v1070_v35 = vadd.f32 %v3146_v16, %v1069_v53 }
 0x2a5   : > { %v3150_v41 = vpop.eup %3149 }
 0x2a6   : > { %v1074_v45 = vsel %vm1073_vm6, %v3146_v16, %v1070_v35  ;;  %v1082_v47 = vmul.f32 %v3150_v41, %v1011_v27  ;;  %v1014_v29 = vpop.xlane.xlu1 %1013  ;;  %vm1087_vm8 = vweird.f32 %v3150_v41  ;;  %v3265_v16 = vmov 1  }
 0x2a7   : > { %v1079_v50 = vsel %vm1076_vm7, %v1078_v42, %v1074_v45  ;;  %3151 = vrcp.f32 %v1014_v29  ;;  %vm1088_vm10 = vmor %vm1086_vm9, %vm1087_vm8  ;;  %v1107_v33 = vand.u32 2147483648, %v1014_v29  ;;  %v1105_v36 = vand.u32 2147483647, %v1014_v29  ;;  %3091 = vset.pattern.permute.xlu1 %v3265_v16 }
 0x2a8   : > { %v3758_v63 = vmul.f32 %v3677_v19, %v1079_v50  ;;  %v1083_v51 = vsub.f32 1.0, %v1082_v47  ;;  %vm1101_vm13 = vweird.f32 %v1014_v29 }
 0x2a9   : > { %v1108_v25 = vor.u32 1.1754944e-38, %v1107_v33  ;;  %vm1106_vm15 = vcmp.eq.f32.partialorder %v1105_v36, 8.507059e+37 }
 0x2aa   : > { %5013 = vst [vmem:[#allocation2_spill] sm:$0xff] %v3758_v63  ;;  %v1084_v57 = vmul.f32 %v3150_v41, %v1083_v51  ;;  %1414 = vperm.xlu0 %3092, %v3758_v63  }
 0x2ac   : > { %v1085_v1 = vadd.f32 %v3150_v41, %v1084_v57 }
 0x2ad   : > { %v3152_v7 = vpop.eup %3151 }
 0x2ae   : > { %v1089_v11 = vsel %vm1088_vm10, %v3150_v41, %v1085_v1  ;;  %v1097_v8 = vmul.f32 %v3152_v7, %v1014_v29  ;;  %vm1102_vm12 = vweird.f32 %v3152_v7 }
 0x2af   : > { %v1094_v44 = vsel %vm1091_vm11, %v1093_v48, %v1089_v11  ;;  %vm1103_vm14 = vmor %vm1101_vm13, %vm1102_vm12 }
 0x2b0   : > { %v3762_v13 = vmul.f32 %v3682_v34, %v1094_v44  ;;  %v1098_v19 = vsub.f32 1.0, %v1097_v8 }
 0x2b2   : > { %5014 = vst [vmem:[#allocation3_spill] sm:$0xff] %v3762_v13  ;;  %v1099_v14 = vmul.f32 %v3152_v7, %v1098_v19  ;;  %1419 = vperm.xlu0 %3092, %v3762_v13  }
 0x2b4   : > { %v1100_v24 = vadd.f32 %v3152_v7, %v1099_v14 }
 0x2b6   : > { %v1104_v27 = vsel %vm1103_vm14, %v3152_v7, %v1100_v24 }
 0x2b7   : > { %v1109_v30 = vsel %vm1106_vm15, %v1108_v25, %v1104_v27 }
 0x2b8   : > { %v3767_v34 = vmul.f32 %v3686_v38, %v1109_v30 }
 0x2ba   : > { %5015 = vst [vmem:[#allocation4_spill] sm:$0xff] %v3767_v34  ;;  %1303 = vmatpush.msra.mxu2 %v3767_v34  ;;  %3099 = vset.pattern.permute.xlu0 %v3265_v16 }
 0x2bc   : > { %1304 = vmatpush.msra.mxu2 %v3762_v13 }
 0x2be   : > { %v1023_v4 = vpop.xlane.xlu1 %1022  ;;  %1305 = vmatpush.msra.mxu2 %v3758_v63 }
 0x2bf   : > { %3153 = vrcp.f32 %v1023_v4  ;;  %v1152_v42 = vand.u32 2147483648, %v1023_v4  ;;  %v1150_v45 = vand.u32 2147483647, %v1023_v4  ;;  %vm1146_vm4 = vweird.f32 %v1023_v4 }
 0x2c1   : > { %v1153_v50 = vor.u32 1.1754944e-38, %v1152_v42  ;;  %vm1151_vm6 = vcmp.eq.f32.partialorder %v1150_v45, 8.507059e+37 }
 0x2c5   : > { %v3154_v23 = vpop.eup %3153 }
 0x2c6   : > { %v1142_v53 = vmul.f32 %v3154_v23, %v1023_v4  ;;  %v1026_v32 = vpop.xlane.xlu2 %1025  ;;  %v1005_v35 = vpop.xlane.xlu1 %1004  ;;  %vm1147_vm2 = vweird.f32 %v3154_v23 }
 0x2c7   : > { %3155 = vrcp.f32 %v1026_v32  ;;  %vm1148_vm5 = vmor %vm1146_vm4, %vm1147_vm2  ;;  %v1167_v44 = vand.u32 2147483648, %v1026_v32  ;;  %v1165_v14 = vand.u32 2147483647, %v1026_v32  ;;  %v1062_v36 = vand.u32 2147483648, %v1005_v35 }
 0x2c8   : > { %v1143_v41 = vsub.f32 1.0, %v1142_v53  ;;  %3157 = vrcp.f32 %v1005_v35  ;;  %v1060_v25 = vand.u32 2147483647, %v1005_v35  ;;  %vm1161_vm9 = vweird.f32 %v1026_v32 }
 0x2c9   : > { %vm1056_vm11 = vweird.f32 %v1005_v35  ;;  %vm1166_vm12 = vcmp.eq.f32.partialorder %v1165_v14, 8.507059e+37  ;;  %v1063_v53 = vor.u32 1.1754944e-38, %v1062_v36 }
 0x2ca   : > { %v1144_v38 = vmul.f32 %v3154_v23, %v1143_v41  ;;  %vm1061_vm14 = vcmp.eq.f32.partialorder %v1060_v25, 8.507059e+37 }
 0x2cc   : > { %v1145_v47 = vadd.f32 %v3154_v23, %v1144_v38 }
 0x2cd   : > { %v3156_v29 = vpop.eup %3155 }
 0x2ce   : > { %v3158_v51 = vpop.eup %3157  ;;  %v1149_v56 = vsel %vm1148_vm5, %v3154_v23, %v1145_v47  ;;  %v1157_v57 = vmul.f32 %v3156_v29, %v1026_v32  ;;  %v3773_v62 = vpop.xlane.xlu2 %1016  ;;  %vm1162_vm7 = vweird.f32 %v3156_v29 }
 0x2cf   : > { %v3775_v1 = vpop.xlane.xlu0 %1019  ;;  %v1154_v7 = vsel %vm1151_vm6, %v1153_v50, %v1149_v56  ;;  %v1052_v48 = vmul.f32 %v3158_v51, %v1005_v35  ;;  %3159 = vrcp.f32 %v3773_v62  ;;  %vm1057_vm8 = vweird.f32 %v3158_v51  ;;  %vm1163_vm10 = vmor %vm1161_vm9, %vm1162_vm7 }
 0x2d0   : > { %v3779_v11 = vmul.f32 %v3693_v60, %v1154_v7  ;;  %v1158_v8 = vsub.f32 1.0, %v1157_v57  ;;  %3161 = vrcp.f32 %v3775_v1  ;;  %v1168_v60 = vor.u32 1.1754944e-38, %v1167_v44  ;;  %vm1058_vm13 = vmor %vm1056_vm11, %vm1057_vm8 }
 0x2d1   : > { %v1053_v19 = vsub.f32 1.0, %v1052_v48  ;;  %vm1116_vm2 = vweird.f32 %v3773_v62  ;;  %v1137_v48 = vand.u32 2147483648, %v3775_v1  ;;  %v1135_v44 = vand.u32 2147483647, %v3775_v1 }
 0x2d2   : > { %5016 = vst [vmem:[#allocation5_spill] sm:$0xff] %v3779_v11  ;;  %v1159_v33 = vmul.f32 %v3156_v29, %v1158_v8  ;;  %1564 = vperm.xlu0 %3099, %v3779_v11   ;;  %vm1131_vm6 = vweird.f32 %v3775_v1 }
 0x2d3   : > { %v1054_v24 = vmul.f32 %v3158_v51, %v1053_v19  ;;  %v1138_v25 = vor.u32 1.1754944e-38, %v1137_v48  ;;  %vm1136_vm9 = vcmp.eq.f32.partialorder %v1135_v44, 8.507059e+37 }
 0x2d4   : > { %v1160_v27 = vadd.f32 %v3156_v29, %v1159_v33 }
 0x2d5   : > { %v3160_v30 = vpop.eup %3159  ;;  %v1055_v4 = vadd.f32 %v3158_v51, %v1054_v24 }
 0x2d6   : > { %v1164_v23 = vsel %vm1163_vm10, %v3156_v29, %v1160_v27  ;;  %v1112_v41 = vmul.f32 %v3160_v30, %v3773_v62  ;;  %v3162_v42 = vpop.eup %3161  ;;  %vm1117_vm15 = vweird.f32 %v3160_v30  ;;  %v3791_v7 = vpop.xlane.xlu1 %1031 }
 0x2d7   : > { %v1169_v38 = vsel %vm1166_vm12, %v1168_v60, %v1164_v23  ;;  %v1059_v45 = vsel %vm1058_vm13, %v3158_v51, %v1055_v4  ;;  %v1127_v56 = vmul.f32 %v3162_v42, %v3775_v1  ;;  %v1122_v51 = vand.u32 2147483648, %v3773_v62  ;;  %vm3805_vm5 = vmor %vm1116_vm2, %vm1117_vm15 }
 0x2d8   : > { %v3785_v47 = vmul.f32 %v3701_v10, %v1169_v38  ;;  %v1064_v50 = vsel %vm1061_vm14, %v1063_v53, %v1059_v45  ;;  %v1113_v32 = vsub.f32 1.0, %v1112_v41  ;;  %v1120_v10 = vand.u32 2147483647, %v3773_v62  ;;  %v3223_v62 = vld [vmem:[%s3337_s10] sm:$0xff]  ;;  %v3224_v41 = vld [vmem:[%s3337_s10 + $0x8] sm:$0xff] }
 0x2d9   : > { %v3789_v57 = vmul.f32 %v3698_v5, %v1064_v50  ;;  %v1128_v29 = vsub.f32 1.0, %v1127_v56  ;;  %vm1132_vm4 = vweird.f32 %v3162_v42  ;;  %3163 = vrcp.f32 %v3791_v7 }
 0x2da   : > { %v1114_v35 = vmul.f32 %v3160_v30, %v1113_v32  ;;  %1332 = vmatpush.msra.mxu3 %v3785_v47  ;;  %3102 = vset.pattern.permute.xlu0 %v3264_v39  ;;  %v1123_v24 = vor.u32 1.1754944e-38, %v1122_v51  ;;  %vm1133_vm7 = vmor %vm1131_vm6, %vm1132_vm4  ;;  %vm1121_vm8 = vcmp.eq.f32.partialorder %v1120_v10, 8.507059e+37  ;;  %v3227_v51 = vld [vmem:[%s3337_s10 + $0x28] sm:$0xff]  ;;  %vm1191_vm14 = vweird.f32 %v3791_v7 }
 0x2db   : > { %5017 = vst [vmem:[#allocation6_spill] sm:$0xff] %v3789_v57  ;;  %1409 = vperm.xlu2 %3090, %v3789_v57   ;;  %1540 = vperm.xlu1 %3091, %v3789_v57   ;;  %v1129_v8 = vmul.f32 %v3162_v42, %v1128_v29 }
 0x2dc   : > { %v1115_v5 = vadd.f32 %v3160_v30, %v1114_v35  ;;  %1306 = vmatpush.msra.mxu2 %v3789_v57  ;;  %1333 = vmatpush.msra.mxu3 %v3779_v11  ;;  %v3226_v35 = vld [vmem:[%s3337_s10 + $0x10] sm:$0xff] }
 0x2dd   : > { %3025 = vmatmul.msk.f32.vlgmr.msra.gmra.mxu2 %vm5012_vm0, %v3223_v62  ;;  %v1130_v14 = vadd.f32 %v3162_v42, %v1129_v8 }
 0x2de   : > { %v1119_v33 = vsel %vm3805_vm5, %v3160_v30, %v1115_v5  ;;  %v3815_v36 = vpop.xlane.xlu2 %1034 }
 0x2df   : > { %3165 = vrcp.f32 %v3815_v36  ;;  %v1134_v27 = vsel %vm1133_vm7, %v3162_v42, %v1130_v14  ;;  %v1124_v60 = vsel %vm1121_vm8, %v1123_v24, %v1119_v33  ;;  %v3821_v30 = vpop.eup %3163  ;;  %vm1206_vm10 = vweird.f32 %v3815_v36 }
 0x2e0   : > { %v1139_v4 = vsel %vm1136_vm9, %v1138_v25, %v1134_v27  ;;  %v3826_v1 = vmul.f32 %v3707_v17, %v1124_v60  ;;  %v3225_v17 = vld [vmem:[%s3337_s10 + $0x20] sm:$0xff]  ;;  %vm1192_vm12 = vweird.f32 %v3821_v30  ;;  %v1210_v8 = vand.u32 2147483647, %v3815_v36 }
 0x2e1   : > { %v3819_v23 = vmul.f32 %v3710_v22, %v1139_v4  ;;  %v1187_v22 = vmul.f32 %v3821_v30, %v3791_v7  ;;  %v1212_v44 = vand.u32 2147483648, %v3815_v36  ;;  %v1197_v24 = vand.u32 2147483648, %v3791_v7  ;;  %vm3857_vm2 = vmor %vm1191_vm14, %vm1192_vm12 }
 0x2e2   : > { %vm1211_vm6 = vcmp.eq.f32.partialorder %v1210_v8, 8.507059e+37 }
 0x2e3   : > { %5020 = vst [vmem:[#allocation7_spill] sm:$0xff] %v3819_v23  ;;  %3093 = vset.pattern.permute.xlu2 %v3265_v16  ;;  %1548 = vperm.xlu1 %3091, %v3762_v13   ;;  %v1188_v50 = vsub.f32 1.0, %v1187_v22 }
 0x2e4   : > { %1334 = vmatpush.msra.mxu3 %v3819_v23  ;;  %1544 = vperm.xlu2 %3093, %v3758_v63  }
 0x2e5   : > { %v3166_v53 = vpop.eup %3165  ;;  %3026 = vmatmul.msk.f32.gmra.mxu2 %vm5012_vm0, %v3224_v41  ;;  %v1189_v29 = vmul.f32 %v3821_v30, %v1188_v50  ;;  %v1213_v41 = vor.u32 1.1754944e-38, %v1212_v44  ;;  %v3229_v50 = vld [vmem:[%s3337_s10 + $0x30] sm:$0xff] }
 0x2e6   : > { %v1202_v42 = vmul.f32 %v3166_v53, %v3815_v36  ;;  %1335 = vmatpush.msra.mxu3 %v3826_v1  ;;  %v1038_v38 = vpop.xlane.xlu0 %1037  ;;  %vm1207_vm11 = vweird.f32 %v3166_v53  ;;  %v1195_v36 = vand.u32 2147483647, %v3791_v7 }
 0x2e7   : > { %3029 = vmatmul.msk.f32.vlgmr.msra.gmra.mxu3 %vm5012_vm0, %v3225_v17  ;;  %3167 = vrcp.f32 %v1038_v38  ;;  %v1227_v19 = vand.u32 2147483648, %v1038_v38  ;;  %v1190_v62 = vadd.f32 %v3821_v30, %v1189_v29  ;;  %v1225_v14 = vand.u32 2147483647, %v1038_v38  ;;  %vm3853_vm15 = vmor %vm1206_vm10, %vm1207_vm11 }
 0x2e8   : > { %v1203_v45 = vsub.f32 1.0, %v1202_v42  ;;  %vm1221_vm4 = vweird.f32 %v1038_v38  ;;  %v3228_v42 = vld [vmem:[%s3337_s10 + $0x18] sm:$0xff]  ;;  %vm1196_vm8 = vcmp.eq.f32.partialorder %v1195_v36, 8.507059e+37 }
 0x2e9   : > { %v1228_v22 = vor.u32 1.1754944e-38, %v1227_v19  ;;  %v1194_v7 = vsel %vm3857_vm2, %v3821_v30, %v1190_v62  ;;  %vm1226_vm7 = vcmp.eq.f32.partialorder %v1225_v14, 8.507059e+37 }
 0x2ea   : > { %v1204_v32 = vmul.f32 %v3166_v53, %v1203_v45 }
 0x2eb   : > { %3094 = vset.pattern.permute.xlu1 %v3264_v39 }
 0x2ec   : > { %1552 = vperm.xlu2 %3093, %v3767_v34   ;;  %1424 = vperm.xlu1 %3094, %v3767_v34   ;;  %v1205_v48 = vadd.f32 %v3166_v53, %v1204_v32 }
 0x2ed   : > { %v3168_v56 = vpop.eup %3167  ;;  %3027 = vmatmul.msk.f32.gmra.mxu2 %vm5012_vm0, %v3226_v35 }
 0x2ee   : > { %v1217_v10 = vmul.f32 %v3168_v56, %v1038_v38  ;;  %vm1222_vm13 = vweird.f32 %v3168_v56  ;;  %v1209_v60 = vsel %vm3853_vm15, %v3166_v53, %v1205_v48  ;;  %v1198_v38 = vor.u32 1.1754944e-38, %v1197_v24 }
 0x2ef   : > { %3030 = vmatmul.msk.f32.gmra.mxu3 %vm5012_vm0, %v3227_v51  ;;  %vm1223_vm5 = vmor %vm1221_vm4, %vm1222_vm13  ;;  %v1214_v17 = vsel %vm1211_vm6, %v1213_v41, %v1209_v60 }
 0x2f0   : > { %v1218_v5 = vsub.f32 1.0, %v1217_v10  ;;  %v1199_v35 = vsel %vm1196_vm8, %v1198_v38, %v1194_v7  ;;  %v3878_v29 = vmul.f32 %v3722_v26, %v1214_v17 }
 0x2f1   : > { %v3882_v30 = vmul.f32 %v3717_v31, %v1199_v35 }
 0x2f2   : > { %v1219_v33 = vmul.f32 %v3168_v56, %v1218_v5  ;;  %5025 = vst [vmem:[#allocation8_spill] sm:$0xff] %v3878_v29 }
 0x2f4   : > { %v1220_v4 = vadd.f32 %v3168_v56, %v1219_v33  ;;  %3096 = vset.pattern.permute.xlu2 %v3264_v39  ;;  %1429 = vperm.xlu1 %3094, %v3826_v1  }
 0x2f5   : > { %3028 = vmatmul.msk.f32.gmra.mxu2 %vm5012_vm0, %v3228_v42  ;;  %1434 = vperm.xlu2 %3096, %v3819_v23  }
 0x2f6   : > { %v1224_v53 = vsel %vm1223_vm5, %v3168_v56, %v1220_v4  ;;  %v3892_v26 = vpop.xlane.xlu2 %1043  ;;  %v3230_v56 = vld [vmem:[%s3337_s10 + $0x38] sm:$0xff] }
 0x2f7   : > { %v1229_v45 = vsel %vm1226_vm7, %v1228_v22, %v1224_v53  ;;  %3031 = vmatmul.msk.f32.gmra.mxu3 %vm5012_vm0, %v3229_v50  ;;  %vm1251_vm4 = vweird.f32 %v3892_v26 }
 0x2f8   : > { %v3875_v32 = vmul.f32 %v3726_v59, %v1229_v45 }
 0x2fa   : > { %1361 = vmatpush.msrb.mxu2 %v3875_v32 }
 0x2fc   : > { %3095 = vset.pattern.permute.xlu1 %v3265_v16  ;;  %1362 = vmatpush.msrb.mxu2 %v3878_v29 }
 0x2fd   : > { %1556 = vperm.xlu1 %3095, %v3826_v1   ;;  %3097 = vset.pattern.permute.xlu2 %v3265_v16 }
 0x2fe   : > { %1560 = vperm.xlu2 %3097, %v3819_v23   ;;  %1363 = vmatpush.msrb.mxu2 %v3882_v30  ;;  %v3890_v59 = vpop.xlane.xlu0 %1046 }
 0x2ff   : > { %3032 = vmatmul.msk.f32.gmra.mxu3 %vm5012_vm0, %v3230_v56  ;;  %3169 = vrcp.f32 %v3890_v59  ;;  %vm1266_vm11 = vweird.f32 %v3890_v59  ;;  %v1270_v7 = vand.u32 2147483647, %v3890_v59  ;;  %v1272_v35 = vand.u32 2147483648, %v3890_v59 }
 0x300   : > { %3171 = vrcp.f32 %v3892_v26 }
 0x301   : > { %vm1271_vm8 = vcmp.eq.f32.partialorder %v1270_v7, 8.507059e+37 }
 0x305   : > { %3100 = vset.pattern.permute.xlu1 %v3264_v39  ;;  %v3901_v10 = vpop.eup %3169 }
 0x306   : > { %1444 = vperm.xlu1 %3100, %v3785_v47   ;;  %3098 = vset.pattern.permute.xlu2 %v3264_v39  ;;  %v1029_v31 = vpop.xlane.xlu0 %1028  ;;  %v3904_v51 = vpop.eup %3171  ;;  %v1262_v48 = vmul.f32 %v3901_v10, %v3890_v59  ;;  %vm1267_vm13 = vweird.f32 %v3901_v10 }
 0x307   : > { %1439 = vperm.xlu2 %3098, %v3779_v11   ;;  %3173 = vrcp.f32 %v1029_v31  ;;  %v1247_v5 = vmul.f32 %v3904_v51, %v3892_v26  ;;  %v1182_v24 = vand.u32 2147483648, %v1029_v31  ;;  %v1180_v36 = vand.u32 2147483647, %v1029_v31  ;;  %vm3936_vm5 = vmor %vm1266_vm11, %vm1267_vm13 }
 0x308   : > { %v1263_v19 = vsub.f32 1.0, %v1262_v48  ;;  %vm1252_vm10 = vweird.f32 %v3904_v51  ;;  %vm1176_vm12 = vweird.f32 %v1029_v31 }
 0x309   : > { %v1248_v33 = vsub.f32 1.0, %v1247_v5  ;;  %v1183_v53 = vor.u32 1.1754944e-38, %v1182_v24  ;;  %vm1181_vm15 = vcmp.eq.f32.partialorder %v1180_v36, 8.507059e+37  ;;  %vm3942_vm6 = vmor %vm1251_vm4, %vm1252_vm10  ;;  %vm2549_vm4 = vcmask 1041408  }
 0x30a   : > { %v1264_v25 = vmul.f32 %v3901_v10, %v1263_v19 }
 0x30b   : > { %v1249_v4 = vmul.f32 %v3904_v51, %v1248_v33  ;;  %v1255_v33 = vand.u32 2147483647, %v3892_v26 }
 0x30c   : > { %v1050_v8 = vpop.xlane.xlu1 %1049  ;;  %v1265_v38 = vadd.f32 %v3901_v10, %v1264_v25  ;;  %v1273_v25 = vor.u32 1.1754944e-38, %v1272_v35 }
 0x30d   : > { %v3174_v44 = vpop.eup %3173  ;;  %3175 = vrcp.f32 %v1050_v8  ;;  %v1250_v50 = vadd.f32 %v3904_v51, %v1249_v4  ;;  %v1285_v19 = vand.u32 2147483647, %v1050_v8  ;;  %vm1281_vm7 = vweird.f32 %v1050_v8 }
 0x30e   : > { %v1172_v62 = vmul.f32 %v3174_v44, %v1029_v31  ;;  %1454 = vperm.xlu1 %3100, %v3882_v30   ;;  %vm1177_vm9 = vweird.f32 %v3174_v44  ;;  %v1287_v31 = vand.u32 2147483648, %v1050_v8  ;;  %vm1256_vm11 = vcmp.eq.f32.partialorder %v1255_v33, 8.507059e+37  ;;  %v3238_v33 = vld [vmem:[%s3337_s10 + $0x78] sm:$0xff] }
 0x30f   : > { %3101 = vset.pattern.permute.xlu2 %v3265_v16  ;;  %vm1178_vm14 = vmor %vm1176_vm12, %vm1177_vm9  ;;  %vm1286_vm10 = vcmp.eq.f32.partialorder %v1285_v19, 8.507059e+37  ;;  %v3236_v19 = vld [vmem:[%s3337_s10 + $0x58] sm:$0xff] }
 0x310   : > { %v1173_v14 = vsub.f32 1.0, %v1172_v62  ;;  %1568 = vperm.xlu2 %3101, %v3785_v47   ;;  %v3237_v62 = vld [vmem:[%s3337_s10 + $0x70] sm:$0xff] }
 0x312   : > { %v1174_v27 = vmul.f32 %v3174_v44, %v1173_v14  ;;  %v1269_v14 = vsel %vm3936_vm5, %v3901_v10, %v1265_v38 }
 0x313   : > { %v3176_v60 = vpop.eup %3175 }
 0x314   : > { %v1175_v41 = vadd.f32 %v3174_v44, %v1174_v27  ;;  %v1277_v22 = vmul.f32 %v3176_v60, %v1050_v8  ;;  %v3917_v42 = vpop.xlane.xlu1 %1040  ;;  %vm1282_vm2 = vweird.f32 %v3176_v60  ;;  %v1288_v27 = vor.u32 1.1754944e-38, %v1287_v31  ;;  %v3231_v8 = vld [vmem:[%s3337_s10 + $0x40] sm:$0xff] }
 0x315   : > { %3177 = vrcp.f32 %v3917_v42  ;;  %vm1283_vm9 = vmor %vm1281_vm7, %vm1282_vm2  ;;  %vm1236_vm13 = vweird.f32 %v3917_v42  ;;  %v3233_v31 = vld [vmem:[%s3337_s10 + $0x60] sm:$0xff]  ;;  %vm1655_vm2 = vcmask 1040384  }
 0x316   : > { %v1179_v17 = vsel %vm1178_vm14, %v3174_v44, %v1175_v41  ;;  %v1278_v45 = vsub.f32 1.0, %v1277_v22  ;;  %3103 = vset.pattern.permute.xlu1 %v3265_v16  ;;  %v1257_v44 = vand.u32 2147483648, %v3892_v26  ;;  %v1254_v26 = vsel %vm3942_vm6, %v3904_v51, %v1250_v50 }
 0x317   : > { %v1184_v56 = vsel %vm1181_vm15, %v1183_v53, %v1179_v17  ;;  %1576 = vperm.xlu1 %3103, %v3882_v30   ;;  %v1274_v41 = vsel %vm1271_vm8, %v1273_v25, %v1269_v14  ;;  %v1242_v17 = vand.u32 2147483648, %v3917_v42  ;;  %vm1951_vm6 = vcmask 9216  }
 0x318   : > { %v3928_v48 = vmul.f32 %v3744_v21, %v1184_v56  ;;  %v1279_v5 = vmul.f32 %v3176_v60, %v1278_v45  ;;  %v1258_v4 = vor.u32 1.1754944e-38, %v1257_v44  ;;  %v3966_v51 = vmul.f32 %v3737_v2, %v1274_v41  ;;  %v3232_v56 = vld [vmem:[%s3337_s10 + $0x48] sm:$0xff] }
 0x319   : > { %v1240_v45 = vand.u32 2147483647, %v3917_v42  ;;  %v1243_v2 = vor.u32 1.1754944e-38, %v1242_v17  ;;  %vm1972_vm8 = vcmask 1041409  }
 0x31a   : > { %5026 = vst [vmem:[#allocation9_spill] sm:$0xff] %v3928_v48  ;;  %v1280_v24 = vadd.f32 %v3176_v60, %v1279_v5  ;;  %1572 = vperm.xlu2 %3101, %v3928_v48   ;;  %1449 = vperm.xlu0 %3102, %v3928_v48   ;;  %v1259_v38 = vsel %vm1256_vm11, %v1258_v4, %v1254_v26  ;;  %v3234_v5 = vld [vmem:[%s3337_s10 + $0x50] sm:$0xff] }
 0x31b   : > { %v3178_v59 = vpop.eup %3177  ;;  %1364 = vmatpush.msrb.mxu2 %v3928_v48  ;;  %v3971_v50 = vmul.f32 %v3732_v54, %v1259_v38  ;;  %vm1241_vm15 = vcmp.eq.f32.partialorder %v1240_v45, 8.507059e+37 }
 0x31c   : > { %v1284_v36 = vsel %vm1283_vm9, %v3176_v60, %v1280_v24  ;;  %v1232_v10 = vmul.f32 %v3178_v59, %v3917_v42  ;;  %3033 = vmatmul.msk.f32.vlgmr.msrb.gmra.mxu2 %vm5012_vm0, %v3231_v8  ;;  %vm1237_vm12 = vweird.f32 %v3178_v59  ;;  %v4017_v24 = vpop.permute.xlu0 %1414  ;;  %vm1974_vm9 = vcmask 1042434  }
 0x31d   : > { %v1289_v22 = vsel %vm1286_vm10, %v1288_v27, %v1284_v36  ;;  %vm1238_vm14 = vmor %vm1236_vm13, %vm1237_vm12  ;;  %vm1976_vm10 = vcmask 1043459  }
 0x31e   : > { %v3961_v7 = vmul.f32 %v3749_v20, %v1289_v22  ;;  %v1233_v53 = vsub.f32 1.0, %v1232_v10 }
 0x31f   : > { %1580 = vperm.xlu1 %3103, %v3878_v29  }
 0x320   : > { %v1234_v60 = vmul.f32 %v3178_v59, %v1233_v53  ;;  %1390 = vmatpush.msrb.mxu3 %v3961_v7 }
 0x322   : > { %v1235_v20 = vadd.f32 %v3178_v59, %v1234_v60  ;;  %1391 = vmatpush.msrb.mxu3 %v3966_v51  ;;  %1459 = vperm.xlu0 %3102, %v3878_v29  }
 0x323   : > { %3104 = vset.pattern.permute.xlu2 %v3264_v39 }
 0x324   : > { %v1239_v35 = vsel %vm1238_vm14, %v3178_v59, %v1235_v20  ;;  %3034 = vmatmul.msk.f32.gmra.mxu2 %vm5012_vm0, %v3232_v56  ;;  %1392 = vmatpush.msrb.mxu3 %v3971_v50  ;;  %v4038_v22 = vpop.permute.xlu0 %1419 }
 0x325   : > { %v1244_v54 = vsel %vm1241_vm15, %v1243_v2, %v1239_v35  ;;  %v1488_v2 = vmul.f32 %v4017_v24, %v3491_v40 }
 0x326   : > { %v3981_v42 = vmul.f32 %v3753_v28, %v1244_v54  ;;  %v3235_v28 = vld [vmem:[%s3337_s10 + $0x68] sm:$0xff] }
 0x328   : > { %5031 = vst [vmem:[#allocation10_spill] sm:$0xff] %v3981_v42  ;;  %1588 = vperm.xlu1 %3103, %v3981_v42   ;;  %1393 = vmatpush.msrb.mxu3 %v3981_v42 }
 0x329   : > { %1469 = vperm.xlu2 %3104, %v3981_v42   ;;  %3037 = vmatmul.msk.f32.vlgmr.msrb.gmra.mxu3 %vm5012_vm0, %v3233_v31 }
 0x32a   : > { %1474 = vperm.xlu0 %3102, %v3971_v50  }
 0x32c   : > { %3035 = vmatmul.msk.f32.gmra.mxu2 %vm5012_vm0, %v3234_v5 }
 0x330   : > { %3108 = vset.pattern.permute.xlu1 %v3264_v39 }
 0x331   : > { %3105 = vset.pattern.permute.xlu2 %v3265_v16  ;;  %1464 = vperm.xlu1 %3108, %v3875_v32  }
 0x332   : > { %3038 = vmatmul.msk.f32.gmra.mxu3 %vm5012_vm0, %v3235_v28  ;;  %1592 = vperm.xlu2 %3105, %v3971_v50   ;;  %v1801_v28 = vmul.f32 %v4017_v24, %v3758_v63 }
 0x333   : > { %3107 = vset.pattern.permute.xlu0 %v3265_v16 }
 0x334   : > { %1596 = vperm.xlu0 %3107, %v3966_v51   ;;  %3036 = vmatmul.msk.f32.gmra.mxu2 %vm5012_vm0, %v3236_v19 }
 0x335   : > { %v4001_v44 = vpop.permute.xlu2 %1409 }
 0x336   : > { %v1487_v53 = vmul.f32 %v4001_v44, %v3488_v37  ;;  %v1800_v56 = vmul.f32 %v4001_v44, %v3789_v57 }
 0x338   : > { %v1503_v5 = vadd.f32 %v1488_v2, %v1487_v53 }
 0x339   : > { %1484 = vperm.xlu1 %3108, %v3961_v7  }
 0x33a   : > { %3039 = vmatmul.msk.f32.gmra.mxu3 %vm5012_vm0, %v3237_v62  ;;  %3106 = vset.pattern.permute.xlu2 %v3264_v39  ;;  %v1489_v62 = vmul.f32 %v4038_v22, %v3494_v43 }
 0x33b   : > { %1479 = vperm.xlu2 %3106, %v3966_v51  }
 0x33e   : > { %v4008_v21 = vpop.permute.xlu2 %1544 }
 0x33f   : > { %v1604_v26 = vmul.f32 %v4008_v21, %v3491_v40 }
 0x342   : > { %3040 = vmatmul.msk.f32.gmra.mxu3 %vm5012_vm0, %v3238_v33  ;;  %v1816_v33 = vsel %vm890_vm3, %v1800_v56, 0.0 }
 0x343   : > { %3109 = vset.pattern.permute.xlu2 %v3265_v16  ;;  %v1869_v16 = vmul.f32 %v4008_v21, %v3758_v63 }
 0x344   : > { %1584 = vperm.xlu2 %3109, %v3875_v32  }
 0x345   : > { %v1885_v38 = vsel %vm890_vm3, %v1869_v16, 0.0 }
 0x346   : > { %v4014_v14 = vpop.permute.xlu2 %1552 }
 0x347   : > { %v1606_v17 = vmul.f32 %v4014_v14, %v3497_v46  ;;  %v1871_v35 = vmul.f32 %v4014_v14, %v3767_v34 }
 0x349   : > { %v1889_v40 = vsel %vm890_vm3, %v1871_v35, 0.0 }
 0x34c   : > { %1600 = vperm.xlu2 %3109, %v3961_v7  }
 0x34d   : > { %v4019_v59 = vpop.permute.xlu1 %1540 }
 0x34e   : > { %v1868_v25 = vmul.f32 %v4019_v59, %v3789_v57  ;;  %v1603_v27 = vmul.f32 %v4019_v59, %v3488_v37 }
 0x34f   : > { %v4021_v39 = vpop.permute.xlu2 %1434 }
 0x350   : > { %v1884_v36 = vsel %vm890_vm3, %v1868_v25, 0.0  ;;  %v1619_v8 = vadd.f32 %v1604_v26, %v1603_v27  ;;  %v4062_v26 = vpop.permute.xlu0 %1564 }
 0x351   : > { %v1886_v60 = vadd.f32 %v1885_v38, %v1884_v36 }
 0x355   : > { %v4032_v10 = vpop.permute.xlu1 %1548 }
 0x356   : > { %v1605_v4 = vmul.f32 %v4032_v10, %v3494_v43  ;;  %v1870_v41 = vmul.f32 %v4032_v10, %v3762_v13 }
 0x358   : > { %v1620_v45 = vadd.f32 %v1619_v8, %v1605_v4  ;;  %v1887_v20 = vsel %vm890_vm3, %v1870_v41, 0.0  ;;  %v4052_v31 = vpop.permute.xlu2 %1560  ;;  %v1504_v8 = vadd.f32 %v1503_v5, %v1489_v62  ;;  %v1817_v4 = vsel %vm890_vm3, %v1801_v28, 0.0 }
 0x359   : > { %v1888_v37 = vadd.f32 %v1887_v20, %v1886_v60  ;;  %v1802_v41 = vmul.f32 %v4038_v22, %v3762_v13 }
 0x35a   : > { %v1621_v54 = vadd.f32 %v1620_v45, %v1606_v17  ;;  %v1818_v17 = vadd.f32 %v1817_v4, %v1816_v33  ;;  %v1874_v45 = vmul.f32 %v4062_v26, %v3779_v11 }
 0x35b   : > { %v1890_v27 = vadd.f32 %v1889_v40, %v1888_v37  ;;  %v1805_v37 = vmul.f32 %v4021_v39, %v3819_v23 }
 0x35c   : > { %v1622_v19 = vrot.slane %v1621_v54, 4  ;;  %v4084_v62 = vsel %vm890_vm3, %v1874_v45, 0.0 }
 0x35d   : > { %v1891_v20 = vrot.slane %v1890_v27, 4 }
 0x35e   : > { %v1623_v25 = vadd.f32 %v1622_v19, %v1621_v54  ;;  %v4060_v16 = vpop.permute.xlu1 %1424  ;;  %v4081_v19 = vmul.f32 %v4062_v26, %v3506_v55 }
 0x35f   : > { %v1490_v36 = vmul.f32 %v4060_v16, %v3497_v46  ;;  %v1803_v53 = vmul.f32 %v4060_v16, %v3767_v34  ;;  %v1819_v46 = vsel %vm890_vm3, %v1802_v41, 0.0  ;;  %v1892_v40 = vadd.f32 %v1891_v20, %v1890_v27 }
 0x360   : > { %v1624_v43 = vrot.slane %v1623_v25, 2  ;;  %v1308_v38 = vpop.f32.mrf.mxu2  ;;  %v1820_v28 = vadd.f32 %v1819_v46, %v1818_v17  ;;  %v1492_v41 = vmul.f32 %v4021_v39, %v3503_v52  ;;  %v1830_v17 = vsel %vm890_vm3, %v1805_v37, 0.0 }
 0x361   : > { %v1505_v60 = vadd.f32 %v1504_v8, %v1490_v36  ;;  %v1821_v56 = vsel %vm890_vm3, %v1803_v53, 0.0  ;;  %v4075_v54 = vpop.permute.xlu2 %1439  ;;  %v1608_v27 = vmul.f32 %v4052_v31, %v3503_v52  ;;  %v1873_v20 = vmul.f32 %v4052_v31, %v3819_v23 }
 0x362   : > { %v1625_v35 = vadd.f32 %v1624_v43, %v1623_v25  ;;  %v1822_v25 = vadd.f32 %v1821_v56, %v1820_v28  ;;  %v1806_v8 = vmul.f32 %v4075_v54, %v3779_v11  ;;  %v1728_v46 = vmul.f32 %v4019_v59, %v1308_v38 }
 0x363   : > { %v1506_v2 = vrot.slane %v1505_v60, 4  ;;  %v1893_v37 = vrot.slane %v1892_v40, 2 }
 0x364   : > { %v1626_v53 = vrot.slane %v1625_v35, 1  ;;  %v1823_v57 = vrot.slane %v1822_v25, 4  ;;  %v1832_v13 = vsel %vm890_vm3, %v1806_v8, 0.0  ;;  %v1493_v8 = vmul.f32 %v4075_v54, %v3506_v55 }
 0x365   : > { %v1507_v5 = vadd.f32 %v1506_v2, %v1505_v60  ;;  %v1660_v2 = vmul.f32 %v4001_v44, %v1308_v38  ;;  %v1898_v44 = vsel %vm890_vm3, %v1873_v20, 0.0  ;;  %v1744_v38 = vsel %vm890_vm3, %v1728_v46, 0.0 }
 0x366   : > { %v1430_v33 = vpop.permute.xlu1 %1429  ;;  %v1627_v52 = vadd.f32 %v1626_v53, %v1625_v35  ;;  %v4113_v53 = vadd.f32 %v1893_v37, %v1892_v40 }
 0x367   : > { %v1508_v36 = vrot.slane %v1507_v5, 2  ;;  %v1804_v4 = vmul.f32 %v1430_v33, %v3826_v1  ;;  %v1491_v63 = vmul.f32 %v1430_v33, %v3500_v49  ;;  %v1676_v59 = vsel %vm890_vm3, %v1660_v2, 0.0 }
 0x368   : > { %v1311_v43 = vpop.f32.mrf.mxu2 }
 0x369   : > { %v1509_v60 = vadd.f32 %v1508_v36, %v1507_v5  ;;  %v1829_v45 = vsel %vm890_vm3, %v1804_v4, 0.0  ;;  %v1940_v5 = vlaneseq  ;;  %v1661_v36 = vmul.f32 %v4017_v24, %v1311_v43 }
 0x36a   : > { %v1831_v56 = vadd.f32 %v1830_v17, %v1829_v45  ;;  %v1337_v28 = vpop.f32.mrf.mxu3  ;;  %v1729_v4 = vmul.f32 %v4008_v21, %v1311_v43  ;;  %v1824_v17 = vadd.f32 %v1823_v57, %v1822_v25  ;;  %v4110_v45 = vpop.permute.xlu2 %1568  ;;  %v1512_v55 = vadd.f32 %v1492_v41, %v1491_v63 }
 0x36b   : > { %v1510_v34 = vrot.slane %v1509_v60, 1  ;;  %v4118_v20 = vand.u32 127, %v1940_v5  ;;  %v1677_v57 = vsel %vm890_vm3, %v1661_v36, 0.0  ;;  %v1875_v40 = vmul.f32 %v4110_v45, %v3785_v47 }
 0x36c   : > { %v4103_v11 = vadd.f32 %v1832_v13, %v1831_v56  ;;  %v1745_v25 = vsel %vm890_vm3, %v1729_v4, 0.0  ;;  %v1825_v37 = vrot.slane %v1824_v17, 2  ;;  %v1895_v63 = vrot.slane %v4113_v53, 1 }
 0x36d   : > { %v1511_v23 = vadd.f32 %v1510_v34, %v1509_v60  ;;  %v3266_v34 = vmov 2.0   ;;  %v1941_v60 = vshrl.u32 %v1940_v5, 7  ;;  %v1610_v41 = vmul.f32 %v4110_v45, %v3509_v58 }
 0x36e   : > { %3179 = vrcp.f32 %v3266_v34  ;;  %v1746_v4 = vadd.f32 %v1745_v25, %v1744_v38  ;;  %v1513_v34 = vadd.f32 %v1512_v55, %v1493_v8 }
 0x36f   : > { %v1557_v35 = vpop.permute.xlu1 %1556  ;;  %v1656_v24 = vsel %vm1655_vm2, %v1511_v23, %v1627_v52  ;;  %v1664_v23 = vmul.f32 %v1430_v33, %v1337_v28  ;;  %vm1944_vm5 = vcmp.eq.s32.totalorder %v1941_v60, %v4118_v20  ;;  %v3267_v60 = vmov 0.0  }
 0x370   : > { %v1607_v13 = vmul.f32 %v1557_v35, %v3500_v49  ;;  %v1872_v21 = vmul.f32 %v1557_v35, %v3826_v1  ;;  %v1314_v43 = vpop.f32.mrf.mxu2  ;;  %3042 = vmatpush.msk.msra.mxu2 %vm2549_vm4, %v1656_v24  ;;  %v1732_v38 = vmul.f32 %v1557_v35, %v1337_v28 }
 0x371   : > { %v1662_v46 = vmul.f32 %v4038_v22, %v1314_v43  ;;  %v1730_v5 = vmul.f32 %v4032_v10, %v1314_v43  ;;  %v1902_v10 = vsel %vm890_vm3, %v1875_v40, 0.0 }
 0x372   : > { %v1628_v2 = vadd.f32 %v1608_v27, %v1607_v13  ;;  %v1897_v49 = vsel %vm890_vm3, %v1872_v21, 0.0  ;;  %v1340_v56 = vpop.f32.mrf.mxu3  ;;  %v1678_v27 = vadd.f32 %v1677_v57, %v1676_v59  ;;  %v4143_v57 = vadd.f32 %v1825_v37, %v1824_v17 }
 0x373   : > { %v1899_v52 = vadd.f32 %v1898_v44, %v1897_v49  ;;  %v1689_v44 = vsel %vm890_vm3, %v1664_v23, 0.0  ;;  %v1679_v21 = vsel %vm890_vm3, %v1662_v46, 0.0  ;;  %v1747_v49 = vsel %vm890_vm3, %v1730_v5, 0.0 }
 0x374   : > { %v1629_v33 = vadd.f32 %v1628_v2, %v4081_v19  ;;  %v4132_v36 = vpop.eup %3179  ;;  %v1665_v19 = vmul.f32 %v4021_v39, %v1340_v56  ;;  %v4140_v2 = vsel %vm1944_vm5, 1.0, %v3267_v60  ;;  %v1680_v25 = vadd.f32 %v1679_v21, %v1678_v27  ;;  %v4151_v35 = vpop.permute.xlu2 %1572 }
 0x375   : > { %v1901_v22 = vadd.f32 %v4084_v62, %v1899_v52  ;;  %v1733_v62 = vmul.f32 %v4052_v31, %v1340_v56  ;;  %v2690_v23 = vsel %vm2549_vm4, %v1656_v24, 0.0  ;;  %v1748_v39 = vadd.f32 %v1747_v49, %v1746_v4 }
 0x376   : > { %v1630_v13 = vadd.f32 %v1629_v33, %v1610_v41  ;;  %v1690_v31 = vsel %vm890_vm3, %v1665_v19, 0.0  ;;  %v1757_v19 = vsel %vm890_vm3, %v1732_v38, 0.0  ;;  %vm2684_vm7 = vweird.f32 %v4132_v36 }
 0x377   : > { %v1903_v43 = vadd.f32 %v1902_v10, %v1901_v22  ;;  %v1691_v60 = vadd.f32 %v1690_v31, %v1689_v44 }
 0x378   : > { %v1631_v59 = vrot.slane %v1630_v13, 4  ;;  %v1317_v8 = vpop.f32.mrf.mxu2  ;;  %v1445_v55 = vpop.permute.xlu1 %1444 }
 0x379   : > { %v1663_v40 = vmul.f32 %v4060_v16, %v1317_v8  ;;  %v1731_v46 = vmul.f32 %v4014_v14, %v1317_v8  ;;  %v1494_v5 = vmul.f32 %v1445_v55, %v3509_v58  ;;  %v1807_v41 = vmul.f32 %v1445_v55, %v3785_v47 }
 0x37a   : > { %v1632_v52 = vadd.f32 %v1631_v59, %v1630_v13  ;;  %v1343_v28 = vpop.f32.mrf.mxu3  ;;  %v1758_v16 = vsel %vm890_vm3, %v1733_v62, 0.0 }
 0x37b   : > { %v1681_v17 = vsel %vm890_vm3, %v1663_v40, 0.0  ;;  %v1749_v56 = vsel %vm890_vm3, %v1731_v46, 0.0  ;;  %v1666_v24 = vmul.f32 %v4075_v54, %v1343_v28  ;;  %v1514_v33 = vadd.f32 %v1513_v34, %v1494_v5 }
 0x37c   : > { %v1682_v14 = vadd.f32 %v1681_v17, %v1680_v25  ;;  %v1750_v37 = vadd.f32 %v1749_v56, %v1748_v39  ;;  %v1633_v27 = vrot.slane %v1632_v52, 2  ;;  %v1834_v58 = vsel %vm890_vm3, %v1807_v41, 0.0 }
 0x37d   : > { %v1692_v4 = vsel %vm890_vm3, %v1666_v24, 0.0  ;;  %v1734_v22 = vmul.f32 %v4062_v26, %v1343_v28  ;;  %v1515_v21 = vrot.slane %v1514_v33, 4  ;;  %v1835_v49 = vadd.f32 %v1834_v58, %v4103_v11 }
 0x37e   : > { %v1683_v10 = vrot.slane %v1682_v14, 4  ;;  %v1751_v13 = vrot.slane %v1750_v37, 4  ;;  %v1904_v54 = vrot.slane %v1903_v43, 4  ;;  %v2691_v46 = vrot.slane %v2690_v23, 4 }
 0x37f   : > { %v1760_v59 = vsel %vm890_vm3, %v1734_v22, 0.0  ;;  %v1516_v8 = vadd.f32 %v1515_v21, %v1514_v33  ;;  %v1836_v25 = vrot.slane %v1835_v49, 4  ;;  %v1759_v39 = vadd.f32 %v1758_v16, %v1757_v19 }
 0x380   : > { %v1684_v62 = vadd.f32 %v1683_v10, %v1682_v14  ;;  %v1752_v34 = vadd.f32 %v1751_v13, %v1750_v37  ;;  %v4163_v40 = vpop.permute.xlu1 %1454  ;;  %v1693_v26 = vadd.f32 %v1692_v4, %v1691_v60  ;;  %v1634_v5 = vadd.f32 %v1633_v27, %v1632_v52 }
 0x381   : > { %v1517_v17 = vrot.slane %v1516_v8, 2  ;;  %v1837_v11 = vadd.f32 %v1836_v25, %v1835_v49  ;;  %v1761_v38 = vadd.f32 %v1760_v59, %v1759_v39  ;;  %v1905_v14 = vadd.f32 %v1904_v54, %v1903_v43 }
 0x382   : > { %v1685_v41 = vrot.slane %v1684_v62, 2  ;;  %v1753_v28 = vrot.slane %v1752_v34, 2  ;;  %v1346_v56 = vpop.f32.mrf.mxu3  ;;  %v2692_v10 = vadd.f32 %v2691_v46, %v2690_v23  ;;  %v1635_v27 = vrot.slane %v1634_v5, 1 }
 0x383   : > { %v1667_v24 = vmul.f32 %v1445_v55, %v1346_v56  ;;  %v1735_v44 = vmul.f32 %v4110_v45, %v1346_v56  ;;  %v4166_v31 = vpop.permute.xlu2 %1469  ;;  %v1518_v58 = vadd.f32 %v1517_v17, %v1516_v8  ;;  %v1838_v22 = vrot.slane %v1837_v11, 2 }
 0x384   : > { %v1686_v37 = vadd.f32 %v1685_v41, %v1684_v62  ;;  %v1754_v33 = vadd.f32 %v1753_v28, %v1752_v34  ;;  %v1827_v45 = vrot.slane %v4143_v57, 1  ;;  %v1906_v60 = vrot.slane %v1905_v14, 2 }
 0x385   : > { %v1694_v16 = vsel %vm890_vm3, %v1667_v24, 0.0  ;;  %v1762_v52 = vsel %vm890_vm3, %v1735_v44, 0.0  ;;  %v1519_v4 = vrot.slane %v1518_v58, 1  ;;  %v1839_v19 = vadd.f32 %v1838_v22, %v1837_v11 }
 0x386   : > { %v1695_v13 = vadd.f32 %v1694_v16, %v1693_v26  ;;  %v1763_v21 = vadd.f32 %v1762_v52, %v1761_v38  ;;  %v1687_v49 = vrot.slane %v1686_v37, 1  ;;  %v1755_v55 = vrot.slane %v1754_v33, 1 }
 0x387   : > { %v1520_v59 = vadd.f32 %v1519_v4, %v1518_v58  ;;  %v2693_v34 = vrot.slane %v2692_v10, 2  ;;  %v1636_v8 = vadd.f32 %v1635_v27, %v1634_v5  ;;  %v1907_v46 = vadd.f32 %v1906_v60, %v1905_v14 }
 0x388   : > { %v1696_v43 = vrot.slane %v1695_v13, 4  ;;  %v1764_v54 = vrot.slane %v1763_v21, 4  ;;  %v1688_v62 = vadd.f32 %v1687_v49, %v1686_v37  ;;  %v1756_v25 = vadd.f32 %v1755_v55, %v1754_v33 }
 0x389   : > { %v4171_v23 = vpop.permute.xlu1 %1576  ;;  %v4174_v26 = vsub.f32 1.0, %v4140_v2  ;;  %v1657_v28 = vsel %vm1655_vm2, %v1520_v59, %v1636_v8  ;;  %v1828_v11 = vadd.f32 %v1827_v45, %v4143_v57  ;;  %v1840_v56 = vrot.slane %v1839_v19, 1 }
 0x38a   : > { %v1697_v39 = vadd.f32 %v1696_v43, %v1695_v13  ;;  %v1765_v41 = vadd.f32 %v1764_v54, %v1763_v21  ;;  %v4178_v17 = vsel %vm1655_vm2, %v1688_v62, %v1756_v25  ;;  %3044 = vmatpush.msk.msra.mxu3 %vm2549_vm4, %v1657_v28  ;;  %v1896_v14 = vadd.f32 %v1895_v63, %v4113_v53 }
 0x38b   : > { %v2694_v37 = vadd.f32 %v2693_v34, %v2692_v10  ;;  %v2697_v33 = vsel %vm2549_vm4, %v1657_v28, 0.0  ;;  %v1908_v58 = vrot.slane %v1907_v46, 1  ;;  %v2680_v22 = vmul.f32 2.0, %v4132_v36 }
 0x38c   : > { %v1698_v38 = vrot.slane %v1697_v39, 2  ;;  %v1766_v24 = vrot.slane %v1765_v41, 2  ;;  %v4182_v5 = vpop.permute.xlu2 %1592  ;;  %v4184_v44 = vpop.permute.xlu0 %1449  ;;  %v2698_v52 = vrot.slane %v2697_v33, 4  ;;  %v4193_v27 = vmul.f32 %v4174_v26, %v4178_v17 }
 0x38d   : > { %v4196_v4 = vsel %vm1655_vm2, %v1828_v11, %v1896_v14  ;;  %v1841_v13 = vadd.f32 %v1840_v56, %v1839_v19  ;;  %v1876_v49 = vmul.f32 %v4151_v35, %v3928_v48  ;;  %v1909_v55 = vadd.f32 %v1908_v58, %v1907_v46 }
 0x38e   : > { %v1699_v57 = vadd.f32 %v1698_v38, %v1697_v39  ;;  %v1767_v16 = vadd.f32 %v1766_v24, %v1765_v41  ;;  %5032 = vst [vmem:[#allocation11_spill] sm:$0xff] %v4193_v27  ;;  %v2699_v21 = vadd.f32 %v2698_v52, %v2697_v33  ;;  %v2350_v53 = vsel %vm1951_vm6, %v4193_v27, 0.0 }
 0x38f   : > { %5033 = vst [vmem:[#allocation12_spill] sm:$0xff] %v4196_v4  ;;  %2351 = vadd.xlane.f32.xlu0 %v2350_v53  ;;  %v2681_v45 = vsub.f32 1.0, %v2680_v22  ;;  %v2695_v60 = vrot.slane %v2694_v37, 1  ;;  %v2185_v59 = vmul.f32 %v4196_v4, %v4196_v4  ;;  %v1877_v19 = vmul.f32 %v4171_v23, %v3882_v30 }
 0x390   : > { %v1700_v63 = vrot.slane %v1699_v57, 1  ;;  %v1768_v10 = vrot.slane %v1767_v16, 1  ;;  %v2700_v43 = vrot.slane %v2699_v21, 2  ;;  %v4209_v8 = vsel %vm1655_vm2, %v1841_v13, %v1909_v55 }
 0x391   : > { %v4202_v54 = vpop.permute.xlu1 %1580  ;;  %v1611_v25 = vmul.f32 %v4151_v35, %v3512_v61  ;;  %v1910_v41 = vsel %vm890_vm3, %v1876_v49, 0.0  ;;  %v1809_v28 = vmul.f32 %v4163_v40, %v3882_v30  ;;  %v2682_v38 = vmul.f32 %v4132_v36, %v2681_v45 }
 0x392   : > { %v1701_v62 = vadd.f32 %v1700_v63, %v1699_v57  ;;  %v1769_v34 = vadd.f32 %v1768_v10, %v1767_v16  ;;  %v2701_v46 = vadd.f32 %v2700_v43, %v2699_v21  ;;  %v1812_v24 = vmul.f32 %v4166_v31, %v3981_v42 }
 0x393   : > { %v1612_v14 = vmul.f32 %v4171_v23, %v3515_v0  ;;  %v2696_v22 = vadd.f32 %v2695_v60, %v2694_v37  ;;  %v1496_v57 = vmul.f32 %v4163_v40, %v3515_v0  ;;  %v1911_v16 = vsel %vm890_vm3, %v1877_v19, 0.0 }
 0x394   : > { %v4213_v39 = vpop.permute.xlu0 %1459  ;;  %v4221_v56 = vsel %vm1655_vm2, %v1701_v62, %v1769_v34  ;;  %v2702_v33 = vrot.slane %v2701_v46, 1  ;;  %v2189_v52 = vsel %vm1951_vm6, %v2185_v59, 0.0  ;;  %v1881_v21 = vmul.f32 %v4182_v5, %v3971_v50 }
 0x395   : > { %v4218_v11 = vpop.permute.xlu2 %1479  ;;  %v4230_v58 = vmul.f32 %v4174_v26, %v4221_v56  ;;  %v1808_v53 = vmul.f32 %v4184_v44, %v3928_v48  ;;  %v1613_v37 = vmul.f32 %v4202_v54, %v3518_v3  ;;  %v1878_v0 = vmul.f32 %v4202_v54, %v3878_v29 }
 0x396   : > { %v2703_v13 = vadd.f32 %v2702_v33, %v2701_v46  ;;  %v2683_v10 = vadd.f32 %v4132_v36, %v2682_v38  ;;  %v1843_v49 = vsel %vm890_vm3, %v1809_v28, 0.0  ;;  %v1499_v55 = vmul.f32 %v4166_v31, %v3524_v9 }
 0x397   : > { %5034 = vst [vmem:[#allocation13_spill] sm:$0xff] %v4230_v58  ;;  %v2353_v63 = vsel %vm1951_vm6, %v4230_v58, 0.0  ;;  %v1855_v45 = vsel %vm890_vm3, %v1812_v24, 0.0  ;;  %v1637_v60 = vadd.f32 %v1612_v14, %v1611_v25  ;;  %v1912_v59 = vadd.f32 %v1911_v16, %v1910_v41 }
 0x398   : > { %2354 = vadd.xlane.f32.xlu1 %v2353_v63  ;;  %v1616_v19 = vmul.f32 %v4182_v5, %v3527_v12  ;;  %v4257_v62 = vsel %vm2684_vm7, %v4132_v36, %v2683_v10  ;;  %v1924_v34 = vsel %vm890_vm3, %v1881_v21, 0.0  ;;  %v1495_v46 = vmul.f32 %v4184_v44, %v3512_v61 }
 0x399   : > { %v2718_v38 = vmul.f32 %v2696_v22, %v4257_v62  ;;  %v2719_v25 = vmul.f32 %v2703_v13, %v4257_v62  ;;  %v1842_v41 = vsel %vm890_vm3, %v1808_v53, 0.0  ;;  %v1638_v24 = vadd.f32 %v1637_v60, %v1613_v37 }
 0x39a   : > { %v4252_v43 = vpop.permute.xlu1 %1588  ;;  %v1913_v14 = vsel %vm890_vm3, %v1878_v0, 0.0  ;;  %v1810_v36 = vmul.f32 %v4213_v39, %v3878_v29  ;;  %v1497_v33 = vmul.f32 %v4213_v39, %v3518_v3  ;;  %v1814_v21 = vmul.f32 %v4218_v11, %v3966_v51 }
 0x39b   : > { %v1880_v61 = vmul.f32 %v4252_v43, %v3981_v42  ;;  %v4279_v13 = vsel %vm1972_vm8, %v2719_v25, %v2718_v38  ;;  %v1521_v0 = vadd.f32 %v1496_v57, %v1495_v46  ;;  %v1914_v10 = vadd.f32 %v1913_v14, %v1912_v59 }
 0x39c   : > { %v4262_v28 = vpop.permute.xlu0 %1474  ;;  %v1501_v60 = vmul.f32 %v4218_v11, %v3530_v15  ;;  %v1845_v38 = vsel %vm890_vm3, %v1810_v36, 0.0  ;;  %v1615_v25 = vmul.f32 %v4252_v43, %v3524_v9  ;;  %v1858_v57 = vsel %vm890_vm3, %v1814_v21, 0.0 }
 0x39d   : > { %v1500_v16 = vmul.f32 %v4262_v28, %v3527_v12  ;;  %v1813_v53 = vmul.f32 %v4262_v28, %v3971_v50  ;;  %v1844_v12 = vadd.f32 %v1843_v49, %v1842_v41  ;;  %v1522_v29 = vadd.f32 %v1521_v0, %v1497_v33 }
 0x39e   : > { %v4276_v22 = vpop.permute.xlu2 %1584  ;;  %v1923_v48 = vsel %vm890_vm3, %v1880_v61, 0.0  ;;  %v1646_v36 = vadd.f32 %v1616_v19, %v1615_v25 }
 0x39f   : > { %v1614_v3 = vmul.f32 %v4276_v22, %v3521_v6  ;;  %v1879_v63 = vmul.f32 %v4276_v22, %v3875_v32  ;;  %v1366_v37 = vpop.f32.mrf.mxu2  ;;  %v1530_v58 = vadd.f32 %v1500_v16, %v1499_v55  ;;  %v1856_v49 = vsel %vm890_vm3, %v1813_v53, 0.0 }
 0x3a0   : > { %2190 = vadd.xlane.f32.xlu1 %v2189_v52  ;;  %v1668_v46 = vmul.f32 %v4184_v44, %v1366_v37  ;;  %v1846_v14 = vadd.f32 %v1845_v38, %v1844_v12  ;;  %v1925_v55 = vadd.f32 %v1924_v34, %v1923_v48  ;;  %v1736_v33 = vmul.f32 %v4151_v35, %v1366_v37 }
 0x3a1   : > { %v1639_v42 = vadd.f32 %v1638_v24, %v1614_v3  ;;  %v1915_v4 = vsel %vm890_vm3, %v1879_v63, 0.0  ;;  %v1857_v61 = vadd.f32 %v1856_v49, %v1855_v45  ;;  %v1531_v3 = vadd.f32 %v1530_v58, %v1501_v60 }
 0x3a2   : > { %v1916_v27 = vadd.f32 %v1915_v4, %v1914_v10  ;;  %v1770_v58 = vsel %vm890_vm3, %v1736_v33, 0.0 }
 0x3a3   : > { %v1640_v59 = vrot.slane %v1639_v42, 4  ;;  %v4299_v41 = vpop.permute.xlu1 %1464 }
 0x3a4   : > { %v1917_v9 = vrot.slane %v1916_v27, 4  ;;  %v1498_v24 = vmul.f32 %v4299_v41, %v3521_v6  ;;  %v1811_v52 = vmul.f32 %v4299_v41, %v3875_v32  ;;  %v1702_v6 = vsel %vm890_vm3, %v1668_v46, 0.0 }
 0x3a5   : > { %v1641_v4 = vadd.f32 %v1640_v59, %v1639_v42  ;;  %v1859_v46 = vadd.f32 %v1858_v57, %v1857_v61 }
 0x3a6   : > { %v1523_v16 = vadd.f32 %v1522_v29, %v1498_v24  ;;  %v1847_v21 = vsel %vm890_vm3, %v1811_v52, 0.0  ;;  %v4307_v44 = vpop.permute.xlu2 %1600  ;;  %v4309_v53 = vpop.permute.xlu0 %1596  ;;  %v4311_v0 = vadd.f32 %v1917_v9, %v1916_v27 }
 0x3a7   : > { %v1642_v63 = vrot.slane %v1641_v4, 2  ;;  %v1848_v12 = vadd.f32 %v1847_v21, %v1846_v14  ;;  %v1369_v19 = vpop.f32.mrf.mxu2  ;;  %v1883_v42 = vmul.f32 %v4307_v44, %v3961_v7  ;;  %v1617_v29 = vmul.f32 %v4309_v53, %v3530_v15 }
 0x3a8   : > { %v1524_v48 = vrot.slane %v1523_v16, 4  ;;  %v1882_v35 = vmul.f32 %v4309_v53, %v3966_v51  ;;  %v1669_v27 = vmul.f32 %v4163_v40, %v1369_v19  ;;  %v1618_v10 = vmul.f32 %v4307_v44, %v3533_v18 }
 0x3a9   : > { %v1643_v45 = vadd.f32 %v1642_v63, %v1641_v4  ;;  %v1849_v34 = vrot.slane %v1848_v12, 4  ;;  %v1647_v60 = vadd.f32 %v1646_v36, %v1617_v29  ;;  %v1737_v15 = vmul.f32 %v4171_v23, %v1369_v19 }
 0x3aa   : > { %v1525_v37 = vadd.f32 %v1524_v48, %v1523_v16  ;;  %v1926_v38 = vsel %vm890_vm3, %v1882_v35, 0.0  ;;  %v1703_v49 = vsel %vm890_vm3, %v1669_v27, 0.0  ;;  %v1919_v14 = vrot.slane %v4311_v0, 2 }
 0x3ab   : > { %v1927_v25 = vadd.f32 %v1926_v38, %v1925_v55  ;;  %v4327_v59 = vpop.permute.xlu1 %1484  ;;  %v1928_v40 = vsel %vm890_vm3, %v1883_v42, 0.0  ;;  %v1648_v24 = vadd.f32 %v1647_v60, %v1618_v10  ;;  %v1644_v4 = vrot.slane %v1643_v45, 1 }
 0x3ac   : > { %v1526_v9 = vrot.slane %v1525_v37, 2  ;;  %v1395_v52 = vpop.f32.mrf.mxu3  ;;  %v4331_v33 = vadd.f32 %v1849_v34, %v1848_v12  ;;  %v1502_v55 = vmul.f32 %v4327_v59, %v3533_v18  ;;  %v1704_v23 = vadd.f32 %v1703_v49, %v1702_v6 }
 0x3ad   : > { %v1929_v36 = vadd.f32 %v1928_v40, %v1927_v25  ;;  %v1649_v21 = vrot.slane %v1648_v24, 4  ;;  %v1815_v57 = vmul.f32 %v4327_v59, %v3961_v7  ;;  %v1771_v63 = vsel %vm890_vm3, %v1737_v15, 0.0 }
 0x3ae   : > { %v1527_v16 = vadd.f32 %v1526_v9, %v1525_v37  ;;  %v1532_v19 = vadd.f32 %v1531_v3, %v1502_v55  ;;  %v1672_v48 = vmul.f32 %v4166_v31, %v1395_v52  ;;  %v1740_v34 = vmul.f32 %v4252_v43, %v1395_v52 }
 0x3af   : > { %v1930_v61 = vrot.slane %v1929_v36, 4  ;;  %v1372_v42 = vpop.f32.mrf.mxu2  ;;  %v1650_v12 = vadd.f32 %v1649_v21, %v1648_v24  ;;  %v1860_v35 = vsel %vm890_vm3, %v1815_v57, 0.0  ;;  %v1645_v6 = vadd.f32 %v1644_v4, %v1643_v45 }
 0x3b0   : > { %v1528_v29 = vrot.slane %v1527_v16, 1  ;;  %v1533_v27 = vrot.slane %v1532_v19, 4  ;;  %v1861_v37 = vadd.f32 %v1860_v35, %v1859_v46  ;;  %v1670_v60 = vmul.f32 %v4213_v39, %v1372_v42 }
 0x3b1   : > { %v1931_v18 = vadd.f32 %v1930_v61, %v1929_v36  ;;  %v1651_v10 = vrot.slane %v1650_v12, 2  ;;  %v1738_v38 = vmul.f32 %v4202_v54, %v1372_v42  ;;  %v1851_v3 = vrot.slane %v4331_v33, 2 }
 0x3b2   : > { %v1529_v25 = vadd.f32 %v1528_v29, %v1527_v16  ;;  %v1772_v31 = vadd.f32 %v1771_v63, %v1770_v58  ;;  %v1534_v49 = vadd.f32 %v1533_v27, %v1532_v19  ;;  %v1862_v15 = vrot.slane %v1861_v37, 4 }
 0x3b3   : > { %v1652_v9 = vadd.f32 %v1651_v10, %v1650_v12  ;;  %v1705_v40 = vsel %vm890_vm3, %v1670_v60, 0.0  ;;  %v1932_v24 = vrot.slane %v1931_v18, 2  ;;  %v1715_v45 = vsel %vm890_vm3, %v1672_v48, 0.0 }
 0x3b4   : > { %v1658_v43 = vsel %vm1655_vm2, %v1529_v25, %v1645_v6  ;;  %v1535_v52 = vrot.slane %v1534_v49, 2  ;;  %v1863_v46 = vadd.f32 %v1862_v15, %v1861_v37  ;;  %v1783_v39 = vsel %vm890_vm3, %v1740_v34, 0.0 }
 0x3b5   : > { %v1398_v4 = vpop.f32.mrf.mxu3  ;;  %3046 = vmatpush.msk.msrb.mxu2 %vm2549_vm4, %v1658_v43  ;;  %v1773_v54 = vsel %vm890_vm3, %v1738_v38, 0.0  ;;  %v2704_v36 = vsel %vm2549_vm4, %v1658_v43, 0.0  ;;  %v1653_v55 = vrot.slane %v1652_v9, 1  ;;  %v1706_v57 = vadd.f32 %v1705_v40, %v1704_v23 }
 0x3b6   : > { %v1673_v58 = vmul.f32 %v4262_v28, %v1398_v4  ;;  %v1536_v16 = vadd.f32 %v1535_v52, %v1534_v49  ;;  %v1864_v21 = vrot.slane %v1863_v46, 2  ;;  %v2705_v61 = vrot.slane %v2704_v36, 4 }
 0x3b7   : > { %v1375_v63 = vpop.f32.mrf.mxu2  ;;  %v1741_v19 = vmul.f32 %v4182_v5, %v1398_v4  ;;  %v1933_v29 = vadd.f32 %v1932_v24, %v1931_v18  ;;  %v1774_v35 = vadd.f32 %v1773_v54, %v1772_v31  ;;  %v1654_v6 = vadd.f32 %v1653_v55, %v1652_v9 }
 0x3b8   : > { %v1671_v48 = vmul.f32 %v4299_v41, %v1375_v63  ;;  %v1739_v42 = vmul.f32 %v4276_v22, %v1375_v63  ;;  %v1537_v12 = vrot.slane %v1536_v16, 1  ;;  %v1716_v34 = vsel %vm890_vm3, %v1673_v58, 0.0 }
 0x3b9   : > { %v2706_v28 = vadd.f32 %v2705_v61, %v2704_v36  ;;  %v1865_v23 = vadd.f32 %v1864_v21, %v1863_v46  ;;  %v1784_v41 = vsel %vm890_vm3, %v1741_v19, 0.0  ;;  %v1934_v22 = vrot.slane %v1933_v29, 1 }
 0x3ba   : > { %v1707_v27 = vsel %vm890_vm3, %v1671_v48, 0.0  ;;  %v1775_v37 = vsel %vm890_vm3, %v1739_v42, 0.0  ;;  %v1538_v5 = vadd.f32 %v1537_v12, %v1536_v16  ;;  %v1852_v18 = vadd.f32 %v1851_v3, %v4331_v33 }
 0x3bb   : > { %v2707_v10 = vrot.slane %v2706_v28, 2  ;;  %v1708_v60 = vadd.f32 %v1707_v27, %v1706_v57  ;;  %v1776_v38 = vadd.f32 %v1775_v37, %v1774_v35  ;;  %v1866_v25 = vrot.slane %v1865_v23, 1 }
 0x3bc   : > { %v1659_v43 = vsel %vm1655_vm2, %v1538_v5, %v1654_v6  ;;  %v1717_v33 = vadd.f32 %v1716_v34, %v1715_v45  ;;  %v1935_v55 = vadd.f32 %v1934_v22, %v1933_v29  ;;  %v1853_v16 = vrot.slane %v1852_v18, 1 }
 0x3bd   : > { %v2708_v31 = vadd.f32 %v2707_v10, %v2706_v28  ;;  %v1709_v49 = vrot.slane %v1708_v60, 4  ;;  %v1777_v15 = vrot.slane %v1776_v38, 4  ;;  %v1401_v40 = vpop.f32.mrf.mxu3  ;;  %3048 = vmatpush.msk.msrb.mxu3 %vm2549_vm4, %v1659_v43  ;;  %v2711_v52 = vsel %vm2549_vm4, %v1659_v43, 0.0 }
 0x3be   : > { %v1674_v24 = vmul.f32 %v4218_v11, %v1401_v40  ;;  %v1742_v9 = vmul.f32 %v4309_v53, %v1401_v40  ;;  %v1867_v46 = vadd.f32 %v1866_v25, %v1865_v23  ;;  %v2712_v36 = vrot.slane %v2711_v52, 4 }
 0x3bf   : > { %v2709_v4 = vrot.slane %v2708_v31, 1  ;;  %v1710_v54 = vadd.f32 %v1709_v49, %v1708_v60  ;;  %v1778_v58 = vadd.f32 %v1777_v15, %v1776_v38  ;;  %v1785_v21 = vadd.f32 %v1784_v41, %v1783_v39 }
 0x3c0   : > { %v1718_v3 = vsel %vm890_vm3, %v1674_v24, 0.0  ;;  %v1786_v53 = vsel %vm890_vm3, %v1742_v9, 0.0  ;;  %v2713_v19 = vadd.f32 %v2712_v36, %v2711_v52  ;;  %v4368_v48 = vsel %vm1655_vm2, %v1867_v46, %v1935_v55 }
 0x3c1   : > { %v2710_v57 = vadd.f32 %v2709_v4, %v2708_v31  ;;  %v1711_v61 = vrot.slane %v1710_v54, 2  ;;  %v1779_v11 = vrot.slane %v1778_v58, 2  ;;  %v1719_v63 = vadd.f32 %v1718_v3, %v1717_v33 }
 0x3c2   : > { %v2188_v45 = vmul.f32 %v4368_v48, %v4368_v48  ;;  %v1920_v29 = vadd.f32 %v1919_v14, %v4311_v0  ;;  %v2714_v39 = vrot.slane %v2713_v19, 2  ;;  %v1854_v35 = vadd.f32 %v1853_v16, %v1852_v18 }
 0x3c3   : > { %v1712_v42 = vadd.f32 %v1711_v61, %v1710_v54  ;;  %v1780_v12 = vadd.f32 %v1779_v11, %v1778_v58  ;;  %v2720_v34 = vmul.f32 %v2710_v57, %v4257_v62  ;;  %v1787_v10 = vadd.f32 %v1786_v53, %v1785_v21  ;;  %v3239_v21 = vld [vmem:[%s3337_s10 + $0x8] sm:$0xff] }
 0x3c4   : > { %v2198_v28 = vsel %vm1951_vm6, %v2188_v45, 0.0  ;;  %v1921_v23 = vrot.slane %v1920_v29, 1  ;;  %v2715_v60 = vadd.f32 %v2714_v39, %v2713_v19  ;;  %v1947_v49 = vmul.f32 %v4140_v2, %v4178_v17  ;;  %v3240_v39 = vld [vmem:[%s3337_s10 + $0x28] sm:$0xff] }
 0x3c5   : > { %v1404_v27 = vpop.f32.mrf.mxu3  ;;  %v1713_v37 = vrot.slane %v1712_v42, 1  ;;  %v1781_v6 = vrot.slane %v1780_v12, 1  ;;  %2199 = vadd.xlane.f32.xlu1 %v2198_v28  ;;  %v2735_v25 = vsel %vm1974_vm9, %v2720_v34, %v4279_v13  ;;  %v2186_v3 = vmul.f32 %v4209_v8, %v4209_v8 }
 0x3c6   : > { %v1675_v38 = vmul.f32 %v4327_v59, %v1404_v27  ;;  %v1743_v5 = vmul.f32 %v4307_v44, %v1404_v27  ;;  %v1922_v14 = vadd.f32 %v1921_v23, %v1920_v29  ;;  %v2716_v22 = vrot.slane %v2715_v60, 1 }
 0x3c7   : > { %v1714_v41 = vadd.f32 %v1713_v37, %v1712_v42  ;;  %v1782_v0 = vadd.f32 %v1781_v6, %v1780_v12  ;;  %v1952_v54 = vsel %vm1951_vm6, %v1947_v49, 0.0  ;;  %v1986_v57 = vsel %vm5012_vm0, %v3239_v21, 0.0 }
 0x3c8   : > { %v1720_v18 = vsel %vm890_vm3, %v1675_v38, 0.0  ;;  %v1788_v31 = vsel %vm890_vm3, %v1743_v5, 0.0  ;;  %v4387_v44 = vsel %vm1655_vm2, %v1854_v35, %v1922_v14  ;;  %v2717_v24 = vadd.f32 %v2716_v22, %v2715_v60  ;;  %v3241_v60 = vld [vmem:[%s3337_s10] sm:$0xff] }
 0x3c9   : > { %v1721_v15 = vadd.f32 %v1720_v18, %v1719_v63  ;;  %v1789_v40 = vadd.f32 %v1788_v31, %v1787_v10  ;;  %v1798_v59 = vsel %vm1655_vm2, %v1714_v41, %v1782_v0  ;;  %v2192_v63 = vsel %vm1951_vm6, %v2186_v3, 0.0  ;;  %v3242_v5 = vld [vmem:[%s3337_s10 + $0x40] sm:$0xff]  ;;  %v5037_v3 = vld [vmem:[#allocation3_spill] sm:$0xff] }
 0x3ca   : > { %v4390_v43 = vmul.f32 %v4174_v26, %v1798_v59  ;;  %v2721_v17 = vmul.f32 %v2717_v24, %v4257_v62  ;;  %v1948_v45 = vmul.f32 %v4140_v2, %v4221_v56  ;;  %v1998_v35 = vsel %vm5012_vm0, %v3240_v39, 0.0  ;;  %v3243_v0 = vld [vmem:[%s3337_s10 + $0x20] sm:$0xff]  ;;  %v3245_v24 = vld [vmem:[%s3337_s10 + $0x10] sm:$0xff] }
 0x3cb   : > { %v1722_v13 = vrot.slane %v1721_v15, 4  ;;  %v1790_v9 = vrot.slane %v1789_v40, 4  ;;  %v1949_v37 = vmul.f32 %v4140_v2, %v1798_v59  ;;  %v2035_v6 = vmul.f32 %v3826_v1, %v3826_v1  ;;  %v5035_v1 = vld [vmem:[#allocation5_spill] sm:$0xff]  ;;  %v5036_v18 = vld [vmem:[#allocation2_spill] sm:$0xff] }
 0x3cc   : > { %v2356_v52 = vsel %vm1951_vm6, %v4390_v43, 0.0  ;;  %v4397_v58 = vsel %vm1976_vm10, %v2721_v17, %v2735_v25  ;;  %v1955_v34 = vsel %vm1951_vm6, %v1948_v45, 0.0  ;;  %v1983_v38 = vsel %vm5012_vm0, %v3241_v60, 0.0 }
 0x3cd   : > { %v1723_v46 = vadd.f32 %v1722_v13, %v1721_v15  ;;  %v1791_v4 = vadd.f32 %v1790_v9, %v1789_v40  ;;  %2357 = vadd.xlane.f32.xlu2 %v2356_v52  ;;  %1953 = vadd.xlane.f32.xlu1 %v1952_v54  ;;  %v1958_v23 = vsel %vm1951_vm6, %v1949_v37, 0.0  ;;  %v2059_v10 = vsel %vm890_vm3, %v2035_v6, 0.0  ;;  %v3244_v15 = vld [vmem:[%s3337_s10 + $0x18] sm:$0xff]  ;;  %v3246_v9 = vld [vmem:[%s3337_s10 + $0x30] sm:$0xff] }
 0x3ce   : > { %v2007_v41 = vsel %vm5012_vm0, %v3242_v5, 0.0  ;;  %v1995_v14 = vsel %vm5012_vm0, %v3243_v0, 0.0  ;;  %v2037_v25 = vmul.f32 %v5035_v1, %v5035_v1  ;;  %v2032_v31 = vmul.f32 %v5036_v18, %v5036_v18 }
 0x3cf   : > { %v1724_v36 = vrot.slane %v1723_v46, 2  ;;  %v1792_v33 = vrot.slane %v1791_v4, 2  ;;  %v1992_v40 = vsel %vm5012_vm0, %v3244_v15, 0.0  ;;  %v1989_v13 = vsel %vm5012_vm0, %v3245_v24, 0.0 }
 0x3d0   : > { %v2065_v22 = vsel %vm890_vm3, %v2037_v25, 0.0  ;;  %v2050_v49 = vsel %vm890_vm3, %v2032_v31, 0.0  ;;  %v2001_v52 = vsel %vm5012_vm0, %v3246_v9, 0.0  ;;  %v2038_v21 = vmul.f32 %v3785_v47, %v3785_v47 }
 0x3d1   : > { %v1725_v55 = vadd.f32 %v1724_v36, %v1723_v46  ;;  %v1793_v16 = vadd.f32 %v1792_v33, %v1791_v4  ;;  %v3247_v46 = vld [vmem:[%s3337_s10 + $0x60] sm:$0xff] }
 0x3d2   : > { %v2019_v4 = vsel %vm5012_vm0, %v3247_v46, 0.0 }
 0x3d3   : > { %v1726_v61 = vrot.slane %v1725_v55, 1  ;;  %v1794_v11 = vrot.slane %v1793_v16, 1 }
 0x3d5   : > { %2193 = vadd.xlane.f32.xlu2 %v2192_v63  ;;  %v1727_v53 = vadd.f32 %v1726_v61, %v1725_v55  ;;  %v1795_v19 = vadd.f32 %v1794_v11, %v1793_v16  ;;  %1987 = vadd.xlane.f32.xlu1 %v1986_v57  ;;  %v2033_v55 = vmul.f32 %v5037_v3, %v5037_v3 }
 0x3d7   : > { %v1799_v42 = vsel %vm1655_vm2, %v1727_v53, %v1795_v19  ;;  %v2053_v61 = vsel %vm890_vm3, %v2033_v55, 0.0  ;;  %v2068_v19 = vsel %vm890_vm3, %v2038_v21, 0.0 }
 0x3d8   : > { %v4406_v12 = vmul.f32 %v4174_v26, %v1799_v42  ;;  %v2187_v26 = vmul.f32 %v4387_v44, %v4387_v44  ;;  %v1950_v28 = vmul.f32 %v4140_v2, %v1799_v42 }
 0x3da   : > { %v2359_v29 = vsel %vm1951_vm6, %v4406_v12, 0.0  ;;  %v2195_v56 = vsel %vm1951_vm6, %v2187_v26, 0.0  ;;  %v1961_v27 = vsel %vm1951_vm6, %v1950_v28, 0.0  ;;  %v2044_v26 = vmul.f32 %v3971_v50, %v3971_v50 }
 0x3db   : > { %2360 = vadd.xlane.f32.xlu0 %v2359_v29  ;;  %v2040_v29 = vmul.f32 %v3882_v30, %v3882_v30  ;;  %v2042_v50 = vmul.f32 %v3875_v32, %v3875_v32  ;;  %v2046_v32 = vmul.f32 %v3961_v7, %v3961_v7 }
 0x3dc   : > { %v2086_v30 = vsel %vm890_vm3, %v2044_v26, 0.0 }
 0x3dd   : > { %1956 = vadd.xlane.f32.xlu2 %v1955_v34  ;;  %1999 = vadd.xlane.f32.xlu1 %v1998_v35  ;;  %v2080_v25 = vsel %vm890_vm3, %v2042_v50, 0.0  ;;  %v2092_v7 = vsel %vm890_vm3, %v2046_v32, 0.0 }
 0x3e3   : > { %2196 = vadd.xlane.f32.xlu0 %v2195_v56 }
 0x3e5   : > { %1962 = vadd.xlane.f32.xlu1 %v1961_v27  ;;  %1990 = vadd.xlane.f32.xlu2 %v1989_v13  ;;  %v2074_v27 = vsel %vm890_vm3, %v2040_v29, 0.0 }
 0x3eb   : > { %1959 = vadd.xlane.f32.xlu0 %v1958_v23 }
 0x3ed   : > { %2060 = vadd.xlane.f32.xlu1 %v2059_v10 }
 0x3f3   : > { %1984 = vadd.xlane.f32.xlu0 %v1983_v38 }
 0x3f5   : > { %2008 = vadd.xlane.f32.xlu1 %v2007_v41 }
 0x3fb   : > { %1996 = vadd.xlane.f32.xlu0 %v1995_v14 }
 0x3fd   : > { %2066 = vadd.xlane.f32.xlu1 %v2065_v22 }
 0x402   : > { %v2352_v59 = vpop.xlane.xlu0 %2351 }
 0x403   : > { %2051 = vadd.xlane.f32.xlu0 %v2050_v49  ;;  %3181 = vrsqrt.f32 %v2352_v59  ;;  %vm2369_vm11 = vcmp.eq.f32.partialorder %v2352_v59, inf  ;;  %v2372_v39 = vand.u32 2147483648, %v2352_v59  ;;  %vm2371_vm12 = vcmp.eq.f32.partialorder %v2352_v59, 0.0 }
 0x405   : > { %1993 = vadd.xlane.f32.xlu1 %v1992_v40 }
 0x409   : > { %v3182_v17 = vpop.eup %3181 }
 0x40a   : > { %v2363_v54 = vmul.f32 %v3182_v17, %v2352_v59 }
 0x40b   : > { %2002 = vadd.xlane.f32.xlu0 %v2001_v52  ;;  %v2355_v36 = vpop.xlane.xlu1 %2354 }
 0x40c   : > { %3183 = vrsqrt.f32 %v2355_v36  ;;  %v2364_v33 = vmul.f32 %v3182_v17, %v2363_v54  ;;  %vm2381_vm13 = vcmp.eq.f32.partialorder %v2355_v36, inf  ;;  %v2384_v10 = vand.u32 2147483648, %v2355_v36 }
 0x40d   : > { %2020 = vadd.xlane.f32.xlu1 %v2019_v4  ;;  %vm2383_vm14 = vcmp.eq.f32.partialorder %v2355_v36, 0.0 }
 0x40e   : > { %v2365_v16 = vmul.f32 0.5, %v2364_v33 }
 0x410   : > { %v2366_v57 = vsub.f32 1.5, %v2365_v16 }
 0x412   : > { %v3184_v11 = vpop.eup %3183  ;;  %v2367_v63 = vmul.f32 %v3182_v17, %v2366_v57 }
 0x413   : > { %2054 = vadd.xlane.f32.xlu0 %v2053_v61  ;;  %v2375_v53 = vmul.f32 %v3184_v11, %v2355_v36  ;;  %v5040_v61 = vld [vmem:[#allocation11_spill] sm:$0xff] }
 0x414   : > { %v2368_v42 = vmul.f32 %v2367_v63, %v2352_v59 }
 0x415   : > { %v2376_v45 = vmul.f32 %v3184_v11, %v2375_v53  ;;  %2069 = vadd.xlane.f32.xlu1 %v2068_v19 }
 0x416   : > { %v2370_v35 = vsel %vm2369_vm11, %v2352_v59, %v2368_v42 }
 0x417   : > { %v2377_v47 = vmul.f32 0.5, %v2376_v45  ;;  %v2373_v34 = vsel %vm2371_vm12, %v2372_v39, %v2370_v35 }
 0x418   : > { %v2410_v28 = vadd.f32 1e-15, %v2373_v34 }
 0x419   : > { %v2378_v56 = vsub.f32 1.5, %v2377_v47 }
 0x41a   : > { %3185 = vrcp.f32 %v2410_v28  ;;  %v2418_v6 = vperm.slane %v2410_v28, %v4118_v20  ;;  %vm2491_vm5 = vweird.f32 %v2410_v28  ;;  %v2497_v9 = vand.u32 2147483648, %v2410_v28 }
 0x41b   : > { %2075 = vadd.xlane.f32.xlu0 %v2074_v27  ;;  %v2379_v37 = vmul.f32 %v3184_v11, %v2378_v56  ;;  %v2495_v46 = vand.u32 2147483647, %v2410_v28 }
 0x41c   : > { %3187 = vrcp.f32 %v2418_v6  ;;  %v2435_v15 = vand.u32 2147483647, %v2418_v6  ;;  %v2437_v40 = vand.u32 2147483648, %v2418_v6  ;;  %vm2431_vm7 = vweird.f32 %v2418_v6 }
 0x41d   : > { %v2380_v23 = vmul.f32 %v2379_v37, %v2355_v36  ;;  %2087 = vadd.xlane.f32.xlu1 %v2086_v30  ;;  %v2498_v57 = vor.u32 1.1754944e-38, %v2497_v9  ;;  %v5041_v30 = vld [vmem:[#allocation13_spill] sm:$0xff] }
 0x41e   : > { %v390_v9 = vld [vmem:[%s4992_s3 + $0xd8] sm:$0xff] }
 0x41f   : > { %v2382_v60 = vsel %vm2381_vm13, %v2355_v36, %v2380_v23  ;;  %vm2436_vm13 = vcmp.eq.f32.partialorder %v2435_v15, 8.507059e+37  ;;  %v2438_v36 = vor.u32 1.1754944e-38, %v2437_v40  ;;  %v391_v15 = vld [vmem:[%s4992_s3 + $0xe0] sm:$0xff] }
 0x420   : > { %v2385_v38 = vsel %vm2383_vm14, %v2384_v10, %v2382_v60  ;;  %v3186_v5 = vpop.eup %3185  ;;  %vm2496_vm14 = vcmp.eq.f32.partialorder %v2495_v46, 8.507059e+37 }
 0x421   : > { %v4460_v41 = vadd.f32 1e-15, %v2385_v38  ;;  %v2487_v0 = vmul.f32 %v3186_v5, %v2410_v28  ;;  %vm2492_vm15 = vweird.f32 %v3186_v5 }
 0x422   : > { %v3188_v14 = vpop.eup %3187  ;;  %vm4468_vm11 = vmor %vm2491_vm5, %vm2492_vm15 }
 0x423   : > { %3189 = vrcp.f32 %v4460_v41  ;;  %v2419_v1 = vperm.slane %v4460_v41, %v4118_v20  ;;  %v2427_v22 = vmul.f32 %v3188_v14, %v2418_v6  ;;  %v2488_v18 = vsub.f32 1.0, %v2487_v0 }
 0x424   : > { %vm2432_vm2 = vweird.f32 %v3188_v14  ;;  %vm2506_vm5 = vweird.f32 %v4460_v41  ;;  %v2512_v47 = vand.u32 2147483648, %v4460_v41  ;;  %v2510_v26 = vand.u32 2147483647, %v4460_v41 }
 0x425   : > { %2081 = vadd.xlane.f32.xlu1 %v2080_v25  ;;  %3191 = vrcp.f32 %v2419_v1  ;;  %v2428_v31 = vsub.f32 1.0, %v2427_v22  ;;  %v2489_v49 = vmul.f32 %v3186_v5, %v2488_v18  ;;  %vm2433_vm12 = vmor %vm2431_vm7, %vm2432_vm2  ;;  %v2450_v42 = vand.u32 2147483647, %v2419_v1  ;;  %v394_v25 = vld [vmem:[%s4992_s3 + $0xf8] sm:$0xff]  ;;  %v393_v22 = vld [vmem:[%s4992_s3 + $0xf0] sm:$0xff] }
 0x426   : > { %v2452_v45 = vand.u32 2147483648, %v2419_v1  ;;  %vm2446_vm7 = vweird.f32 %v2419_v1  ;;  %v2513_v6 = vor.u32 1.1754944e-38, %v2512_v47 }
 0x427   : > { %v2429_v59 = vmul.f32 %v3188_v14, %v2428_v31  ;;  %v2490_v24 = vadd.f32 %v3186_v5, %v2489_v49  ;;  %v392_v31 = vld [vmem:[%s4992_s3 + $0xe8] sm:$0xff]  ;;  %v2191_v49 = vpop.xlane.xlu1 %2190 }
 0x428   : > { %v2453_v28 = vor.u32 1.1754944e-38, %v2452_v45 }
 0x429   : > { %v3190_v13 = vpop.eup %3189  ;;  %v2430_v52 = vadd.f32 %v3188_v14, %v2429_v59  ;;  %v2494_v3 = vsel %vm4468_vm11, %v3186_v5, %v2490_v24 }
 0x42a   : > { %v2502_v4 = vmul.f32 %v3190_v13, %v4460_v41  ;;  %v2499_v19 = vsel %vm2496_vm14, %v2498_v57, %v2494_v3  ;;  %vm2507_vm15 = vweird.f32 %v3190_v13  ;;  %vm2511_vm14 = vcmp.eq.f32.partialorder %v2510_v26, 8.507059e+37  ;;  %v384_v26 = vld [vmem:[%s4992_s3 + $0xa8] sm:$0xff] }
 0x42b   : > { %v3192_v54 = vpop.eup %3191  ;;  %v2434_v33 = vsel %vm2433_vm12, %v3188_v14, %v2430_v52  ;;  %vm2508_vm11 = vmor %vm2506_vm5, %vm2507_vm15  ;;  %v389_v52 = vld [vmem:[%s4992_s3 + $0xd0] sm:$0xff]  ;;  %vm5010_vm5 = vcmask 11264  }
 0x42c   : > { %v2442_v55 = vmul.f32 %v3192_v54, %v2419_v1  ;;  %v2503_v16 = vsub.f32 1.0, %v2502_v4  ;;  %v2439_v21 = vsel %vm2436_vm13, %v2438_v36, %v2434_v33  ;;  %vm2447_vm2 = vweird.f32 %v3192_v54  ;;  %v388_v4 = vld [vmem:[%s4992_s3 + $0xc8] sm:$0xff] }
 0x42d   : > { %2093 = vadd.xlane.f32.xlu1 %v2092_v7  ;;  %v2440_v11 = vmul.f32 %v2439_v21, %v5040_v61  ;;  %vm2448_vm12 = vmor %vm2446_vm7, %vm2447_vm2  ;;  %vm2451_vm13 = vcmp.eq.f32.partialorder %v2450_v42, 8.507059e+37 }
 0x42e   : > { %v2443_v63 = vsub.f32 1.0, %v2442_v55  ;;  %v2504_v53 = vmul.f32 %v3190_v13, %v2503_v16  ;;  %v387_v55 = vld [vmem:[%s4992_s3 + $0xc0] sm:$0xff]  ;;  %v2205_v16 = vperm.slane %v2191_v49, %v4118_v20 }
 0x42f   : > { %v2500_v29 = vmul.f32 %v2499_v19, %v2440_v11 }
 0x430   : > { %v2444_v39 = vmul.f32 %v3192_v54, %v2443_v63  ;;  %v2505_v35 = vadd.f32 %v3190_v13, %v2504_v53 }
 0x431   : > { %3043 = vmatmul.msk.f32.vlgmr.msra.gmra.mxu2 %vm890_vm3, %v2500_v29  ;;  %v2848_v38 = vrot.slane %v2500_v29, 1 }
 0x432   : > { %v2445_v34 = vadd.f32 %v3192_v54, %v2444_v39  ;;  %v2509_v27 = vsel %vm2508_vm11, %v3190_v13, %v2505_v35  ;;  %v385_v39 = vld [vmem:[%s4992_s3 + $0xb0] sm:$0xff] }
 0x433   : > { %v2514_v10 = vsel %vm2511_vm14, %v2513_v6, %v2509_v27 }
 0x434   : > { %v2449_v56 = vsel %vm2448_vm12, %v3192_v54, %v2445_v34 }
 0x435   : > { %v2454_v37 = vsel %vm2451_vm13, %v2453_v28, %v2449_v56  ;;  %v383_v56 = vld [vmem:[%s4992_s3 + $0xa0] sm:$0xff] }
 0x436   : > { %v2455_v23 = vmul.f32 %v2454_v37, %v5041_v30  ;;  %v5042_v30 = vld [vmem:[#allocation6_spill] sm:$0xff] }
 0x438   : > { %v2515_v60 = vmul.f32 %v2514_v10, %v2455_v23  ;;  %v2200_v54 = vpop.xlane.xlu1 %2199  ;;  %v2031_v23 = vmul.f32 %v5042_v30, %v5042_v30 }
 0x439   : > { %v2208_v11 = vperm.slane %v2200_v54, %v4118_v20  ;;  %v5043_v54 = vld [vmem:[#allocation7_spill] sm:$0xff] }
 0x43a   : > { %3045 = vmatmul.msk.f32.vlgmr.msra.gmra.mxu3 %vm890_vm3, %v2515_v60  ;;  %v4484_v50 = vsel %vm1972_vm8, %v2515_v60, %v2848_v38  ;;  %v2841_v5 = vrot.slane %v2515_v60, 7 }
 0x43b   : > { %2761 = vmatpush.msra.mxu3 %v394_v25  ;;  %v381_v25 = vld [vmem:[%s4992_s3 + $0x90] sm:$0xff] }
 0x43c   : > { %v4487_v41 = vsel %vm1972_vm8, %v2841_v5, %v2500_v29  ;;  %v386_v29 = vld [vmem:[%s4992_s3 + $0xb8] sm:$0xff] }
 0x43d   : > { %2762 = vmatpush.msra.mxu3 %v393_v22 }
 0x43f   : > { %2763 = vmatpush.msra.mxu3 %v392_v31  ;;  %v2047_v31 = vsel %vm890_vm3, %v2031_v23, 0.0 }
 0x440   : > { %v2358_v0 = vpop.xlane.xlu2 %2357 }
 0x441   : > { %3193 = vrsqrt.f32 %v2358_v0  ;;  %2764 = vmatpush.msra.mxu3 %v391_v15  ;;  %vm2393_vm15 = vcmp.eq.f32.partialorder %v2358_v0, inf  ;;  %v2396_v46 = vand.u32 2147483648, %v2358_v0  ;;  %vm2395_vm2 = vcmp.eq.f32.partialorder %v2358_v0, 0.0  ;;  %v380_v15 = vld [vmem:[%s4992_s3 + $0x88] sm:$0xff] }
 0x443   : > { %2765 = vmatpush.msra.mxu3 %v390_v9 }
 0x445   : > { %2766 = vmatpush.msra.mxu3 %v389_v52  ;;  %v379_v52 = vld [vmem:[%s4992_s3 + $0x80] sm:$0xff] }
 0x447   : > { %v3194_v14 = vpop.eup %3193  ;;  %2767 = vmatpush.msra.mxu3 %v388_v4 }
 0x448   : > { %v2387_v1 = vmul.f32 %v3194_v14, %v2358_v0  ;;  %v2194_v13 = vpop.xlane.xlu2 %2193 }
 0x449   : > { %v2206_v36 = vperm.slane %v2194_v13, %v4118_v20  ;;  %2768 = vmatpush.msra.mxu3 %v387_v55 }
 0x44a   : > { %v2388_v18 = vmul.f32 %v3194_v14, %v2387_v1  ;;  %v382_v1 = vld [vmem:[%s4992_s3 + $0x98] sm:$0xff] }
 0x44b   : > { %v2209_v53 = vsel %vm1972_vm8, %v2206_v36, %v2205_v16  ;;  %2769 = vmatpush.msra.mxu3 %v386_v29 }
 0x44c   : > { %v2389_v32 = vmul.f32 0.5, %v2388_v18 }
 0x44d   : > { %2770 = vmatpush.msra.mxu3 %v385_v39 }
 0x44e   : > { %v2390_v40 = vsub.f32 1.5, %v2389_v32  ;;  %v4501_v59 = vpop.xlane.xlu0 %2360 }
 0x44f   : > { %3195 = vrsqrt.f32 %v4501_v59  ;;  %2771 = vmatpush.msra.mxu3 %v384_v26  ;;  %vm2405_vm7 = vcmp.eq.f32.partialorder %v4501_v59, inf  ;;  %v2408_v5 = vand.u32 2147483648, %v4501_v59  ;;  %vm2407_vm11 = vcmp.eq.f32.partialorder %v4501_v59, 0.0 }
 0x450   : > { %v2391_v24 = vmul.f32 %v3194_v14, %v2390_v40 }
 0x451   : > { %2772 = vmatpush.msra.mxu3 %v383_v56  ;;  %v3248_v56 = vld [vmem:[%s3337_s10 + $0x48] sm:$0xff] }
 0x452   : > { %v2392_v17 = vmul.f32 %v2391_v24, %v2358_v0 }
 0x453   : > { %2773 = vmatpush.msra.mxu3 %v382_v1 }
 0x454   : > { %v2394_v7 = vsel %vm2393_vm15, %v2358_v0, %v2392_v17 }
 0x455   : > { %v3196_v33 = vpop.eup %3195  ;;  %v2397_v3 = vsel %vm2395_vm2, %v2396_v46, %v2394_v7  ;;  %2774 = vmatpush.msra.mxu3 %v381_v25  ;;  %v2036_v7 = vmul.f32 %v5043_v54, %v5043_v54 }
 0x456   : > { %v4518_v21 = vadd.f32 1e-15, %v2397_v3  ;;  %v2399_v57 = vmul.f32 %v3196_v33, %v4501_v59  ;;  %v2197_v61 = vpop.xlane.xlu0 %2196 }
 0x457   : > { %v2207_v63 = vperm.slane %v2197_v61, %v4118_v20  ;;  %2775 = vmatpush.msra.mxu3 %v380_v15 }
 0x458   : > { %3197 = vrcp.f32 %v4518_v21  ;;  %v2400_v19 = vmul.f32 %v3196_v33, %v2399_v57  ;;  %v4527_v42 = vperm.slane %v4518_v21, %v4118_v20  ;;  %vm2521_vm14 = vweird.f32 %v4518_v21 }
 0x459   : > { %v2210_v45 = vsel %vm1974_vm9, %v2207_v63, %v2209_v53  ;;  %v2527_v46 = vand.u32 2147483648, %v4518_v21  ;;  %v2525_v3 = vand.u32 2147483647, %v4518_v21  ;;  %2776 = vmatpush.msra.mxu3 %v379_v52  ;;  %v2062_v63 = vsel %vm890_vm3, %v2036_v7, 0.0 }
 0x45a   : > { %v2401_v35 = vmul.f32 0.5, %v2400_v19  ;;  %v2211_v47 = vsel %vm1976_vm10, %v2208_v11, %v2210_v45  ;;  %3199 = vrcp.f32 %v4527_v42  ;;  %v2467_v24 = vand.u32 2147483648, %v4527_v42 }
 0x45b   : > { %v2213_v34 = vsel %vm5010_vm5, %v2211_v47, 0.0  ;;  %vm2461_vm15 = vweird.f32 %v4527_v42  ;;  %v2528_v11 = vor.u32 1.1754944e-38, %v2527_v46 }
 0x45c   : > { %v2402_v28 = vsub.f32 1.5, %v2401_v35  ;;  %2214 = vadd.xlane.f32.xlu2 %v2213_v34  ;;  %v2468_v55 = vor.u32 1.1754944e-38, %v2467_v24 }
 0x45e   : > { %v3198_v27 = vpop.eup %3197  ;;  %v2403_v37 = vmul.f32 %v3196_v33, %v2402_v28  ;;  %v4545_v6 = vpop.xlane.xlu0 %1959 }
 0x45f   : > { %v2517_v10 = vmul.f32 %v3198_v27, %v4518_v21  ;;  %vm2522_vm12 = vweird.f32 %v3198_v27  ;;  %v4594_v21 = vpop.xlane.xlu1 %1953 }
 0x460   : > { %v3200_v60 = vpop.eup %3199  ;;  %v2404_v38 = vmul.f32 %v2403_v37, %v4501_v59  ;;  %vm4584_vm2 = vmor %vm2521_vm14, %vm2522_vm12  ;;  %vm2526_vm12 = vcmp.eq.f32.partialorder %v2525_v3, 8.507059e+37  ;;  %v3250_v3 = vld [vmem:[%s3337_s10 + $0x38] sm:$0xff] }
 0x461   : > { %v2457_v0 = vmul.f32 %v3200_v60, %v4527_v42  ;;  %v2518_v14 = vsub.f32 1.0, %v2517_v10  ;;  %vm2462_vm13 = vweird.f32 %v3200_v60 }
 0x462   : > { %v2406_v22 = vsel %vm2405_vm7, %v4501_v59, %v2404_v38  ;;  %v2465_v59 = vand.u32 2147483647, %v4527_v42  ;;  %vm2463_vm7 = vmor %vm2461_vm15, %vm2462_vm13 }
 0x463   : > { %v2409_v18 = vsel %vm2407_vm11, %v2408_v5, %v2406_v22  ;;  %v2458_v49 = vsub.f32 1.0, %v2457_v0  ;;  %v2519_v32 = vmul.f32 %v3198_v27, %v2518_v14  ;;  %v5048_v22 = vld [vmem:[#allocation9_spill] sm:$0xff] }
 0x464   : > { %v4566_v40 = vadd.f32 1e-15, %v2409_v18  ;;  %2048 = vadd.xlane.f32.xlu2 %v2047_v31  ;;  %vm2466_vm11 = vcmp.eq.f32.partialorder %v2465_v59, 8.507059e+37  ;;  %v2039_v18 = vmul.f32 %v5048_v22, %v5048_v22 }
 0x465   : > { %v2459_v13 = vmul.f32 %v3200_v60, %v2458_v49  ;;  %v2520_v9 = vadd.f32 %v3198_v27, %v2519_v32 }
 0x466   : > { %3201 = vrcp.f32 %v4566_v40  ;;  %v4574_v17 = vpop.xlane.xlu0 %1984  ;;  %v2421_v4 = vperm.slane %v4566_v40, %v4118_v20  ;;  %vm2536_vm15 = vweird.f32 %v4566_v40  ;;  %v2542_v0 = vand.u32 2147483648, %v4566_v40 }
 0x467   : > { %v2460_v36 = vadd.f32 %v3200_v60, %v2459_v13  ;;  %v2524_v57 = vsel %vm4584_vm2, %v3198_v27, %v2520_v9  ;;  %v1988_v25 = vpop.xlane.xlu1 %1987  ;;  %v2071_v46 = vsel %vm890_vm3, %v2039_v18, 0.0 }
 0x468   : > { %3203 = vrcp.f32 %v2421_v4  ;;  %v2529_v42 = vsel %vm2526_vm12, %v2528_v11, %v2524_v57  ;;  %v2482_v30 = vand.u32 2147483648, %v2421_v4  ;;  %v2480_v38 = vand.u32 2147483647, %v2421_v4  ;;  %v3251_v11 = vld [vmem:[%s3337_s10 + $0x68] sm:$0xff] }
 0x469   : > { %v2464_v16 = vsel %vm2463_vm7, %v3200_v60, %v2460_v36  ;;  %vm2476_vm2 = vweird.f32 %v2421_v4  ;;  %v2543_v13 = vor.u32 1.1754944e-38, %v2542_v0 }
 0x46a   : > { %v2469_v61 = vsel %vm2466_vm11, %v2468_v55, %v2464_v16  ;;  %v2483_v31 = vor.u32 1.1754944e-38, %v2482_v30  ;;  %vm2481_vm12 = vcmp.eq.f32.partialorder %v2480_v38, 8.507059e+37  ;;  %v2004_v55 = vsel %vm5012_vm0, %v3250_v3, 0.0  ;;  %v1957_v16 = vpop.xlane.xlu2 %1956 }
 0x46b   : > { %v2470_v53 = vmul.f32 %v2469_v61, %v4390_v43  ;;  %v2010_v43 = vsel %vm5012_vm0, %v3248_v56, 0.0  ;;  %v1969_v57 = vperm.slane %v1957_v16, %v4118_v20  ;;  %v1970_v61 = vperm.slane %v4545_v6, %v4118_v20  ;;  %v5049_v6 = vld [vmem:[#allocation8_spill] sm:$0xff] }
 0x46c   : > { %v3202_v19 = vpop.eup %3201  ;;  %2063 = vadd.xlane.f32.xlu2 %v2062_v63  ;;  %v2022_v63 = vsel %vm5012_vm0, %v3251_v11, 0.0  ;;  %v4656_v30 = vadd.s32 4294967288, %v4118_v20 }
 0x46d   : > { %v2530_v45 = vmul.f32 %v2529_v42, %v2470_v53  ;;  %v2532_v29 = vmul.f32 %v3202_v19, %v4566_v40  ;;  %vm2537_vm13 = vweird.f32 %v3202_v19  ;;  %v1968_v53 = vperm.slane %v4594_v21, %v4118_v20  ;;  %v3252_v21 = vld [vmem:[%s3337_s10 + $0x58] sm:$0xff] }
 0x46e   : > { %v3204_v39 = vpop.eup %3203  ;;  %v4597_v35 = vpop.xlane.xlu0 %1996  ;;  %vm4608_vm7 = vmor %vm2536_vm15, %vm2537_vm13 }
 0x46f   : > { %3047 = vmatmul.msk.f32.vlgmr.msrb.gmra.mxu2 %vm890_vm3, %v2530_v45  ;;  %v2472_v47 = vmul.f32 %v3204_v39, %v2421_v4  ;;  %v2533_v34 = vsub.f32 1.0, %v2532_v29  ;;  %v2850_v26 = vrot.slane %v2530_v45, 7  ;;  %v2843_v28 = vrot.slane %v2530_v45, 6  ;;  %v2000_v33 = vpop.xlane.xlu1 %1999 }
 0x470   : > { %vm2477_vm14 = vweird.f32 %v3204_v39  ;;  %v1973_v42 = vsel %vm1972_vm8, %v1969_v57, %v1968_v53  ;;  %v372_v53 = vld [vmem:[%s4992_s3 + $0x48] sm:$0xff] }
 0x471   : > { %v2473_v27 = vsub.f32 1.0, %v2472_v47  ;;  %v2534_v37 = vmul.f32 %v3202_v19, %v2533_v34  ;;  %v2851_v23 = vsel %vm1974_vm9, %v2850_v26, %v4484_v50  ;;  %v2844_v10 = vsel %vm1974_vm9, %v2843_v28, %v4487_v41  ;;  %vm2478_vm11 = vmor %vm2476_vm2, %vm2477_vm14 }
 0x472   : > { %v2540_v50 = vand.u32 2147483647, %v4566_v40  ;;  %v3249_v40 = vld [vmem:[%s3337_s10 + $0x50] sm:$0xff]  ;;  %v1975_v45 = vsel %vm1974_vm9, %v1970_v61, %v1973_v42  ;;  %v2041_v47 = vmul.f32 %v5049_v6, %v5049_v6  ;;  %v2016_v26 = vsel %vm5012_vm0, %v3252_v21, 0.0  ;;  %v371_v21 = vld [vmem:[%s4992_s3 + $0x40] sm:$0xff] }
 0x473   : > { %v2474_v60 = vmul.f32 %v3204_v39, %v2473_v27  ;;  %v2535_v5 = vadd.f32 %v3202_v19, %v2534_v37  ;;  %v2013_v9 = vsel %vm5012_vm0, %v3249_v40, 0.0  ;;  %v2045_v28 = vmul.f32 %v3966_v51, %v3966_v51  ;;  %v373_v61 = vld [vmem:[%s4992_s3 + $0x50] sm:$0xff] }
 0x474   : > { %2011 = vadd.xlane.f32.xlu2 %v2010_v43  ;;  %vm2541_vm13 = vcmp.eq.f32.partialorder %v2540_v50, 8.507059e+37  ;;  %2014 = vadd.xlane.f32.xlu0 %v2013_v9  ;;  %v2077_v34 = vsel %vm890_vm3, %v2041_v47, 0.0  ;;  %v4653_v43 = vpop.xlane.xlu2 %1990  ;;  %vm5011_vm14 = vcmask 130112  }
 0x475   : > { %v2475_v14 = vadd.f32 %v3204_v39, %v2474_v60  ;;  %v2539_v15 = vsel %vm4608_vm7, %v3202_v19, %v2535_v5  ;;  %v2089_v56 = vsel %vm890_vm3, %v2045_v28, 0.0 }
 0x476   : > { %v2052_v41 = vpop.xlane.xlu0 %2051  ;;  %v2544_v52 = vsel %vm2541_vm13, %v2543_v13, %v2539_v15  ;;  %v376_v13 = vld [vmem:[%s4992_s3 + $0x68] sm:$0xff] }
 0x477   : > { %v4615_v49 = vmul.f32 %v2052_v41, %v1988_v25  ;;  %v2479_v32 = vsel %vm2478_vm11, %v3204_v39, %v2475_v14  ;;  %v1963_v19 = vpop.xlane.xlu1 %1962 }
 0x478   : > { %v2484_v24 = vsel %vm2481_vm12, %v2483_v31, %v2479_v32 }
 0x479   : > { %v2485_v59 = vmul.f32 %v2484_v24, %v4406_v12  ;;  %v2129_v51 = vperm.slane %v4615_v49, %v4656_v30  ;;  %v377_v49 = vld [vmem:[%s4992_s3 + $0x70] sm:$0xff] }
 0x47b   : > { %v2545_v4 = vmul.f32 %v2544_v52, %v2485_v59 }
 0x47c   : > { %2072 = vadd.xlane.f32.xlu2 %v2071_v46 }
 0x47d   : > { %3049 = vmatmul.msk.f32.vlgmr.msrb.gmra.mxu3 %vm890_vm3, %v2545_v4  ;;  %v2852_v54 = vrot.slane %v2545_v4, 6  ;;  %v2845_v7 = vrot.slane %v2545_v4, 5  ;;  %v375_v4 = vld [vmem:[%s4992_s3 + $0x60] sm:$0xff] }
 0x47f   : > { %v4625_v36 = vsel %vm1976_vm10, %v2852_v54, %v2851_v23  ;;  %v4628_v12 = vsel %vm1976_vm10, %v2845_v7, %v2844_v10  ;;  %v2061_v1 = vpop.xlane.xlu1 %2060 }
 0x480   : > { %v2099_v25 = vmul.f32 %v2061_v1, %v4597_v35 }
 0x482   : > { %v2140_v15 = vperm.slane %v2099_v25, %v4118_v20  ;;  %v368_v25 = vld [vmem:[%s4992_s3 + $0x28] sm:$0xff] }
 0x484   : > { %2005 = vadd.xlane.f32.xlu2 %v2004_v55  ;;  %v374_v55 = vld [vmem:[%s4992_s3 + $0x58] sm:$0xff] }
 0x485   : > { %2777 = vmatmul.f32.vlgmr.msra.gmra.mxu3 %v4397_v58  ;;  %v1971_v58 = vperm.slane %v1963_v19, %v4118_v20 }
 0x487   : > { %v1977_v29 = vsel %vm1976_vm10, %v1971_v58, %v1975_v45 }
 0x488   : > { %v1980_v39 = vsel %vm5010_vm5, %v1977_v29, 0.0 }
 0x48c   : > { %2023 = vadd.xlane.f32.xlu2 %v2022_v63 }
 0x494   : > { %1981 = vadd.xlane.f32.xlu2 %v1980_v39 }
 0x49c   : > { %2078 = vadd.xlane.f32.xlu2 %v2077_v34  ;;  %v4716_v34 = vmul.f32 0.70710677, %v4140_v2 }
 0x4a4   : > { %2017 = vadd.xlane.f32.xlu2 %v2016_v26  ;;  %v370_v26 = vld [vmem:[%s4992_s3 + $0x38] sm:$0xff] }
 0x4ac   : > { %2090 = vadd.xlane.f32.xlu2 %v2089_v56 }
 0x4b4   : > { %v2570_v9 = vpop.f32.mrf.mxu2 }
 0x4b5   : > { %v2651_v16 = vsel %vm2549_vm4, %v2570_v9, 0.0 }
 0x4b6   : > { %v2652_v11 = vrot.slane %v2651_v16, 4 }
 0x4b8   : > { %v4711_v39 = vadd.f32 %v2652_v11, %v2651_v16 }
 0x4bd   : > { %v2596_v18 = vpop.f32.mrf.mxu3 }
 0x4be   : > { %v2658_v59 = vsel %vm2549_vm4, %v2596_v18, 0.0 }
 0x4bf   : > { %v2659_v3 = vrot.slane %v2658_v59, 4 }
 0x4c1   : > { %v4702_v63 = vadd.f32 %v2659_v3, %v2658_v59 }
 0x4c3   : > { %v2661_v6 = vrot.slane %v4702_v63, 2 }
 0x4cf   : > { %v2215_v27 = vpop.xlane.xlu2 %2214 }
 0x4d0   : > { %3205 = vrsqrt.f32 %v2215_v27  ;;  %vm2223_vm15 = vcmp.eq.f32.partialorder %v2215_v27, inf  ;;  %v2226_v24 = vand.u32 2147483648, %v2215_v27  ;;  %vm2225_vm2 = vcmp.eq.f32.partialorder %v2215_v27, 0.0 }
 0x4d6   : > { %v3206_v37 = vpop.eup %3205 }
 0x4d7   : > { %v2217_v23 = vmul.f32 %v3206_v37, %v2215_v27  ;;  %v2049_v10 = vpop.xlane.xlu2 %2048 }
 0x4d8   : > { %v2095_v60 = vmul.f32 %v2049_v10, %v4574_v17  ;;  %v378_v17 = vld [vmem:[%s4992_s3 + $0x78] sm:$0xff]  ;;  %v369_v10 = vld [vmem:[%s4992_s3 + $0x30] sm:$0xff] }
 0x4d9   : > { %v2218_v38 = vmul.f32 %v3206_v37, %v2217_v23  ;;  %2741 = vmatpush.msra.mxu2 %v378_v17 }
 0x4da   : > { %v2127_v5 = vperm.slane %v2095_v60, %v4118_v20 }
 0x4db   : > { %v2219_v0 = vmul.f32 0.5, %v2218_v38  ;;  %2742 = vmatpush.msra.mxu2 %v377_v49 }
 0x4dc   : > { %v4663_v14 = vsel %vm5011_vm14, %v2129_v51, %v2127_v5 }
 0x4dd   : > { %v2220_v50 = vsub.f32 1.5, %v2219_v0  ;;  %2743 = vmatpush.msra.mxu2 %v376_v13 }
 0x4df   : > { %v2221_v41 = vmul.f32 %v3206_v37, %v2220_v50  ;;  %v2064_v22 = vpop.xlane.xlu2 %2063  ;;  %2744 = vmatpush.msra.mxu2 %v375_v4  ;;  %v366_v4 = vld [vmem:[%s4992_s3 + $0x18] sm:$0xff]  ;;  %v363_v37 = vld [vmem:[%s4992_s3] sm:$0xff] }
 0x4e0   : > { %v2100_v31 = vmul.f32 %v2064_v22, %v2000_v33 }
 0x4e1   : > { %v2222_v32 = vmul.f32 %v2221_v41, %v2215_v27  ;;  %2745 = vmatpush.msra.mxu2 %v374_v55 }
 0x4e2   : > { %v2141_v35 = vperm.slane %v2100_v31, %v4656_v30 }
 0x4e3   : > { %v2224_v40 = vsel %vm2223_vm15, %v2215_v27, %v2222_v32  ;;  %2746 = vmatpush.msra.mxu2 %v373_v61 }
 0x4e4   : > { %v2227_v52 = vsel %vm2225_vm2, %v2226_v24, %v2224_v40  ;;  %v4679_v46 = vsel %vm5011_vm14, %v2141_v35, %v2140_v15  ;;  %v367_v35 = vld [vmem:[%s4992_s3 + $0x20] sm:$0xff] }
 0x4e5   : > { %v4684_v54 = vperm.slane %v2227_v52, 2  ;;  %v4686_v7 = vperm.slane %v2227_v52, 0  ;;  %v4688_v33 = vperm.slane %v2227_v52, 3  ;;  %v4695_v57 = vperm.slane %v2227_v52, 1  ;;  %2747 = vmatpush.msra.mxu2 %v372_v53 }
 0x4e7   : > { %3207 = vrcp.f32 %v4684_v54  ;;  %v2276_v19 = vand.u32 2147483647, %v4684_v54  ;;  %v2278_v42 = vand.u32 2147483648, %v4684_v54  ;;  %v2246_v58 = vand.u32 2147483647, %v4686_v7  ;;  %2748 = vmatpush.msra.mxu2 %v371_v21 }
 0x4e8   : > { %3209 = vrcp.f32 %v4686_v7  ;;  %vm2272_vm7 = vweird.f32 %v4684_v54  ;;  %vm2242_vm11 = vweird.f32 %v4686_v7  ;;  %v2248_v27 = vand.u32 2147483648, %v4686_v7 }
 0x4e9   : > { %3211 = vrcp.f32 %v4688_v33  ;;  %vm4730_vm12 = vcmp.eq.f32.partialorder %v2276_v19, 8.507059e+37  ;;  %v2279_v23 = vor.u32 1.1754944e-38, %v2278_v42  ;;  %vm4741_vm13 = vcmp.eq.f32.partialorder %v2246_v58, 8.507059e+37  ;;  %2749 = vmatpush.msra.mxu2 %v370_v26  ;;  %v365_v19 = vld [vmem:[%s4992_s3 + $0x10] sm:$0xff] }
 0x4ea   : > { %3213 = vrcp.f32 %v4695_v57  ;;  %vm2287_vm15 = vweird.f32 %v4688_v33  ;;  %v2291_v0 = vand.u32 2147483647, %v4688_v33  ;;  %v2249_v17 = vor.u32 1.1754944e-38, %v2248_v27  ;;  %v5054_v42 = vld [vmem:[#allocation12_spill] sm:$0xff] }
 0x4eb   : > { %2750 = vmatpush.msra.mxu2 %v369_v10  ;;  %v2293_v24 = vand.u32 2147483648, %v4688_v33  ;;  %v2261_v40 = vand.u32 2147483647, %v4695_v57  ;;  %v2654_v27 = vrot.slane %v4711_v39, 2 }
 0x4ed   : > { %v3208_v45 = vpop.eup %3207  ;;  %2751 = vmatpush.msra.mxu2 %v368_v25  ;;  %v2294_v53 = vor.u32 1.1754944e-38, %v2293_v24 }
 0x4ee   : > { %v3210_v29 = vpop.eup %3209  ;;  %v2268_v47 = vmul.f32 %v3208_v45, %v4684_v54  ;;  %vm2273_vm2 = vweird.f32 %v3208_v45  ;;  %v2263_v54 = vand.u32 2147483648, %v4695_v57 }
 0x4ef   : > { %v4724_v28 = vpop.eup %3211  ;;  %v2238_v56 = vmul.f32 %v3210_v29, %v4686_v7  ;;  %vm2243_vm1 = vweird.f32 %v3210_v29  ;;  %vm2274_vm5 = vmor %vm2272_vm7, %vm2273_vm2  ;;  %2752 = vmatpush.msra.mxu2 %v367_v35  ;;  %vm5059_vm2 = vcmask 130112  }
 0x4f0   : > { %v2269_v2 = vsub.f32 1.0, %v2268_v47  ;;  %v2283_v60 = vmul.f32 %v4724_v28, %v4688_v33  ;;  %v4739_v38 = vpop.eup %3213  ;;  %vm2288_vm14 = vweird.f32 %v4724_v28  ;;  %vm2244_vm0 = vmor %vm2242_vm11, %vm2243_vm1  ;;  %v364_v33 = vld [vmem:[%s4992_s3 + $0x8] sm:$0xff]  ;;  %vm2262_vm11 = vcmp.eq.f32.partialorder %v2261_v40, 8.507059e+37 }
 0x4f1   : > { %v2239_v51 = vsub.f32 1.0, %v2238_v56  ;;  %v2253_v22 = vmul.f32 %v4739_v38, %v4695_v57  ;;  %vm2258_vm7 = vweird.f32 %v4739_v38  ;;  %vm2289_vm1 = vmor %vm2287_vm15, %vm2288_vm14  ;;  %2753 = vmatpush.msra.mxu2 %v366_v4  ;;  %vm2138_vm15 = vcmask 261312  }
 0x4f2   : > { %v2622_v1 = vpop.f32.mrf.mxu2  ;;  %v2270_v50 = vmul.f32 %v3208_v45, %v2269_v2  ;;  %v2284_v41 = vsub.f32 1.0, %v2283_v60 }
 0x4f3   : > { %v2665_v18 = vsel %vm2549_vm4, %v2622_v1, 0.0  ;;  %v2240_v31 = vmul.f32 %v3210_v29, %v2239_v51  ;;  %v2254_v59 = vsub.f32 1.0, %v2253_v22  ;;  %2754 = vmatpush.msra.mxu2 %v365_v19  ;;  %v2662_v51 = vadd.f32 %v2661_v6, %v4702_v63  ;;  %v410_v1 = vld [vmem:[%s4992_s3 + $0x178] sm:$0xff] }
 0x4f4   : > { %v2666_v49 = vrot.slane %v2665_v18, 4  ;;  %v2271_v32 = vadd.f32 %v3208_v45, %v2270_v50  ;;  %v2285_v15 = vmul.f32 %v4724_v28, %v2284_v41  ;;  %v2655_v63 = vadd.f32 %v2654_v27, %v4711_v39  ;;  %2784 = vmatpush.msra.mxu0 %v410_v1  ;;  %v408_v41 = vld [vmem:[%s4992_s3 + $0x168] sm:$0xff] }
 0x4f5   : > { %v2241_v13 = vadd.f32 %v3210_v29, %v2240_v31  ;;  %v2255_v61 = vmul.f32 %v4739_v38, %v2254_v59  ;;  %2755 = vmatpush.msra.mxu2 %v364_v33  ;;  %v2663_v22 = vrot.slane %v2662_v51, 1  ;;  %v405_v59 = vld [vmem:[%s4992_s3 + $0x150] sm:$0xff]  ;;  %v395_v33 = vld [vmem:[%s4992_s3 + $0x100] sm:$0xff]  ;;  %v437_v27 = vld [vmem:[%s4993_s4 + $0xa8] sm:$0xff] }
 0x4f6   : > { %v2275_v9 = vsel %vm2274_vm5, %v3208_v45, %v2271_v32  ;;  %v2286_v52 = vadd.f32 %v4724_v28, %v2285_v15  ;;  %v2667_v3 = vadd.f32 %v2666_v49, %v2665_v18  ;;  %vm2292_vm5 = vcmp.eq.f32.partialorder %v2291_v0, 8.507059e+37  ;;  %v406_v32 = vld [vmem:[%s4992_s3 + $0x158] sm:$0xff] }
 0x4f7   : > { %v2280_v55 = vsel %vm4730_vm12, %v2279_v23, %v2275_v9  ;;  %v2245_v16 = vsel %vm2244_vm0, %v3210_v29, %v2241_v13  ;;  %vm2257_vm0 = vweird.f32 %v4695_v57  ;;  %v2264_v57 = vor.u32 1.1754944e-38, %v2263_v54  ;;  %2756 = vmatpush.msra.mxu2 %v363_v37  ;;  %v435_v37 = vld [vmem:[%s4993_s4 + $0x88] sm:$0xff] }
 0x4f8   : > { %v2281_v7 = vmul.f32 %v2280_v55, %v4387_v44  ;;  %v2250_v11 = vsel %vm4741_vm13, %v2249_v17, %v2245_v16  ;;  %v2290_v58 = vsel %vm2289_vm1, %v4724_v28, %v2286_v52  ;;  %v2256_v44 = vadd.f32 %v4739_v38, %v2255_v61  ;;  %vm2259_vm14 = vmor %vm2257_vm0, %vm2258_vm7  ;;  %v404_v52 = vld [vmem:[%s4992_s3 + $0x148] sm:$0xff]  ;;  %v403_v55 = vld [vmem:[%s4992_s3 + $0x140] sm:$0xff] }
 0x4f9   : > { %v2251_v45 = vmul.f32 %v2250_v11, %v5054_v42  ;;  %v2295_v47 = vsel %vm2292_vm5, %v2294_v53, %v2290_v58  ;;  %v2668_v21 = vrot.slane %v2667_v3, 2  ;;  %v2656_v49 = vrot.slane %v2655_v63, 1  ;;  %v400_v58 = vld [vmem:[%s4992_s3 + $0x128] sm:$0xff]  ;;  %vm5060_vm7 = vmmov %vm5059_vm2 }
 0x4fa   : > { %v2300_v29 = vsub.f32 %v2281_v7, %v4716_v34  ;;  %v2296_v28 = vmul.f32 %v2295_v47, %v4368_v48  ;;  %v2260_v56 = vsel %vm2259_vm14, %v4739_v38, %v2256_v44  ;;  %v2664_v15 = vadd.f32 %v2663_v22, %v2662_v51  ;;  %v402_v7 = vld [vmem:[%s4992_s3 + $0x138] sm:$0xff]  ;;  %v396_v47 = vld [vmem:[%s4992_s3 + $0x108] sm:$0xff] }
 0x4fb   : > { %v2298_v26 = vsub.f32 %v2251_v45, %v4716_v34  ;;  %v2265_v23 = vsel %vm2262_vm11, %v2264_v57, %v2260_v56  ;;  %v2669_v5 = vadd.f32 %v2668_v21, %v2667_v3  ;;  %v2657_v40 = vadd.f32 %v2656_v49, %v2655_v63  ;;  %v401_v45 = vld [vmem:[%s4992_s3 + $0x130] sm:$0xff]  ;;  %v398_v44 = vld [vmem:[%s4992_s3 + $0x118] sm:$0xff]  ;;  %v441_v21 = vld [vmem:[%s4993_s4 + $0xe8] sm:$0xff] }
 0x4fc   : > { %v2304_v2 = vmul.f32 %v2300_v29, %v2300_v29  ;;  %v2266_v60 = vmul.f32 %v2265_v23, %v4209_v8  ;;  %v2301_v0 = vsub.f32 %v2296_v28, %v4716_v34  ;;  %v409_v8 = vld [vmem:[%s4992_s3 + $0x170] sm:$0xff]  ;;  %v2687_v4 = vmul.f32 %v4257_v62, %v2664_v15  ;;  %v442_v57 = vld [vmem:[%s4993_s4 + $0xf8] sm:$0xff]  ;;  %v439_v28 = vld [vmem:[%s4993_s4 + $0xc8] sm:$0xff] }
 0x4fd   : > { %v2302_v10 = vmul.f32 %v2298_v26, %v2298_v26  ;;  %2785 = vmatpush.msra.mxu0 %v409_v8  ;;  %v2670_v31 = vrot.slane %v2669_v5, 1  ;;  %v2686_v16 = vmul.f32 %v4257_v62, %v2657_v40  ;;  %v397_v29 = vld [vmem:[%s4992_s3 + $0x110] sm:$0xff]  ;;  %2808 = vmatpush.msra.mxu1 %v442_v57  ;;  %v440_v26 = vld [vmem:[%s4993_s4 + $0xd8] sm:$0xff]  ;;  %v431_v51 = vld [vmem:[%s4993_s4 + $0x48] sm:$0xff]  ;;  %vm5057_vm12 = vcmask 261120  }
 0x4fe   : > { %v2312_v48 = vsel %vm1951_vm6, %v2304_v2, 0.0  ;;  %v4815_v50 = vsub.f32 %v2266_v60, %v4716_v34  ;;  %v2305_v17 = vmul.f32 %v2301_v0, %v2301_v0  ;;  %v407_v34 = vld [vmem:[%s4992_s3 + $0x160] sm:$0xff]  ;;  %v438_v56 = vld [vmem:[%s4993_s4 + $0xb8] sm:$0xff]  ;;  %v429_v63 = vld [vmem:[%s4993_s4 + $0x28] sm:$0xff]  ;;  %vm2165_vm1 = vcmask 257024  }
 0x4ff   : > { %2313 = vadd.xlane.f32.xlu1 %v2312_v48  ;;  %v2306_v38 = vsel %vm1951_vm6, %v2302_v10, 0.0  ;;  %2786 = vmatpush.msra.mxu0 %v408_v41  ;;  %v2671_v35 = vadd.f32 %v2670_v31, %v2669_v5  ;;  %v2726_v53 = vsel %vm1972_vm8, %v2687_v4, %v2686_v16  ;;  %v436_v2 = vld [vmem:[%s4993_s4 + $0x98] sm:$0xff]  ;;  %v433_v10 = vld [vmem:[%s4993_s4 + $0x68] sm:$0xff]  ;;  %v3112_v5 = vld [vmem:[%s4994_s5 + $0x2] ss:$0 sm:$0xff]  ;;  %v2009_v16 = vpop.xlane.xlu1 %2008  ;;  %vm5061_vm0 = vcmask 11264  }
 0x500   : > { %2307 = vadd.xlane.f32.xlu2 %v2306_v38  ;;  %v2648_v6 = vpop.f32.mrf.mxu3  ;;  %v2315_v13 = vsel %vm1951_vm6, %v2305_v17, 0.0  ;;  %2809 = vmatpush.msra.mxu1 %v441_v21  ;;  %v434_v23 = vld [vmem:[%s4993_s4 + $0x78] sm:$0xff]  ;;  %v3113_v41 = vld [vmem:[%s4994_s5 + $0x3] ss:$0 sm:$0xff]  ;;  %v3114_v17 = vld [vmem:[%s4994_s5 + $0x4] ss:$0 sm:$0xff] }
 0x501   : > { %v2672_v25 = vsel %vm2549_vm4, %v2648_v6, 0.0  ;;  %2787 = vmatpush.msra.mxu0 %v407_v34  ;;  %v2688_v3 = vmul.f32 %v4257_v62, %v2671_v35  ;;  %v432_v60 = vld [vmem:[%s4993_s4 + $0x58] sm:$0xff]  ;;  %vm2828_vm4 = vcmask 27648   ;;  %v5056_v35 = vld [vmem:[#allocation10_spill] sm:$0xff]  ;;  %v3253_v40 = vld [vmem:[%s3337_s10 + $0x70] sm:$0xff]  ;;  %vm2862_vm11 = vcmask 31744  }
 0x502   : > { %v2673_v18 = vrot.slane %v2672_v25, 4  ;;  %2810 = vmatpush.msra.mxu1 %v440_v26  ;;  %v430_v48 = vld [vmem:[%s4993_s4 + $0x38] sm:$0xff]  ;;  %vm5058_vm13 = vmmov %vm5057_vm12  ;;  %v2136_v26 = vadd.s32 4294967272, %v4118_v20 }
 0x503   : > { %2788 = vmatpush.msra.mxu0 %v406_v32  ;;  %v2727_v19 = vsel %vm1974_vm9, %v2688_v3, %v2726_v53  ;;  %v428_v6 = vld [vmem:[%s4993_s4 + $0x18] sm:$0xff]  ;;  %v5055_v32 = vld [vmem:[#allocation4_spill] sm:$0xff] }
 0x504   : > { %v2674_v39 = vadd.f32 %v2673_v18, %v2672_v25  ;;  %2811 = vmatpush.msra.mxu1 %v439_v28  ;;  %v427_v25 = vld [vmem:[%s4993_s4 + $0x8] sm:$0xff]  ;;  %v2034_v15 = vmul.f32 %v5055_v32, %v5055_v32 }
 0x505   : > { %2789 = vmatpush.msra.mxu0 %v405_v59 }
 0x506   : > { %v2675_v24 = vrot.slane %v2674_v39, 2  ;;  %2812 = vmatpush.msra.mxu1 %v438_v56  ;;  %v2132_v56 = vadd.s32 4294967280, %v4118_v20 }
 0x507   : > { %2790 = vmatpush.msra.mxu0 %v404_v52  ;;  %v3254_v52 = vld [vmem:[%s3337_s10 + $0x78] sm:$0xff]  ;;  %s3268_s10 = smov 2  }
 0x508   : > { %v2676_v9 = vadd.f32 %v2675_v24, %v2674_v39  ;;  %2316 = vadd.xlane.f32.xlu2 %v2315_v13  ;;  %2813 = vmatpush.msra.mxu1 %v437_v27  ;;  %v2778_v1 = vpop.f32.mrf.mxu3  ;;  %v2056_v24 = vsel %vm890_vm3, %v2034_v15, 0.0  ;;  %v2043_v13 = vmul.f32 %v5056_v35, %v5056_v35  ;;  %v2028_v4 = vsel %vm5058_vm13, %v3254_v52, 0.0 }
 0x509   : > { %2791 = vmatpush.msra.mxu0 %v403_v55  ;;  %v2012_v55 = vpop.xlane.xlu2 %2011  ;;  %vm2867_vm13 = vcmask 80896  }
 0x50a   : > { %v2677_v54 = vrot.slane %v2676_v9, 1  ;;  %2814 = vmatpush.msra.mxu1 %v436_v2  ;;  %v2083_v59 = vsel %vm890_vm3, %v2043_v13, 0.0 }
 0x50b   : > { %2792 = vmatpush.msra.mxu0 %v402_v7  ;;  %v2003_v7 = vpop.xlane.xlu0 %2002 }
 0x50c   : > { %v2678_v61 = vadd.f32 %v2677_v54, %v2676_v9  ;;  %2815 = vmatpush.msra.mxu1 %v435_v37  ;;  %v2025_v9 = vsel %vm5057_vm12, %v3253_v40, 0.0  ;;  %v2303_v54 = vmul.f32 %v4815_v50, %v4815_v50 }
 0x50d   : > { %2793 = vmatpush.msra.mxu0 %v401_v45 }
 0x50e   : > { %v2689_v11 = vmul.f32 %v4257_v62, %v2678_v61  ;;  %v399_v62 = vld [vmem:[%s4992_s3 + $0x120] sm:$0xff]  ;;  %2816 = vmatpush.msra.mxu1 %v434_v23  ;;  %v2309_v3 = vsel %vm1951_vm6, %v2303_v54, 0.0  ;;  %vm2134_vm6 = vcmask 195712  }
 0x50f   : > { %2794 = vmatpush.msra.mxu0 %v400_v58 }
 0x510   : > { %v2728_v42 = vsel %vm1976_vm10, %v2689_v11, %v2727_v19  ;;  %2817 = vmatpush.msra.mxu1 %v433_v10  ;;  %v2067_v11 = vpop.xlane.xlu1 %2066 }
 0x511   : > { %2757 = vmatmul.f32.vlgmr.msra.gmra.mxu2 %v2728_v42  ;;  %2795 = vmatpush.msra.mxu0 %v399_v62  ;;  %v2073_v61 = vpop.xlane.xlu2 %2072  ;;  %v2101_v27 = vmul.f32 %v2067_v11, %v2003_v7 }
 0x512   : > { %2818 = vmatpush.msra.mxu1 %v432_v60 }
 0x513   : > { %2796 = vmatpush.msra.mxu0 %v398_v44  ;;  %v2055_v19 = vpop.xlane.xlu0 %2054  ;;  %v2143_v60 = vperm.slane %v2101_v27, %v2132_v56 }
 0x514   : > { %2819 = vmatpush.msra.mxu1 %v431_v51  ;;  %v2097_v2 = vmul.f32 %v2055_v19, %v4653_v43 }
 0x515   : > { %2797 = vmatpush.msra.mxu0 %v397_v29 }
 0x516   : > { %2820 = vmatpush.msra.mxu1 %v430_v48  ;;  %v2133_v51 = vperm.slane %v2097_v2, %v2132_v56 }
 0x517   : > { %2798 = vmatpush.msra.mxu0 %v396_v47 }
 0x518   : > { %2821 = vmatpush.msra.mxu1 %v429_v63  ;;  %v1994_v42 = vpop.xlane.xlu1 %1993 }
 0x519   : > { %2799 = vmatpush.msra.mxu0 %v395_v33  ;;  %v2006_v53 = vpop.xlane.xlu2 %2005 }
 0x51a   : > { %2822 = vmatpush.msra.mxu1 %v428_v6 }
 0x51b   : > { %v2076_v58 = vpop.xlane.xlu0 %2075 }
 0x51c   : > { %2823 = vmatpush.msra.mxu1 %v427_v25 }
 0x520   : > { %v2021_v62 = vpop.xlane.xlu1 %2020 }
 0x521   : > { %v2024_v45 = vpop.xlane.xlu2 %2023 }
 0x523   : > { %v2015_v29 = vpop.xlane.xlu0 %2014 }
 0x528   : > { %v2070_v33 = vpop.xlane.xlu1 %2069 }
 0x529   : > { %v4940_v44 = vpop.xlane.xlu2 %1981  ;;  %v2102_v28 = vmul.f32 %v2070_v33, %v2006_v53 }
 0x52b   : > { %v2145_v23 = vperm.slane %v2102_v28, %v2136_v26 }
 0x531   : > { %v2079_v57 = vpop.xlane.xlu2 %2078 }
 0x594   : > { %v2758_v38 = vpop.f32.mrf.mxu2 }
 0x595   : > { %v2759_v0 = vadd.f32 %v3112_v5, %v2758_v38  ;;  %v2088_v5 = vpop.xlane.xlu1 %2087 }
 0x597   : > { %v2779_v8 = vadd.f32 %v2778_v1, %v2759_v0  ;;  %v2144_v0 = vsel %vm2134_vm6, %v2143_v60, %v4679_v46  ;;  %v2018_v1 = vpop.xlane.xlu2 %2017 }
 0x598   : > { %v2146_v43 = vsel %vm2138_vm15, %v2145_v23, %v2144_v0 }
 0x599   : > { %2800 = vmatmul.f32.vlgmr.msra.gmra.mxu0 %v2779_v8  ;;  %v2135_v8 = vsel %vm2134_vm6, %v2133_v51, %v4663_v14  ;;  %v2108_v14 = vmul.f32 %v2088_v5, %v2024_v45 }
 0x59b   : > { %v2155_v54 = vperm.slane %v2108_v14, %v4656_v30 }
 0x616   : > { %v2801_v22 = vpop.f32.mrf.mxu0 }
 0x617   : > { %v2802_v18 = vadd.f32 %v3113_v41, %v2801_v22  ;;  %v2082_v22 = vpop.xlane.xlu1 %2081 }
 0x619   : > { %v2804_v31 = vmax.f32 %v2802_v18, 0.0  ;;  %v2091_v18 = vpop.xlane.xlu2 %2090 }
 0x61b   : > { %2824 = vmatmul.f32.vlgmr.msra.gmra.mxu1 %v2804_v31 }
 0x61f   : > { %v2094_v35 = vpop.xlane.xlu1 %2093 }
 0x627   : > { %v2314_v45 = vpop.xlane.xlu1 %2313 }
 0x628   : > { %v2324_v33 = vperm.slane %v2314_v45, %v4118_v20 }
 0x698   : > { %v2825_v34 = vpop.f32.mrf.mxu1 }
 0x699   : > { %v2826_v49 = vadd.f32 %v3114_v17, %v2825_v34  ;;  %v2103_v17 = vmul.f32 %v2073_v61, %v2009_v16  ;;  %v2105_v34 = vmul.f32 %v2079_v57, %v2015_v29 }
 0x69b   : > { %v2829_v39 = vsel %vm2828_vm4, %v2826_v49, -inf  ;;  %v2147_v15 = vperm.slane %v2103_v17, %v4118_v20  ;;  %v2150_v13 = vperm.slane %v2105_v34, %v2132_v56 }
 0x69c   : > { %2830 = vmax.xlane.f32.xlu0 %v2829_v39  ;;  %v2106_v39 = vmul.f32 %v2082_v22, %v2018_v1 }
 0x6a4   : > { %2057 = vadd.xlane.f32.xlu0 %v2056_v24  ;;  %v2308_v24 = vpop.xlane.xlu2 %2307 }
 0x6a5   : > { %v2322_v29 = vperm.slane %v2308_v24, %v4118_v20 }
 0x6ac   : > { %2084 = vadd.xlane.f32.xlu0 %v2083_v59 }
 0x6b4   : > { %2026 = vadd.xlane.f32.xlu0 %v2025_v9  ;;  %v2152_v9 = vperm.slane %v2106_v39, %v2136_v26 }
 0x6bc   : > { %2029 = vadd.xlane.f32.xlu0 %v2028_v4 }
 0x6c4   : > { %2310 = vadd.xlane.f32.xlu0 %v2309_v3 }
 0x70f   : > { %v2831_v47 = vpop.xlane.xlu0 %2830 }
 0x710   : > { %v4942_v50 = vsub.f32 %v2826_v49, %v2831_v47  ;;  %v2104_v49 = vmul.f32 %v2076_v58, %v2012_v55  ;;  %v2317_v58 = vpop.xlane.xlu2 %2316 }
 0x711   : > { %v2325_v57 = vperm.slane %v2317_v58, %v4118_v20 }
 0x712   : > { %v2833_v21 = vmul.f32 1.442695, %v4942_v50  ;;  %v2148_v40 = vperm.slane %v2104_v49, %v4656_v30 }
 0x714   : > { %3215 = vpow2.f32 %v2833_v21  ;;  %v2149_v55 = vsel %vm5059_vm2, %v2148_v40, %v2147_v15 }
 0x715   : > { %v2151_v16 = vsel %vm2134_vm6, %v2150_v13, %v2149_v55 }
 0x716   : > { %v2153_v11 = vsel %vm2138_vm15, %v2152_v9, %v2151_v16 }
 0x717   : > { %v2058_v37 = vpop.xlane.xlu0 %2057 }
 0x718   : > { %v2098_v10 = vmul.f32 %v2058_v37, %v1994_v42 }
 0x71a   : > { %v3216_v48 = vpop.eup %3215  ;;  %v2137_v38 = vperm.slane %v2098_v10, %v2136_v26 }
 0x71b   : > { %v2835_v63 = vsel %vm2828_vm4, %v3216_v48, 0.0  ;;  %vm2865_vm4 = vcmask 72704  }
 0x71c   : > { %v2139_v6 = vsel %vm2138_vm15, %v2137_v38, %v2135_v8  ;;  %2836 = vadd.xlane.f32.xlu0 %v2835_v63 }
 0x71d   : > { %v2161_v25 = vsel %vm1972_vm8, %v2146_v43, %v2139_v6 }
 0x71e   : > { %v2162_v30 = vsel %vm1974_vm9, %v2153_v11, %v2161_v25 }
 0x71f   : > { %v2085_v41 = vpop.xlane.xlu0 %2084 }
 0x720   : > { %v2107_v46 = vmul.f32 %v2085_v41, %v2021_v62 }
 0x722   : > { %v2154_v59 = vperm.slane %v2107_v46, %v4118_v20 }
 0x724   : > { %v2156_v61 = vsel %vm5060_vm7, %v2155_v54, %v2154_v59 }
 0x727   : > { %v2027_v31 = vpop.xlane.xlu0 %2026 }
 0x728   : > { %v2109_v32 = vmul.f32 %v2091_v18, %v2027_v31 }
 0x72a   : > { %v2157_v52 = vperm.slane %v2109_v32, %v2132_v56 }
 0x72c   : > { %v2158_v53 = vsel %vm2134_vm6, %v2157_v52, %v2156_v61  ;;  %vm5062_vm6 = vcmask 64512  }
 0x72f   : > { %v2030_v4 = vpop.xlane.xlu0 %2029 }
 0x730   : > { %v2110_v3 = vmul.f32 %v2094_v35, %v2030_v4  ;;  %2854 = vrot.lane.b32.xlu0 %v4625_v36, %s3268_s10 }
 0x732   : > { %v2159_v7 = vperm.slane %v2110_v3, %v2136_v26 }
 0x734   : > { %v2160_v19 = vsel %vm2138_vm15, %v2159_v7, %v2158_v53 }
 0x735   : > { %v2163_v42 = vsel %vm1976_vm10, %v2160_v19, %v2162_v30 }
 0x736   : > { %v2166_v36 = vsel %vm2165_vm1, %v2163_v42, 0.0 }
 0x737   : > { %2167 = vadd.xlane.f32.xlu1 %v2166_v36  ;;  %v2311_v62 = vpop.xlane.xlu0 %2310 }
 0x738   : > { %v2323_v47 = vperm.slane %v2311_v62, %v4118_v20 }
 0x73a   : > { %v2326_v21 = vsel %vm1972_vm8, %v2323_v47, %v2322_v29 }
 0x73b   : > { %v2327_v26 = vsel %vm1974_vm9, %v2324_v33, %v2326_v21 }
 0x73c   : > { %v2328_v28 = vsel %vm1976_vm10, %v2325_v57, %v2327_v26 }
 0x73d   : > { %v2330_v56 = vsel %vm5061_vm0, %v2328_v28, 0.0 }
 0x73e   : > { %2331 = vadd.xlane.f32.xlu2 %v2330_v56 }
 0x78f   : > { %v2837_v27 = vpop.xlane.xlu0 %2836 }
 0x790   : > { %3217 = vlog2.f32 %v2837_v27 }
 0x796   : > { %v3218_v2 = vpop.eup %3217 }
 0x797   : > { %v2839_v37 = vmul.f32 0.6931472, %v3218_v2 }
 0x799   : > { %v2840_v23 = vsub.f32 %v4942_v50, %v2839_v37 }
 0x79b   : > { %2859 = vrot.lane.b32.xlu1 %v2840_v23, %s3269_s11 }
 0x7a2   : > { %v2855_v34 = vpop.permute.xlu0 %2854 }
 0x7a3   : > { %v2857_v49 = vsel %vm890_vm3, %v4628_v12, %v2855_v34 }
 0x7aa   : > { %v2168_v10 = vpop.xlane.xlu1 %2167 }
 0x7ab   : > { %3219 = vrcp.f32 %v2168_v10  ;;  %v2180_v43 = vand.u32 2147483648, %v2168_v10  ;;  %vm2174_vm9 = vweird.f32 %v2168_v10  ;;  %v2178_v50 = vand.u32 2147483647, %v2168_v10 }
 0x7ad   : > { %v2181_v41 = vor.u32 1.1754944e-38, %v2180_v43  ;;  %vm2179_vm5 = vcmp.eq.f32.partialorder %v2178_v50, 8.507059e+37 }
 0x7b1   : > { %v2332_v60 = vpop.xlane.xlu2 %2331  ;;  %v3220_v20 = vpop.eup %3219 }
 0x7b2   : > { %3221 = vrsqrt.f32 %v2332_v60  ;;  %v2170_v48 = vmul.f32 %v3220_v20, %v2168_v10  ;;  %vm2175_vm8 = vweird.f32 %v3220_v20  ;;  %vm2340_vm14 = vcmp.eq.f32.partialorder %v2332_v60, inf }
 0x7b3   : > { %vm2176_vm10 = vmor %vm2174_vm9, %vm2175_vm8  ;;  %v2343_v39 = vand.u32 2147483648, %v2332_v60  ;;  %vm2342_vm12 = vcmp.eq.f32.partialorder %v2332_v60, 0.0 }
 0x7b4   : > { %v2171_v38 = vsub.f32 1.0, %v2170_v48 }
 0x7b6   : > { %v2172_v1 = vmul.f32 %v3220_v20, %v2171_v38 }
 0x7b8   : > { %v3222_v51 = vpop.eup %3221  ;;  %v2173_v63 = vadd.f32 %v3220_v20, %v2172_v1 }
 0x7b9   : > { %v2334_v5 = vmul.f32 %v3222_v51, %v2332_v60 }
 0x7ba   : > { %v2177_v25 = vsel %vm2176_vm10, %v3220_v20, %v2173_v63 }
 0x7bb   : > { %v2335_v0 = vmul.f32 %v3222_v51, %v2334_v5  ;;  %v2182_v18 = vsel %vm2179_vm5, %v2181_v41, %v2177_v25 }
 0x7bc   : > { %v2183_v17 = vmul.f32 %v2182_v18, %v4940_v44 }
 0x7bd   : > { %v2336_v8 = vmul.f32 0.5, %v2335_v0 }
 0x7be   : > { %v2184_v32 = vsub.f32 0.0, %v2183_v17 }
 0x7bf   : > { %v2337_v6 = vsub.f32 1.5, %v2336_v8 }
 0x7c1   : > { %v2338_v22 = vmul.f32 %v3222_v51, %v2337_v6 }
 0x7c3   : > { %v2339_v31 = vmul.f32 %v2338_v22, %v2332_v60 }
 0x7c5   : > { %v2341_v46 = vsel %vm2340_vm14, %v2332_v60, %v2339_v31 }
 0x7c6   : > { %v2344_v24 = vsel %vm2342_vm12, %v2343_v39, %v2341_v46 }
 0x80d   : > { %v2860_v14 = vpop.permute.xlu1 %2859 }
 0x80e   : > { %v2863_v15 = vsel %vm2862_vm11, %v2857_v49, %v2860_v14 }
 0x80f   : > { %v2864_v44 = vsel %vm5062_vm6, %v2863_v15, %v2184_v32 }
 0x810   : > { %v2866_v35 = vsel %vm2865_vm4, %v2864_v44, %v2344_v24 }
 0x811   : > { %v2868_v13 = vsel %vm2867_vm13, %v2866_v35, 0.0 }
 0x812   : > { %v2870_v59 = vrot.slane %v2868_v13, 1  ;;  %v2871_v40 = vrot.slane %v2868_v13, 2  ;;  %2876 = vst [vmem:[%s315_s14] sm:$0x1] %v2868_v13  ;;  %v2872_v12 = vrot.slane %v2868_v13, 3 }
 0x814   : > { %2877 = vst [vmem:[%s315_s14 + $0x1] sm:$0x1] %v2870_v59 }
 0x815   : > { %2878 = vst [vmem:[%s315_s14 + $0x2] sm:$0x1] %v2871_v40 }
 0x816   : > { %2879 = vst [vmem:[%s315_s14 + $0x3] sm:$0x1] %v2872_v12 }
 0x817 PF: > { %s18_s24 = sadd.s32 1, %s3261_s24  }
 0x818   : > { %p15_p4 = scmp.ge.s32.totalorder %s18_s24, 4  }
 0x81a   :  { %17 = sbr.rel (!%p15_p4) target bundleno = 1 (0x1), region = 89 }

</bundles_post_ra>
